<compile_context>
chip_gen: v5e
topology: v5e:2x2
jax: 0.10.0
libtpu: 0.0.40
codegen_flags: <defaults>
</compile_context>

<pallas_src>
import functools

import numpy as np
import jax
import jax.numpy as jnp
from jax.experimental import pallas as pl
from jax.experimental.pallas import tpu as pltpu

# ----------------------------- configuration -------------------------------
CHANNELS_IN = 3
NUM_FREQ = 4                                   # Fourier encoding octaves
N_FOURIER = NUM_FREQ * CHANNELS_IN             # 12
ENC_DIM = CHANNELS_IN + 2 * N_FOURIER          # 27 (compact encoding width)
ID_ROWS = CHANNELS_IN + 1                      # 4: [x0, x1, x2, 1]
FREQ_BLOCK = 2 * NUM_FREQ                      # 8 phase rows per channel
TRIG_ROWS = CHANNELS_IN * FREQ_BLOCK           # 24 trig feature rows
HIDDEN = 32                                    # multiple of MatrixSize()=16
CHANNELS_OUT = 4
WEIGHT_DTYPE = jnp.bfloat16                    # stand-in for torch.float16 weights

# Per-channel phase constants: phases = x_c * FREQ8 + OFF8 (8 rows).
_FREQS = (np.pi * (2.0 ** np.arange(NUM_FREQ, dtype=np.float64))).astype(np.float32)
_FREQ8 = np.concatenate([_FREQS, _FREQS]).reshape(FREQ_BLOCK, 1).astype(np.float32)
_OFF8 = np.concatenate(
    [np.zeros(NUM_FREQ), np.full(NUM_FREQ, np.pi / 2.0)]
).reshape(FREQ_BLOCK, 1).astype(np.float32)

# Column permutation mapping compact w1 [id(3) | sin(12, freq-major) |
# cos(12, freq-major)] onto the on-chip trig row layout (channel-major).
_w1b_cols = []
for _c in range(CHANNELS_IN):
    _w1b_cols += [CHANNELS_IN + CHANNELS_IN * _f + _c for _f in range(NUM_FREQ)]              # sin
    _w1b_cols += [CHANNELS_IN + N_FOURIER + CHANNELS_IN * _f + _c for _f in range(NUM_FREQ)]  # cos
_W1B_COLS = np.asarray(_w1b_cols, dtype=np.int32)


# ------------------------------ Pallas kernel ------------------------------
def _fused_mlp_kernel(x_ref, fcol_ref, ocol_ref,
                      w1a_ref, w1b_ref, w2_ref, b2_ref, w3_ref, b3_ref,
                      o_ref):
    """Fused encoding + 3-layer MLP on one batch tile (batch on lanes).

    x_ref  : (ID_ROWS, TB)  f32  -- rows [x0, x1, x2, 1]
    fcol   : (FREQ_BLOCK,1) f32  -- [f0..f3, f0..f3]
    ocol   : (FREQ_BLOCK,1) f32  -- [0,0,0,0, pi/2 x4]
    w1a    : (HIDDEN, ID_ROWS)   -- identity cols + b1 folded into ones-col
    w1b    : (HIDDEN, TRIG_ROWS) -- trig cols, channel-major layout
    """
    x = x_ref[...]                                     # (4, TB) f32
    fcol = fcol_ref[...]                               # (8, 1)
    ocol = ocol_ref[...]                               # (8, 1)

    # Build the 24-row phase block on-chip: per channel, one sublane broadcast
    # of x_c times the freq column plus the sin/cos phase offset.  The three
    # (8, TB) pieces are sublane-tile aligned, so the concat is free layout.
    pieces = [x[c:c + 1, :] * fcol + ocol for c in range(CHANNELS_IN)]
    ph = jnp.concatenate(pieces, axis=0)               # (24, TB) f32
    trig = jnp.sin(ph)                                 # one 3-tile trig pass

    # Layer 1 as two accumulated dots (no VMEM scratch round-trip):
    #   identity/bias part (K=4) + trig part (K=24), f32 accumulation.
    h = jnp.dot(w1a_ref[...], x.astype(WEIGHT_DTYPE),
                preferred_element_type=jnp.float32)
    h = h + jnp.dot(w1b_ref[...], trig.astype(WEIGHT_DTYPE),
                    preferred_element_type=jnp.float32)
    h = jnp.maximum(h, 0.0)                            # bias already folded in

    # Layer 2: (H, H) @ (H, TB) -> ReLU
    h = jnp.dot(w2_ref[...], h.astype(WEIGHT_DTYPE),
                preferred_element_type=jnp.float32)
    h = jnp.maximum(h + b2_ref[...], 0.0)

    # Layer 3: (Cout, H) @ (H, TB), no activation
    out = jnp.dot(w3_ref[...], h.astype(WEIGHT_DTYPE),
                  preferred_element_type=jnp.float32) + b3_ref[...]

    o_ref[...] = out.astype(o_ref.dtype)               # lane-dense store


# ------------------------------- wrapper ------------------------------------
def _round_up(n, m):
    return ((n + m - 1) // m) * m


@functools.partial(jax.jit, static_argnames=("tile_b",))
def fused_network_forward(x, params, *, tile_b=4096):
    """Forward pass: x [batch, channels_in] f32 -> [batch, channels_out] f32."""
    assert x.ndim == 2 and x.shape[1] == CHANNELS_IN
    w1, b1, w2, b2, w3, b3 = params                    # weights are [out, in]

    batch = x.shape[0]
    # Clamp the tile for small batches (bounded padding waste); keep the lane
    # dim a multiple of 128.  Large-batch callers can pass 8192+ (fine even on
    # v7x's 64 MiB VMEM now that there is no per-tile encoding scratch).
    tile = max(128, min(_round_up(tile_b, 128), _round_up(batch, 128)))
    padded = pl.cdiv(batch, tile) * tile

    # Minimal layout plumbing: transpose so batch lives on lanes, append the
    # constant "ones" row (bias fold), pad batch to whole tiles.
    x_t = x.T.astype(jnp.float32)                                  # (3, B)
    xin = jnp.concatenate([x_t, jnp.ones((1, batch), jnp.float32)], axis=0)
    if padded != batch:
        xin = jnp.pad(xin, ((0, 0), (0, padded - batch)))          # (4, padded)

    # Layer-1 weights split & reordered to the on-chip encoding layout.
    w1a = jnp.concatenate(
        [w1[:, :CHANNELS_IN], b1.astype(w1.dtype).reshape(HIDDEN, 1)], axis=1)
    w1b = w1[:, jnp.asarray(_W1B_COLS)]                            # (H, 24)

    # Biases (layers 2/3) pre-cast to f32 column vectors (lane-broadcast).
    b2c = b2.astype(jnp.float32).reshape(HIDDEN, 1)
    b3c = b3.astype(jnp.float32).reshape(CHANNELS_OUT, 1)

    fcol = jnp.asarray(_FREQ8)                                     # (8, 1)
    ocol = jnp.asarray(_OFF8)                                      # (8, 1)

    grid = (padded // tile,)
    full = lambda i: (0, 0)

    weight_bytes = 2 * (HIDDEN * ID_ROWS + HIDDEN * TRIG_ROWS
                        + HIDDEN * HIDDEN + CHANNELS_OUT * HIDDEN) \
        + 4 * (HIDDEN + CHANNELS_OUT + 2 * FREQ_BLOCK)
    cost = pl.CostEstimate(
        flops=2 * padded * (HIDDEN * ID_ROWS + HIDDEN * TRIG_ROWS
                            + HIDDEN * HIDDEN + CHANNELS_OUT * HIDDEN),
        transcendentals=padded * TRIG_ROWS,
        bytes_accessed=padded * 4 * (ID_ROWS + CHANNELS_OUT) + weight_bytes,
    )

    out = pl.pallas_call(
        _fused_mlp_kernel,
        out_shape=jax.ShapeDtypeStruct((CHANNELS_OUT, padded), jnp.float32),
        grid_spec=pltpu.PrefetchScalarGridSpec(
            num_scalar_prefetch=0,
            grid=grid,
            in_specs=[
                # Batch-streamed coordinates + ones row.  (If a v5e profile
                # shows this DMA exposed, add pipeline_mode=pl.Buffered(3).)
                pl.BlockSpec((ID_ROWS, tile), lambda i: (0, i)),
                pl.BlockSpec((FREQ_BLOCK, 1), full),               # freq col
                pl.BlockSpec((FREQ_BLOCK, 1), full),               # offset col
                pl.BlockSpec((HIDDEN, ID_ROWS), full),             # w1a (+b1)
                pl.BlockSpec((HIDDEN, TRIG_ROWS), full),           # w1b
                pl.BlockSpec((HIDDEN, HIDDEN), full),              # w2
                pl.BlockSpec((HIDDEN, 1), full),                   # b2
                pl.BlockSpec((CHANNELS_OUT, HIDDEN), full),        # w3
                pl.BlockSpec((CHANNELS_OUT, 1), full),             # b3
            ],
            out_specs=pl.BlockSpec((CHANNELS_OUT, tile), lambda i: (0, i)),
        ),
        compiler_params=pltpu.CompilerParams(
            dimension_semantics=("parallel",)),
        cost_estimate=cost,
    )(xin, fcol, ocol, w1a, w1b, w2, b2c, w3, b3c)

    return out[:, :batch].T                            # (batch, channels_out)


# -------------------------- deterministic params ----------------------------
def init_params(key):
    """He-style init, weights stored [out, in] in WEIGHT_DTYPE (stand-in for
    the module's fp16 parameter blob from initialize_inference_parameters)."""
    k1, k2, k3, k4, k5, k6 = jax.random.split(key, 6)

    def he(k, fan_in, shape):
        return (jax.random.normal(k, shape, jnp.float32)
                * jnp.sqrt(2.0 / fan_in)).astype(WEIGHT_DTYPE)

    def small(k, shape):
        return (0.1 * jax.random.normal(k, shape, jnp.float32)).astype(WEIGHT_DTYPE)

    w1 = he(k1, ENC_DIM, (HIDDEN, ENC_DIM))
    b1 = small(k4, (HIDDEN,))
    w2 = he(k2, HIDDEN, (HIDDEN, HIDDEN))
    b2 = small(k5, (HIDDEN,))
    w3 = he(k3, HIDDEN, (CHANNELS_OUT, HIDDEN))
    b3 = small(k6, (CHANNELS_OUT,))
    return (w1, b1, w2, b2, w3, b3)


# --------------------------- pure-JAX reference -----------------------------
def reference_forward(x, params):
    """Reference with the compact encoding order [x, sin, cos], freq-major."""
    w1, b1, w2, b2, w3, b3 = params
    xf = x.astype(jnp.float32)
    freqs = jnp.asarray(_FREQS)
    ph = (xf[:, None, :] * freqs[None, :, None]).reshape(xf.shape[0], -1)   # (B,12)
    enc = jnp.concatenate([xf, jnp.sin(ph), jnp.cos(ph)], axis=-1)          # (B,27)

    def layer(h, w, b, act):
        y = (jnp.dot(h.astype(WEIGHT_DTYPE), w.T,
                     preferred_element_type=jnp.float32)
             + b.astype(jnp.float32))
        return jnp.maximum(y, 0.0) if act else y

    h = layer(enc, w1, b1, True)
    h = layer(h, w2, b2, True)
    return layer(h, w3, b3, False)


if __name__ == "__main__":
    key = jax.random.PRNGKey(0)
    kx, kp = jax.random.split(key)

    batch = 1000     # small; exercises batch padding (->1024) and a 2-step grid
    x = jax.random.uniform(kx, (batch, CHANNELS_IN), jnp.float32,
                           minval=-1.0, maxval=1.0)
    params = init_params(kp)

    out = fused_network_forward(x, params, tile_b=512)
    out = jax.block_until_ready(out)

    ref = reference_forward(x, params)
    assert out.shape == (batch, CHANNELS_OUT)
    assert jnp.allclose(out, ref, atol=3e-2, rtol=3e-2), "mismatch vs reference"

    print("KERNEL_OK")
</pallas_src>

<mosaic_0001>
module attributes {stable_mosaic.version = 11 : i64} {
  func.func @_fused_mlp_kernel(%arg0: i32, %arg1: memref<4x512xf32, #tpu.memory_space<vmem>>, %arg2: memref<8x1xf32, #tpu.memory_space<vmem>>, %arg3: memref<8x1xf32, #tpu.memory_space<vmem>>, %arg4: memref<32x4xbf16, #tpu.memory_space<vmem>>, %arg5: memref<32x24xbf16, #tpu.memory_space<vmem>>, %arg6: memref<32x32xbf16, #tpu.memory_space<vmem>>, %arg7: memref<32x1xf32, #tpu.memory_space<vmem>>, %arg8: memref<4x32xbf16, #tpu.memory_space<vmem>>, %arg9: memref<4x1xf32, #tpu.memory_space<vmem>>, %arg10: memref<4x512xf32, #tpu.memory_space<vmem>>) attributes {dimension_semantics = [#tpu.dimension_semantics<parallel>], iteration_bounds = array<i64: 2>, scalar_prefetch = 0 : i64, scratch_operands = 0 : i64, tpu.core_type = #tpu.core_type<tc>, window_params = [{transform_indices = @transform_0, window_bounds = array<i64: 4, 512>}, {pipeline_mode = #tpu.pipeline_mode<synchronous>, transform_indices = @transform_1, window_bounds = array<i64: 8, 1>}, {pipeline_mode = #tpu.pipeline_mode<synchronous>, transform_indices = @transform_2, window_bounds = array<i64: 8, 1>}, {pipeline_mode = #tpu.pipeline_mode<synchronous>, transform_indices = @transform_3, window_bounds = array<i64: 32, 4>}, {pipeline_mode = #tpu.pipeline_mode<synchronous>, transform_indices = @transform_4, window_bounds = array<i64: 32, 24>}, {pipeline_mode = #tpu.pipeline_mode<synchronous>, transform_indices = @transform_5, window_bounds = array<i64: 32, 32>}, {pipeline_mode = #tpu.pipeline_mode<synchronous>, transform_indices = @transform_6, window_bounds = array<i64: 32, 1>}, {pipeline_mode = #tpu.pipeline_mode<synchronous>, transform_indices = @transform_7, window_bounds = array<i64: 4, 32>}, {pipeline_mode = #tpu.pipeline_mode<synchronous>, transform_indices = @transform_8, window_bounds = array<i64: 4, 1>}, {transform_indices = @transform_9, window_bounds = array<i64: 4, 512>}]} {
    %c0 = arith.constant 0 : index
    %c0_0 = arith.constant 0 : index
    %0 = vector.load %arg1[%c0, %c0_0] : memref<4x512xf32, #tpu.memory_space<vmem>>, vector<4x512xf32>
    %c0_1 = arith.constant 0 : index
    %c0_2 = arith.constant 0 : index
    %1 = vector.load %arg2[%c0_1, %c0_2] : memref<8x1xf32, #tpu.memory_space<vmem>>, vector<8x1xf32>
    %c0_3 = arith.constant 0 : index
    %c0_4 = arith.constant 0 : index
    %2 = vector.load %arg3[%c0_3, %c0_4] : memref<8x1xf32, #tpu.memory_space<vmem>>, vector<8x1xf32>
    %3 = vector.extract_strided_slice %0 {offsets = [0, 0], sizes = [1, 512], strides = [1, 1]} : vector<4x512xf32> to vector<1x512xf32>
    %4 = vector.broadcast %3 : vector<1x512xf32> to vector<8x512xf32>
    %5 = vector.broadcast %1 : vector<8x1xf32> to vector<8x512xf32>
    %6 = arith.mulf %4, %5 : vector<8x512xf32>
    %7 = vector.broadcast %2 : vector<8x1xf32> to vector<8x512xf32>
    %8 = arith.addf %6, %7 : vector<8x512xf32>
    %9 = vector.extract_strided_slice %0 {offsets = [1, 0], sizes = [1, 512], strides = [1, 1]} : vector<4x512xf32> to vector<1x512xf32>
    %10 = vector.broadcast %9 : vector<1x512xf32> to vector<8x512xf32>
    %11 = vector.broadcast %1 : vector<8x1xf32> to vector<8x512xf32>
    %12 = arith.mulf %10, %11 : vector<8x512xf32>
    %13 = vector.broadcast %2 : vector<8x1xf32> to vector<8x512xf32>
    %14 = arith.addf %12, %13 : vector<8x512xf32>
    %15 = vector.extract_strided_slice %0 {offsets = [2, 0], sizes = [1, 512], strides = [1, 1]} : vector<4x512xf32> to vector<1x512xf32>
    %16 = vector.broadcast %15 : vector<1x512xf32> to vector<8x512xf32>
    %17 = vector.broadcast %1 : vector<8x1xf32> to vector<8x512xf32>
    %18 = arith.mulf %16, %17 : vector<8x512xf32>
    %19 = vector.broadcast %2 : vector<8x1xf32> to vector<8x512xf32>
    %20 = arith.addf %18, %19 : vector<8x512xf32>
    %21 = tpu.concatenate %8, %14, %20 in 0 : vector<8x512xf32>, vector<8x512xf32>, vector<8x512xf32> -> vector<24x512xf32>
    %22 = math.sin %21 : vector<24x512xf32>
    %c0_5 = arith.constant 0 : index
    %c0_6 = arith.constant 0 : index
    %23 = vector.load %arg4[%c0_5, %c0_6] : memref<32x4xbf16, #tpu.memory_space<vmem>>, vector<32x4xbf16>
    %24 = arith.truncf %0 : vector<4x512xf32> to vector<4x512xbf16>
    %cst = arith.constant dense<0.000000e+00> : vector<32x512xf32>
    %25 = tpu.matmul %23, %24, %cst {dimension_numbers = #tpu.dot_dimension_numbers<[1], [0], [0], [1], [0, 0, 1, 1], [], []>} : vector<32x4xbf16>, vector<4x512xbf16>, vector<32x512xf32> -> vector<32x512xf32>
    %c0_7 = arith.constant 0 : index
    %c0_8 = arith.constant 0 : index
    %26 = vector.load %arg5[%c0_7, %c0_8] : memref<32x24xbf16, #tpu.memory_space<vmem>>, vector<32x24xbf16>
    %27 = arith.truncf %22 : vector<24x512xf32> to vector<24x512xbf16>
    %cst_9 = arith.constant dense<0.000000e+00> : vector<32x512xf32>
    %28 = tpu.matmul %26, %27, %cst_9 {dimension_numbers = #tpu.dot_dimension_numbers<[1], [0], [0], [1], [0, 0, 1, 1], [], []>} : vector<32x24xbf16>, vector<24x512xbf16>, vector<32x512xf32> -> vector<32x512xf32>
    %29 = arith.addf %25, %28 : vector<32x512xf32>
    %cst_10 = arith.constant 0.000000e+00 : f32
    %30 = vector.broadcast %cst_10 : f32 to vector<32x512xf32>
    %31 = arith.maximumf %29, %30 : vector<32x512xf32>
    %c0_11 = arith.constant 0 : index
    %c0_12 = arith.constant 0 : index
    %32 = vector.load %arg6[%c0_11, %c0_12] : memref<32x32xbf16, #tpu.memory_space<vmem>>, vector<32x32xbf16>
    %33 = arith.truncf %31 : vector<32x512xf32> to vector<32x512xbf16>
    %cst_13 = arith.constant dense<0.000000e+00> : vector<32x512xf32>
    %34 = tpu.matmul %32, %33, %cst_13 {dimension_numbers = #tpu.dot_dimension_numbers<[1], [0], [0], [1], [0, 0, 1, 1], [], []>} : vector<32x32xbf16>, vector<32x512xbf16>, vector<32x512xf32> -> vector<32x512xf32>
    %c0_14 = arith.constant 0 : index
    %c0_15 = arith.constant 0 : index
    %35 = vector.load %arg7[%c0_14, %c0_15] : memref<32x1xf32, #tpu.memory_space<vmem>>, vector<32x1xf32>
    %36 = vector.broadcast %35 : vector<32x1xf32> to vector<32x512xf32>
    %37 = arith.addf %34, %36 : vector<32x512xf32>
    %cst_16 = arith.constant 0.000000e+00 : f32
    %38 = vector.broadcast %cst_16 : f32 to vector<32x512xf32>
    %39 = arith.maximumf %37, %38 : vector<32x512xf32>
    %c0_17 = arith.constant 0 : index
    %c0_18 = arith.constant 0 : index
    %40 = vector.load %arg8[%c0_17, %c0_18] : memref<4x32xbf16, #tpu.memory_space<vmem>>, vector<4x32xbf16>
    %41 = arith.truncf %39 : vector<32x512xf32> to vector<32x512xbf16>
    %cst_19 = arith.constant dense<0.000000e+00> : vector<4x512xf32>
    %42 = tpu.matmul %40, %41, %cst_19 {dimension_numbers = #tpu.dot_dimension_numbers<[1], [0], [0], [1], [0, 0, 1, 1], [], []>} : vector<4x32xbf16>, vector<32x512xbf16>, vector<4x512xf32> -> vector<4x512xf32>
    %c0_20 = arith.constant 0 : index
    %c0_21 = arith.constant 0 : index
    %43 = vector.load %arg9[%c0_20, %c0_21] : memref<4x1xf32, #tpu.memory_space<vmem>>, vector<4x1xf32>
    %44 = vector.broadcast %43 : vector<4x1xf32> to vector<4x512xf32>
    %45 = arith.addf %42, %44 : vector<4x512xf32>
    %c0_22 = arith.constant 0 : index
    %c0_23 = arith.constant 0 : index
    %46 = vector.load %arg10[%c0_22, %c0_23] : memref<4x512xf32, #tpu.memory_space<vmem>>, vector<4x512xf32>
    tpu.vector_store %arg10[%c0_22, %c0_23], %45 {strides = array<i32>} : memref<4x512xf32, #tpu.memory_space<vmem>>, vector<4x512xf32>,
    return
  }
  func.func @transform_0(%arg0: i32) -> (i32, i32) {
    %c0_i32 = arith.constant 0 : i32
    %c0_i32_0 = arith.constant 0 : i32
    return %c0_i32, %arg0 : i32, i32
  }
  func.func @transform_1(%arg0: i32) -> (i32, i32) {
    %c0_i32 = arith.constant 0 : i32
    %c0_i32_0 = arith.constant 0 : i32
    %c0_i32_1 = arith.constant 0 : i32
    return %c0_i32, %c0_i32_0 : i32, i32
  }
  func.func @transform_2(%arg0: i32) -> (i32, i32) {
    %c0_i32 = arith.constant 0 : i32
    %c0_i32_0 = arith.constant 0 : i32
    %c0_i32_1 = arith.constant 0 : i32
    return %c0_i32, %c0_i32_0 : i32, i32
  }
  func.func @transform_3(%arg0: i32) -> (i32, i32) {
    %c0_i32 = arith.constant 0 : i32
    %c0_i32_0 = arith.constant 0 : i32
    %c0_i32_1 = arith.constant 0 : i32
    return %c0_i32, %c0_i32_0 : i32, i32
  }
  func.func @transform_4(%arg0: i32) -> (i32, i32) {
    %c0_i32 = arith.constant 0 : i32
    %c0_i32_0 = arith.constant 0 : i32
    %c0_i32_1 = arith.constant 0 : i32
    return %c0_i32, %c0_i32_0 : i32, i32
  }
  func.func @transform_5(%arg0: i32) -> (i32, i32) {
    %c0_i32 = arith.constant 0 : i32
    %c0_i32_0 = arith.constant 0 : i32
    %c0_i32_1 = arith.constant 0 : i32
    return %c0_i32, %c0_i32_0 : i32, i32
  }
  func.func @transform_6(%arg0: i32) -> (i32, i32) {
    %c0_i32 = arith.constant 0 : i32
    %c0_i32_0 = arith.constant 0 : i32
    %c0_i32_1 = arith.constant 0 : i32
    return %c0_i32, %c0_i32_0 : i32, i32
  }
  func.func @transform_7(%arg0: i32) -> (i32, i32) {
    %c0_i32 = arith.constant 0 : i32
    %c0_i32_0 = arith.constant 0 : i32
    %c0_i32_1 = arith.constant 0 : i32
    return %c0_i32, %c0_i32_0 : i32, i32
  }
  func.func @transform_8(%arg0: i32) -> (i32, i32) {
    %c0_i32 = arith.constant 0 : i32
    %c0_i32_0 = arith.constant 0 : i32
    %c0_i32_1 = arith.constant 0 : i32
    return %c0_i32, %c0_i32_0 : i32, i32
  }
  func.func @transform_9(%arg0: i32) -> (i32, i32) {
    %c0_i32 = arith.constant 0 : i32
    %c0_i32_0 = arith.constant 0 : i32
    return %c0_i32, %arg0 : i32, i32
  }
}

</mosaic_0001>

<bundles_post_ra>
// kernel: fused_network_forward.1
= control target key start
LH: loop header
LB: loop body
LE: loop exit
PB: predicated region body
PF: predicated region fallthrough
CT: control target
= control target key end

     0   :  { %s3003_s30 = smov 0   ;;  %s4501_s0 = inlined_call_operand.vmem [shape: f32[4,1024], index: 0, kind: input, shape index: {}]   ;;  %s4502_s1 = inlined_call_operand.vmem [shape: f32[8,1], index: 1, kind: input, shape index: {}]   ;;  %s4503_s2 = inlined_call_operand.vmem [shape: f32[8,1], index: 2, kind: input, shape index: {}]   ;;  %s4504_s3 = inlined_call_operand.vmem [shape: bf16[32,4], index: 3, kind: input, shape index: {}]   ;;  %s4505_s4 = inlined_call_operand.vmem [shape: bf16[32,24], index: 4, kind: input, shape index: {}]   ;;  %s4506_s5 = inlined_call_operand.vmem [shape: bf16[32,32], index: 5, kind: input, shape index: {}]   ;;  %s4507_s6 = inlined_call_operand.vmem [shape: f32[32,1], index: 6, kind: input, shape index: {}]   ;;  %s4508_s7 = inlined_call_operand.vmem [shape: bf16[4,32], index: 7, kind: input, shape index: {}]   ;;  %s4509_s8 = inlined_call_operand.vmem [shape: f32[4,1], index: 8, kind: input, shape index: {}]   ;;  %s4510_s9 = inlined_call_operand.vmem [shape: f32[4,1024], index: 9, kind: output, shape index: {}]  }
   0x1 LB: > { %s2815_s10 = sadd.s32 4294967295, %s2944_s30   ;;  %p2819_p0 = scmp.ge.s32.totalorder %s2944_s30, 1  ;;  %s2944_s30 = sphi %s3003_s30, %s19_s30  }
   0x2   : > { %p288_p1 = scmp.lt.s32.totalorder %s2944_s30, 3 }
   0x4   : > { %p289_p2 = pnand %p2819_p0, %p288_p1 }
   0x5   : > { %s2820_s17 = sshll.u32 (!%p289_p2), %s2815_s10, 2 }
   0x6   : > { %292 = sbr.rel (%p289_p2) target bundleno = 1152 (0x480), region = 56  ;;  %p325_p3 = scmp.lt.s32.totalorder (!%p289_p2), %s2820_s17, 7 }
   0xb   : > { %v339_v0 = vld [vmem:[%s4502_s1] sm:$0xff]  ;;  %v2946_v1 = vmov 0   ;;  %s4534_s17 = smov (!%p325_p3, %s2820_s17), 7  ;;  %v2947_v47 = vmov 683565275  }
   0xc   : > { %2935 = vset.pattern.permute.xlu0 %v2946_v1  ;;  %2936 = vset.pattern.permute.xlu1 %v2946_v1  ;;  %v340_v2 = vld [vmem:[%s4503_s2] sm:$0xff]  ;;  %s2821_s18 = sshll.u32 %s4534_s17, 2  ;;  %v2948_v49 = vmov 2475754826   ;;  %v2949_v53 = vmov 2131351028  }
   0xd   : > { %357 = vperm.xlu0 %2935, %v339_v0   ;;  %2937 = vset.pattern.permute.xlu2 %v2946_v1  ;;  %v2686_v3 = vld [vmem:[%s4509_s8] sm:$0xf]  ;;  %s328_s21 = scalar_lea.vmem %s4501_s0, %s2821_s18  ;;  %v2950_v56 = vmov 2102212464   ;;  %v2951_v59 = vmov 920167782   ;;  %s334_s28 = scalar_lea.vmem %s4510_s9, %s2821_s18 }
   0xe   : > { %v3031_v4 = vld [vmem:[%s328_s21] sm:$0xff]  ;;  %v3034_v5 = vld [vmem:[%s328_s21 + $0x8] sm:$0xff]  ;;  %v2952_v62 = vmov 1326507024  }
   0xf   : > { %2277 = vst [vmem:[#allocation1] ss:$2 sm:$0xff] %v3031_v4  ;;  %v393_v6 = vperm.slane %v3031_v4, 2  ;;  %v394_v7 = vperm.slane %v3031_v4, 6  ;;  %v395_v9 = vperm.slane %v3034_v5, 2 }
  0x10   : > { %2279 = vst [vmem:[#allocation1 + $0x10] ss:$2 sm:$0xff] %v3034_v5 }
  0x11   : > { %v401_v10 = vperm.slane %v393_v6, 2  ;;  %v402_v11 = vperm.slane %v394_v7, 2  ;;  %v403_v12 = vperm.slane %v395_v9, 2 }
  0x15   : > { %366 = vperm.xlu0 %2935, %v340_v2  }
  0x1d   : > { %2689 = vperm.xlu0 %2935, %v2686_v3  }
  0x7f   : > { %v3039_v8 = vpop.permute.xlu0 %357 }
  0x80   : > { %v405_v13 = vmul.f32 %v401_v10, %v3039_v8  ;;  %v406_v14 = vmul.f32 %v402_v11, %v3039_v8  ;;  %v407_v16 = vmul.f32 %v403_v12, %v3039_v8 }
  0x87   : > { %v3044_v15 = vpop.permute.xlu0 %366 }
  0x88   : > { %v3048_v17 = vadd.f32 %v405_v13, %v3044_v15  ;;  %v3051_v18 = vadd.f32 %v406_v14, %v3044_v15  ;;  %v3054_v19 = vadd.f32 %v407_v16, %v3044_v15 }
  0x8a   : > { %v1653_v20 = vand.u32 2147483647, %v3048_v17  ;;  %v1656_v21 = vand.u32 2139095040, %v3048_v17  ;;  %v1808_v22 = vand.u32 2147483647, %v3051_v18  ;;  %v1811_v23 = vand.u32 2139095040, %v3051_v18 }
  0x8b   : > { %v1966_v28 = vand.u32 2139095040, %v3054_v19 }
  0x8c   : > { %v1657_v24 = vshrl.u32 %v1656_v21, 23  ;;  %v1660_v25 = vand.u32 8388607, %v1653_v20  ;;  %v1812_v26 = vshrl.u32 %v1811_v23, 23  ;;  %v1815_v27 = vand.u32 8388607, %v1808_v22 }
  0x8d   : > { %v1967_v35 = vshrl.u32 %v1966_v28, 23 }
  0x8e   : > { %v2848_v29 = vadd.s32 4294967169, %v1657_v24  ;;  %v1661_v30 = vor.u32 8388608, %v1660_v25  ;;  %v2851_v31 = vadd.s32 4294967169, %v1812_v26  ;;  %v1816_v32 = vor.u32 8388608, %v1815_v27 }
  0x8f   : > { %v3069_v41 = vadd.s32 4294967169, %v1967_v35 }
  0x90   : > { %v1663_v33 = vadd.s32 1, %v2848_v29  ;;  %v1818_v34 = vadd.s32 1, %v2851_v31  ;;  %v3065_v36 = vshll.u32 %v1661_v30, 8  ;;  %v3067_v38 = vshll.u32 %v1816_v32, 8 }
  0x92   : > { %vm1664_vm0 = vcmp.gt.s32.totalorder %v1663_v33, 0  ;;  %vm1819_vm1 = vcmp.gt.s32.totalorder %v1818_v34, 0  ;;  %v3072_v43 = vand.u32 65535, %v3065_v36  ;;  %v3075_v44 = vshrl.u32 %v3065_v36, 16 }
  0x93   : > { %v1665_v37 = vsel %vm1664_vm0, %v1663_v33, 0  ;;  %v1820_v40 = vsel %vm1819_vm1, %v1818_v34, 0  ;;  %v3084_v51 = vand.u32 65535, %v3067_v38 }
  0x94   : > { %v1667_v39 = vand.u32 31, %v1665_v37  ;;  %v3077_v45 = vand.u32 31, %v1820_v40  ;;  %v3079_v46 = vshrl.u32 %v1665_v37, 5  ;;  %v3126_v37 = vshrl.u32 %v1820_v40, 5 }
  0x96   : > { %v1668_v42 = vsub.s32 32, %v1667_v39  ;;  %v1670_v48 = vshll.u32 %v2947_v47, %v1667_v39  ;;  %v1673_v50 = vshll.u32 %v2948_v49, %v1667_v39  ;;  %v1676_v55 = vshll.u32 %v2949_v53, %v1667_v39 }
  0x97   : > { %v1679_v58 = vshll.u32 %v2950_v56, %v1667_v39  ;;  %v1682_v61 = vshll.u32 %v2951_v59, %v1667_v39  ;;  %v3095_v6 = vsub.s32 32, %v3077_v45  ;;  %vm1685_vm2 = vcmp.lt.s32.totalorder %v3079_v46, 1 }
  0x98   : > { %v1671_v52 = vshrl.u32 %v2948_v49, %v1668_v42  ;;  %v1674_v54 = vshrl.u32 %v2949_v53, %v1668_v42  ;;  %v1677_v57 = vshrl.u32 %v2950_v56, %v1668_v42  ;;  %v1680_v60 = vshrl.u32 %v2951_v59, %v1668_v42 }
  0x99   : > { %v1683_v63 = vshrl.u32 %v2952_v62, %v1668_v42  ;;  %vm1686_vm3 = vcmp.lt.s32.totalorder %v3079_v46, 2  ;;  %v1669_v10 = vshrl.u32 %v2947_v47, %v1668_v42  ;;  %vm1688_vm4 = vcmp.lt.s32.totalorder %v3079_v46, 4 }
  0x9a   : > { %v1672_v0 = vor.u32 %v1671_v52, %v1670_v48  ;;  %v1675_v2 = vor.u32 %v1674_v54, %v1673_v50  ;;  %v1678_v3 = vor.u32 %v1677_v57, %v1676_v55  ;;  %v1681_v7 = vor.u32 %v1680_v60, %v1679_v58 }
  0x9b   : > { %v1684_v9 = vor.u32 %v1683_v63, %v1682_v61  ;;  %vm1687_vm5 = vcmp.lt.s32.totalorder %v3079_v46, 3  ;;  %v1825_v16 = vshll.u32 %v2947_v47, %v3077_v45  ;;  %v1826_v25 = vshrl.u32 %v2948_v49, %v3095_v6 }
  0x9c   : > { %v1693_v11 = vsel %vm1685_vm2, %v1672_v0, %v1675_v2  ;;  %v1697_v12 = vsel %vm1685_vm2, %v1675_v2, %v1678_v3  ;;  %v1694_v13 = vsel %vm1688_vm4, %v1681_v7, 920167782  ;;  %v1690_v21 = vsel %vm1688_vm4, %v1678_v3, 2102212464 }
  0x9d   : > { %v1698_v14 = vsel %vm1688_vm4, %v1684_v9, 1326507024  ;;  %v1695_v23 = vsel %vm1687_vm5, %v1678_v3, %v1694_v13  ;;  %v1828_v28 = vshll.u32 %v2948_v49, %v3077_v45  ;;  %v1829_v29 = vshrl.u32 %v2949_v53, %v3095_v6 }
  0x9e   : > { %v1699_v24 = vsel %vm1687_vm5, %v1681_v7, %v1698_v14  ;;  %v1696_v26 = vsel %vm1686_vm3, %v1693_v11, %v1695_v23  ;;  %v1689_v34 = vsel %vm1685_vm2, %v1669_v10, %v1672_v0  ;;  %v1691_v35 = vsel %vm1687_vm5, %v1675_v2, %v1690_v21 }
  0x9f   : > { %v1700_v27 = vsel %vm1686_vm3, %v1697_v12, %v1699_v24  ;;  %v1726_v32 = vand.u32 65535, %v1696_v26  ;;  %v1727_v33 = vshrl.u32 %v1696_v26, 16  ;;  %v3128_v39 = vor.u32 %v1826_v25, %v1825_v16 }
  0xa0   : > { %v1704_v30 = vand.u32 65535, %v1700_v27  ;;  %v1705_v31 = vshrl.u32 %v1700_v27, 16  ;;  %v3132_v50 = vor.u32 %v1829_v29, %v1828_v28  ;;  %v1832_v52 = vshrl.u32 %v2950_v56, %v3095_v6 }
  0xa1   : > { %v1729_v55 = vmul.u32 %v1727_v33, %v3072_v43  ;;  %v1730_v57 = vmul.u32 %v1726_v32, %v3075_v44  ;;  %v1831_v40 = vshll.u32 %v2949_v53, %v3077_v45  ;;  %v1728_v61 = vmul.u32 %v1726_v32, %v3072_v43 }
  0xa2   : > { %v1707_v42 = vmul.u32 %v1705_v31, %v3072_v43  ;;  %v1708_v48 = vmul.u32 %v1704_v30, %v3075_v44  ;;  %v1706_v54 = vmul.u32 %v1704_v30, %v3072_v43  ;;  %v1709_v58 = vmul.u32 %v1705_v31, %v3075_v44 }
  0xa3   : > { %v1731_v63 = vmul.u32 %v1727_v33, %v3075_v44  ;;  %v1732_v7 = vshll.u32 %v1729_v55, 16  ;;  %v1734_v10 = vshll.u32 %v1730_v57, 16  ;;  %v1833_v11 = vor.u32 %v1832_v52, %v1831_v40 }
  0xa4   : > { %v1710_v60 = vshll.u32 %v1707_v42, 16  ;;  %v1711_v0 = vshrl.u32 %v1707_v42, 16  ;;  %v1712_v2 = vshll.u32 %v1708_v48, 16  ;;  %v1713_v3 = vshrl.u32 %v1708_v48, 16 }
  0xa5   : > { %vm1736_vm7 = vc.u32 %v1728_v61, %v1732_v7  ;;  %v1738_v13 = vadd.s32 %v1732_v7, %v1728_v61  ;;  %v1835_v14 = vshrl.u32 %v2951_v59, %v3095_v6  ;;  %v1834_v44 = vshll.u32 %v2950_v56, %v3077_v45 }
  0xa6   : > { %vm1714_vm6 = vc.u32 %v1706_v54, %v1710_v60  ;;  %v1716_v9 = vadd.s32 %v1710_v60, %v1706_v54  ;;  %v1737_v43 = vsel %vm1736_vm7, 1, %v2946_v1  ;;  %v1837_v24 = vshll.u32 %v2951_v59, %v3077_v45 }
  0xa7   : > { %v1715_v12 = vsel %vm1714_vm6, 1, %v2946_v1  ;;  %v1739_v23 = vadd.s32 %v1737_v43, %v1731_v63  ;;  %vm1740_vm9 = vc.u32 %v1738_v13, %v1734_v10  ;;  %v1836_v27 = vor.u32 %v1835_v14, %v1834_v44 }
  0xa8   : > { %v1717_v16 = vadd.s32 %v1715_v12, %v1709_v58  ;;  %vm1718_vm8 = vc.u32 %v1716_v9, %v1712_v2  ;;  %v1741_v26 = vsel %vm1740_vm9, 1, %v2946_v1  ;;  %v1838_v28 = vshrl.u32 %v2952_v62, %v3095_v6 }
  0xa9   : > { %v1719_v21 = vsel %vm1718_vm8, 1, %v2946_v1  ;;  %v1733_v29 = vshrl.u32 %v1729_v55, 16  ;;  %v1735_v30 = vshrl.u32 %v1730_v57, 16  ;;  %v3156_v31 = vadd.s32 %v1738_v13, %v1734_v10 }
  0xaa   : > { %v1721_v25 = vadd.s32 %v1719_v21, %v1717_v16  ;;  %v1743_v32 = vadd.s32 %v1741_v26, %v1739_v23  ;;  %v1839_v42 = vor.u32 %v1838_v28, %v1837_v24  ;;  %vm1840_vm10 = vcmp.lt.s32.totalorder %v3126_v37, 1 }
  0xab   : > { %vm1843_vm11 = vcmp.lt.s32.totalorder %v3126_v37, 4  ;;  %vm1842_vm12 = vcmp.lt.s32.totalorder %v3126_v37, 3  ;;  %v1848_v45 = vsel %vm1840_vm10, %v3128_v39, %v3132_v50  ;;  %vm1841_vm13 = vcmp.lt.s32.totalorder %v3126_v37, 2 }
  0xac   : > { %v1722_v33 = vadd.s32 %v1721_v25, %v1711_v0  ;;  %v1744_v48 = vadd.s32 %v1743_v32, %v1733_v29  ;;  %v1849_v52 = vsel %vm1843_vm11, %v1836_v27, 920167782  ;;  %v1852_v57 = vsel %vm1840_vm10, %v3132_v50, %v1833_v11 }
  0xad   : > { %v1850_v55 = vsel %vm1842_vm12, %v1833_v11, %v1849_v52  ;;  %v1692_v40 = vsel %vm1686_vm3, %v1689_v34, %v1691_v35  ;;  %v1853_v61 = vsel %vm1843_vm11, %v1839_v42, 1326507024  ;;  %v1858_v0 = vshrl.u32 %v3067_v38, 16 }
  0xae   : > { %v3167_v54 = vadd.s32 %v1722_v33, %v1713_v3  ;;  %v1745_v58 = vadd.s32 %v1744_v48, %v1735_v30  ;;  %v1851_v60 = vsel %vm1841_vm13, %v1848_v45, %v1850_v55  ;;  %v1854_v63 = vsel %vm1842_vm12, %v1836_v27, %v1853_v61 }
  0xaf   : > { %v1881_v2 = vand.u32 65535, %v1851_v60  ;;  %v1855_v46 = vsel %vm1841_vm13, %v1852_v57, %v1854_v63  ;;  %v1882_v34 = vshrl.u32 %v1851_v60, 16  ;;  %v1973_v35 = vadd.s32 1, %v3069_v41 }
  0xb0   : > { %vm1748_vm14 = vc.u32 %v3167_v54, %v3156_v31  ;;  %v1749_v3 = vadd.s32 1, %v1745_v58  ;;  %v1746_v7 = vmul.u32 %v3065_v36, %v1692_v40  ;;  %v1859_v9 = vand.u32 65535, %v1855_v46 }
  0xb1   : > { %v1860_v10 = vshrl.u32 %v1855_v46, 16  ;;  %v1963_v12 = vand.u32 2147483647, %v3054_v19  ;;  %v1824_v14 = vshrl.u32 %v2947_v47, %v3095_v6  ;;  %v1884_v16 = vmul.u32 %v1882_v34, %v3084_v51 }
  0xb2   : > { %v1750_v13 = vsel %vm1748_vm14, %v1749_v3, %v1745_v58  ;;  %v1885_v43 = vmul.u32 %v1881_v2, %v1858_v0  ;;  %v1845_v21 = vsel %vm1843_vm11, %v1833_v11, 2102212464  ;;  %v1863_v41 = vmul.u32 %v1859_v9, %v1858_v0 }
  0xb3   : > { %v1751_v44 = vadd.s32 %v1750_v13, %v1746_v7  ;;  %v1862_v23 = vmul.u32 %v1860_v10, %v3084_v51  ;;  %v1883_v36 = vmul.u32 %v1881_v2, %v3084_v51  ;;  %v1886_v24 = vmul.u32 %v1882_v34, %v1858_v0 }
  0xb4   : > { %v1887_v25 = vshll.u32 %v1884_v16, 16  ;;  %vm1974_vm15 = vcmp.gt.s32.totalorder %v1973_v35, 0  ;;  %v1861_v27 = vmul.u32 %v1859_v9, %v3084_v51  ;;  %v1864_v28 = vmul.u32 %v1860_v10, %v1858_v0 }
  0xb5   : > { %v1752_v26 = vadd.s32 536870912, %v1751_v44  ;;  %v1865_v6 = vshll.u32 %v1862_v23, 16  ;;  %v1867_v29 = vshll.u32 %v1863_v41, 16  ;;  %v1889_v30 = vshll.u32 %v1885_v43, 16 }
  0xb6   : > { %vm1891_vm0 = vc.u32 %v1883_v36, %v1887_v25  ;;  %v1893_v32 = vadd.s32 %v1887_v25, %v1883_v36  ;;  %v1844_v48 = vsel %vm1840_vm10, %v1824_v14, %v3128_v39  ;;  %v1846_v55 = vsel %vm1842_vm12, %v3132_v50, %v1845_v21 }
  0xb7   : > { %v1753_v33 = vshrl.u32 %v1752_v26, 30  ;;  %vm1869_vm1 = vc.u32 %v1861_v27, %v1865_v6  ;;  %v1871_v11 = vadd.s32 %v1865_v6, %v1861_v27  ;;  %v1892_v42 = vsel %vm1891_vm0, 1, %v2946_v1 }
  0xb8   : > { %v1870_v45 = vsel %vm1869_vm1, 1, %v2946_v1  ;;  %v1894_v52 = vadd.s32 %v1892_v42, %v1886_v24  ;;  %vm1895_vm2 = vc.u32 %v1893_v32, %v1889_v30  ;;  %v1866_v40 = vshrl.u32 %v1862_v23, 16 }
  0xb9   : > { %v1754_v51 = vshll.u32 %v1753_v33, 30  ;;  %v1872_v57 = vadd.s32 %v1870_v45, %v1864_v28  ;;  %vm1873_vm3 = vc.u32 %v1871_v11, %v1867_v29  ;;  %v1896_v60 = vsel %vm1895_vm2, 1, %v2946_v1 }
  0xba   : > { %v1874_v58 = vsel %vm1873_vm3, 1, %v2946_v1  ;;  %v1975_v61 = vsel %vm1974_vm15, %v1973_v35, 0  ;;  %v1777_v39 = vsub.s32 4, %v1753_v33  ;;  %v1898_v2 = vadd.s32 %v1896_v60, %v1894_v52 }
  0xbb   : > { %v1755_v63 = vsub.s32 %v1751_v44, %v1754_v51  ;;  %v1876_v0 = vadd.s32 %v1874_v58, %v1872_v57  ;;  %v1888_v3 = vshrl.u32 %v1884_v16, 16  ;;  %v1970_v46 = vand.u32 8388607, %v1963_v12 }
  0xbc   : > { %v1977_v34 = vand.u32 31, %v1975_v61  ;;  %v1868_v7 = vshrl.u32 %v1863_v41, 16  ;;  %vm1655_vm5 = vcmp.lt.s32.totalorder %v3048_v17, 0  ;;  %v1847_v10 = vsel %vm1841_vm13, %v1844_v48, %v1846_v55 }
  0xbd   : > { %vm1756_vm4 = vcmp.lt.s32.totalorder %v1755_v63, 0  ;;  %v1757_v50 = vsub.s32 0, %v1755_v63  ;;  %v1877_v9 = vadd.s32 %v1876_v0, %v1866_v40  ;;  %v1890_v13 = vshrl.u32 %v1885_v43, 16 }
  0xbe   : > { %v1899_v35 = vadd.s32 %v1898_v2, %v1888_v3  ;;  %v1778_v44 = vsel %vm1655_vm5, %v1777_v39, %v1753_v33  ;;  %v3219_v21 = vsub.s32 32, %v1977_v34  ;;  %v3221_v36 = vadd.s32 %v1893_v32, %v1889_v30 }
  0xbf   : > { %v1758_v14 = vsel %vm1756_vm4, %v1757_v50, %v1755_v63  ;;  %v3217_v16 = vadd.s32 %v1877_v9, %v1868_v7  ;;  %vm3225_vm6 = vcmp.le.f32.partialorder %v1653_v20, 0.7853982  ;;  %v1747_v37 = vadd.s32 %v3156_v31, %v3167_v54 }
  0xc0   : > { %v1759_v23 = vclz %v1758_v14  ;;  %v1900_v41 = vadd.s32 %v1899_v35, %v1890_v13  ;;  %v1901_v43 = vmul.u32 %v3067_v38, %v1847_v10  ;;  %v1971_v25 = vor.u32 8388608, %v1970_v46 }
  0xc1   : > { %v1780_v27 = vsel %vm3225_vm6, 0, %v1778_v44  ;;  %vm1903_vm7 = vc.u32 %v3217_v16, %v3221_v36  ;;  %v3236_v6 = vshrl.u32 %v1975_v61, 5  ;;  %v1983_v20 = vshll.u32 %v2948_v49, %v1977_v34 }
  0xc2   : > { %v2849_v26 = vadd.s32 4294967294, %v1759_v23  ;;  %v1904_v28 = vadd.s32 1, %v1900_v41  ;;  %v1984_v29 = vshrl.u32 %v2949_v53, %v3219_v21  ;;  %v1990_v31 = vshrl.u32 %v2951_v59, %v3219_v21 }
  0xc3   : > { %v1987_v54 = vshrl.u32 %v2950_v56, %v3219_v21  ;;  %v1989_v30 = vshll.u32 %v2950_v56, %v1977_v34  ;;  %v1981_v11 = vshrl.u32 %v2948_v49, %v3219_v21  ;;  %v1993_v42 = vshrl.u32 %v2952_v62, %v3219_v21 }
  0xc4   : > { %vm2850_vm8 = vcmp.lt.s32.totalorder %v2849_v26, 0  ;;  %v1905_v38 = vsel %vm1903_vm7, %v1904_v28, %v1900_v41  ;;  %v1986_v52 = vshll.u32 %v2949_v53, %v1977_v34  ;;  %v1980_v57 = vshll.u32 %v2947_v47, %v1977_v34 }
  0xc5   : > { %v1762_v32 = vsel %vm2850_vm8, 0, %v2849_v26  ;;  %v1906_v33 = vadd.s32 %v1905_v38, %v1901_v43  ;;  %v1991_v51 = vor.u32 %v1990_v31, %v1989_v30  ;;  %v3252_v40 = vor.u32 %v1984_v29, %v1983_v20 }
  0xc6   : > { %v1763_v48 = vsub.s32 32, %v1762_v32  ;;  %v1767_v45 = vsub.s32 4294967266, %v1762_v32  ;;  %v1992_v58 = vshll.u32 %v2951_v59, %v1977_v34  ;;  %v1764_v60 = vshll.u32 %v1755_v63, %v1762_v32 }
  0xc7   : > { %v1907_v55 = vadd.s32 536870912, %v1906_v33  ;;  %v1988_v0 = vor.u32 %v1987_v54, %v1986_v52  ;;  %v1982_v3 = vor.u32 %v1981_v11, %v1980_v57  ;;  %vm1998_vm9 = vcmp.lt.s32.totalorder %v3236_v6, 4 }
  0xc8   : > { %v1765_v61 = vshrl.u32 %v1747_v37, %v1763_v48  ;;  %v1768_v39 = vadd.s32 127, %v1767_v45  ;;  %v1994_v46 = vor.u32 %v1993_v42, %v1992_v58  ;;  %v2004_v9 = vsel %vm1998_vm9, %v1991_v51, 920167782 }
  0xc9   : > { %v3255_v2 = vshrl.u32 %v1907_v55, 30  ;;  %vm1995_vm10 = vcmp.lt.s32.totalorder %v3236_v6, 1  ;;  %v3262_v34 = vshll.u32 %v1971_v25, 8  ;;  %v1797_v13 = vadd.s32 3, %v1780_v27 }
  0xca   : > { %v1766_v50 = vor.u32 %v1765_v61, %v1764_v60  ;;  %v1769_v7 = vshll.u32 %v1768_v39, 23  ;;  %vm1997_vm11 = vcmp.lt.s32.totalorder %v3236_v6, 3  ;;  %v2007_v35 = vsel %vm1995_vm10, %v3252_v40, %v1988_v0 }
  0xcb   : > { %v1909_v10 = vshll.u32 %v3255_v2, 30  ;;  %v2003_v44 = vsel %vm1995_vm10, %v1982_v3, %v3252_v40  ;;  %v2005_v23 = vsel %vm1997_vm11, %v1988_v0, %v2004_v9  ;;  %v2008_v41 = vsel %vm1998_vm9, %v1994_v46, 1326507024 }
  0xcc   : > { %v1770_v63 = vor.u32 4788187, %v1769_v7  ;;  %v1773_v43 = vcvt.s32.f32 %v1766_v50  ;;  %vm1996_vm12 = vcmp.lt.s32.totalorder %v3236_v6, 2  ;;  %v2009_v25 = vsel %vm1997_vm11, %v1991_v51, %v2008_v41 }
  0xcd   : > { %v3268_v14 = vsub.s32 %v1906_v33, %v1909_v10  ;;  %v2010_v27 = vsel %vm1996_vm12, %v2007_v35, %v2009_v25  ;;  %v2012_v28 = vand.u32 65535, %v3262_v34  ;;  %v2006_v29 = vsel %vm1996_vm12, %v2003_v44, %v2005_v23 }
  0xce   : > { %v1771_v37 = vand.u32 2147483647, %v1770_v63  ;;  %v2014_v31 = vand.u32 65535, %v2010_v27  ;;  %v2015_v38 = vshrl.u32 %v2010_v27, 16  ;;  %v2013_v30 = vshrl.u32 %v3262_v34, 16 }
  0xcf   : > { %vm1911_vm13 = vcmp.lt.s32.totalorder %v3268_v14, 0  ;;  %v1912_v26 = vsub.s32 0, %v3268_v14  ;;  %v3289_v33 = vand.u32 3, %v1797_v13  ;;  %v1902_v48 = vadd.s32 %v3221_v36, %v3217_v16 }
  0xd0   : > { %v1774_v20 = vmul.f32 %v1773_v43, %v1771_v37  ;;  %v2017_v42 = vmul.u32 %v2015_v38, %v2012_v28  ;;  %v1979_v45 = vshrl.u32 %v2947_v47, %v3219_v21  ;;  %v3295_v52 = vmul.u32 %v2014_v31, %v2013_v30 }
  0xd1   : > { %v1913_v54 = vsel %vm1911_vm13, %v1912_v26, %v3268_v14  ;;  %v2037_v51 = vshrl.u32 %v2006_v29, 16  ;;  %v2016_v58 = vmul.u32 %v2014_v31, %v2012_v28  ;;  %v2000_v16 = vsel %vm1998_vm9, %v1988_v0, 2102212464 }
  0xd2   : > { %v1775_v32 = vxor.u32 2147483648, %v1774_v20  ;;  %v1914_v11 = vclz %v1913_v54  ;;  %v2020_v60 = vshll.u32 %v2017_v42, 16  ;;  %v2019_v36 = vmul.u32 %v2015_v38, %v2013_v30 }
  0xd3   : > { %v2036_v39 = vand.u32 65535, %v2006_v29  ;;  %v2022_v7 = vshll.u32 %v3295_v52, 16  ;;  %v3310_v10 = vmul.u32 %v2037_v51, %v2012_v28  ;;  %v1999_v0 = vsel %vm1995_vm10, %v1979_v45, %v1982_v3 }
  0xd4   : > { %v1776_v55 = vsel %vm1655_vm5, %v1775_v32, %v1774_v20  ;;  %v2852_v57 = vadd.s32 4294967294, %v1914_v11  ;;  %vm2024_vm15 = vc.u32 %v2016_v58, %v2020_v60  ;;  %v2026_v46 = vadd.s32 %v2020_v60, %v2016_v58 }
  0xd5   : > { %v3302_v61 = vsel %vm3225_vm6, %v3048_v17, %v1776_v55  ;;  %v2025_v9 = vsel %vm2024_vm15, 1, %v2946_v1  ;;  %vm1810_vm1 = vcmp.lt.s32.totalorder %v3051_v18, 0  ;;  %v2040_v20 = vmul.u32 %v2036_v39, %v2013_v30 }
  0xd6   : > { %v1781_v21 = vmul.f32 %v3302_v61, %v3302_v61  ;;  %vm2853_vm14 = vcmp.lt.s32.totalorder %v2852_v57, 0  ;;  %v2027_v23 = vadd.s32 %v2025_v9, %v2019_v36  ;;  %vm2028_vm0 = vc.u32 %v2026_v46, %v2022_v7 }
  0xd7   : > { %v1917_v50 = vsel %vm2853_vm14, 0, %v2852_v57  ;;  %v2029_v25 = vsel %vm2028_vm0, 1, %v2946_v1  ;;  %v2042_v29 = vshll.u32 %v3310_v10, 16  ;;  %v2021_v3 = vshrl.u32 %v2017_v42, 16 }
  0xd8   : > { %v1782_v24 = vmul.f32 -0.001358992, %v1781_v21  ;;  %v1789_v63 = vmul.f32 -0.00019511016, %v1781_v21  ;;  %v1918_v13 = vsub.s32 32, %v1917_v50  ;;  %v1919_v35 = vshll.u32 %v3268_v14, %v1917_v50 }
  0xd9   : > { %v1922_v44 = vsub.s32 4294967266, %v1917_v50  ;;  %v2031_v27 = vadd.s32 %v2029_v25, %v2027_v23  ;;  %v2038_v54 = vmul.u32 %v2036_v39, %v2012_v28  ;;  %v1932_v11 = vsub.s32 4, %v3255_v2 }
  0xda   : > { %v1783_v41 = vadd.f32 0.041655596, %v1782_v24  ;;  %v1790_v37 = vadd.f32 0.008332121, %v1789_v63  ;;  %v1920_v43 = vshrl.u32 %v1902_v48, %v1918_v13  ;;  %v2041_v45 = vmul.u32 %v2037_v51, %v2013_v30 }
  0xdb   : > { %v1923_v26 = vadd.s32 127, %v1922_v44  ;;  %vm3321_vm2 = vcmp.le.f32.partialorder %v1808_v22, 0.7853982  ;;  %v2032_v58 = vadd.s32 %v2031_v27, %v2021_v3  ;;  %vm2046_vm3 = vc.u32 %v2038_v54, %v2042_v29 }
  0xdc   : > { %v1784_v31 = vmul.f32 %v1783_v41, %v1781_v21  ;;  %v1791_v38 = vmul.f32 %v1790_v37, %v1781_v21  ;;  %v1921_v14 = vor.u32 %v1920_v43, %v1919_v35  ;;  %vm1800_vm4 = vcmp.eq.s32.totalorder %v3289_v33, 0 }
  0xdd   : > { %v1924_v32 = vshll.u32 %v1923_v26, 23  ;;  %vm1803_vm5 = vcmp.eq.s32.totalorder %v3289_v33, 2  ;;  %v2044_v42 = vshll.u32 %v2040_v20, 16  ;;  %v2047_v60 = vsel %vm2046_vm3, 1, %v2946_v1 }
  0xde   : > { %v1785_v55 = vadd.f32 -0.4999988, %v1784_v31  ;;  %v1792_v48 = vadd.f32 -0.16666654, %v1791_v38  ;;  %v2048_v36 = vadd.s32 %v2042_v29, %v2038_v54  ;;  %vm1799_vm6 = vcmp.lt.s32.totalorder %v3289_v33, 2 }
  0xdf   : > { %v1925_v28 = vor.u32 4788187, %v1924_v32  ;;  %v2023_v22 = vshrl.u32 %v3295_v52, 16  ;;  %v2049_v39 = vadd.s32 %v2047_v60, %v2041_v45  ;;  %vm1796_vm7 = vweird.f32 %v3048_v17 }
  0xe0   : > { %v1786_v30 = vmul.f32 %v1785_v55, %v1781_v21  ;;  %v1793_v51 = vmul.f32 %v1792_v48, %v1781_v21  ;;  %v1928_v50 = vcvt.s32.f32 %v1921_v14  ;;  %vm2050_vm8 = vc.u32 %v2048_v36, %v2044_v42 }
  0xe1   : > { %v1926_v46 = vand.u32 2147483647, %v1925_v28  ;;  %v396_v7 = vperm.slane %v3034_v5, 6  ;;  %v2001_v63 = vsel %vm1997_vm11, %v3252_v40, %v2000_v16  ;;  %v2051_v21 = vsel %vm2050_vm8, 1, %v2946_v1 }
  0xe2   : > { %v1787_v9 = vadd.f32 1.0, %v1786_v30  ;;  %v1794_v24 = vadd.f32 1.0, %v1793_v51  ;;  %v3336_v35 = vadd.s32 %v2032_v58, %v2023_v22  ;;  %v2043_v52 = vshrl.u32 %v3310_v10, 16 }
  0xe3   : > { %v1929_v13 = vmul.f32 %v1928_v50, %v1926_v46  ;;  %v2053_v44 = vadd.s32 %v2051_v21, %v2049_v39  ;;  %v1933_v37 = vsel %vm1810_vm1, %v1932_v11, %v3255_v2  ;;  %v404_v43 = vperm.slane %v396_v7, 2 }
  0xe4   : > { %v1795_v23 = vmul.f32 %v1794_v24, %v3302_v61  ;;  %v1804_v41 = vxor.u32 2147483648, %v1787_v9  ;;  %v2045_v26 = vshrl.u32 %v2040_v20, 16  ;;  %v2052_v27 = vadd.s32 %v2048_v36, %v2044_v42 }
  0xe5   : > { %v1930_v25 = vxor.u32 2147483648, %v1929_v13  ;;  %v2054_v40 = vadd.s32 %v2053_v44, %v2043_v52  ;;  %vm2321_vm9 = vcmask 1043456   ;;  %v2002_v29 = vsel %vm1996_vm12, %v1999_v0, %v2001_v63 }
  0xe6   : > { %v1801_v16 = vxor.u32 2147483648, %v1795_v23  ;;  %v408_v10 = vmul.f32 %v404_v43, %v3039_v8  ;;  %v1935_v31 = vsel %vm3321_vm2, 0, %v1933_v37  ;;  %vm2058_vm10 = vc.u32 %v3336_v35, %v2052_v27 }
  0xe7   : > { %v1931_v61 = vsel %vm1810_vm1, %v1930_v25, %v1929_v13  ;;  %v2055_v38 = vadd.s32 %v2054_v40, %v2045_v26  ;;  %v1805_v20 = vsel %vm1803_vm5, %v1804_v41, %v1795_v23  ;;  %v343_v32 = vperm.slane %v3031_v4, 0 }
  0xe8   : > { %v1802_v2 = vsel %vm1800_vm4, %v1787_v9, %v1801_v16  ;;  %v1934_v6 = vsel %vm3321_vm2, %v3051_v18, %v1931_v61  ;;  %v3359_v0 = vadd.f32 %v408_v10, %v3044_v15  ;;  %v1952_v45 = vadd.s32 3, %v1935_v31 }
  0xe9   : > { %v1806_v3 = vsel %vm1799_vm6, %v1802_v2, %v1805_v20  ;;  %v1936_v54 = vmul.f32 %v1934_v6, %v1934_v6  ;;  %v2059_v14 = vadd.s32 1, %v2055_v38  ;;  %v2056_v55 = vmul.u32 %v3262_v34, %v2002_v29 }
  0xea   : > { %v1807_v11 = vsel %vm1796_vm7, nan, %v1806_v3  ;;  %v2121_v48 = vand.u32 2139095040, %v3359_v0  ;;  %v2118_v60 = vand.u32 2147483647, %v3359_v0  ;;  %v351_v22 = vperm.slane %v343_v32, 0 }
  0xeb   : > { %v2300_v57 = vpack.c.bf16 %v1807_v11, %v1807_v11  ;;  %v1937_v58 = vmul.f32 -0.001358992, %v1936_v54  ;;  %v1944_v28 = vmul.f32 -0.00019511016, %v1936_v54  ;;  %v2060_v42 = vsel %vm2058_vm10, %v2059_v14, %v2055_v38 }
  0xec   : > { %v2061_v33 = vadd.s32 %v2060_v42, %v2056_v55  ;;  %v2122_v36 = vshrl.u32 %v2121_v48, 23  ;;  %v1953_v7 = vand.u32 3, %v1952_v45  ;;  %v2125_v24 = vand.u32 8388607, %v2118_v60 }
  0xed   : > { %v2323_v30 = vsel %vm2321_vm9, %v2300_v57, 0  ;;  %v1938_v51 = vadd.f32 0.041655596, %v1937_v58  ;;  %v1945_v17 = vadd.f32 0.008332121, %v1944_v28  ;;  %v360_v52 = vmul.f32 %v3039_v8, %v351_v22 }
  0xee   : > { %2340 = vmatpush.bf16.msra.mxu0 %v2323_v30  ;;  %v2062_v39 = vadd.s32 536870912, %v2061_v33  ;;  %v2857_v34 = vadd.s32 4294967169, %v2122_v36  ;;  %vm1965_vm11 = vcmp.lt.s32.totalorder %v3054_v19, 0  ;;  %v373_v23 = vperm.slane %v3031_v4, 1 }
  0xef   : > { %v1939_v46 = vmul.f32 %v1938_v51, %v1936_v54  ;;  %v1946_v50 = vmul.f32 %v1945_v17, %v1936_v54  ;;  %vm1954_vm13 = vcmp.lt.s32.totalorder %v1953_v7, 2  ;;  %v3378_v25 = vadd.f32 %v3044_v15, %v360_v52 }
  0xf0   : > { %v2063_v9 = vshrl.u32 %v2062_v39, 30  ;;  %v2128_v63 = vadd.s32 1, %v2857_v34  ;;  %vm1951_vm14 = vweird.f32 %v3051_v18  ;;  %vm1955_vm15 = vcmp.eq.s32.totalorder %v1953_v7, 0 }
  0xf1   : > { %v1940_v21 = vadd.f32 -0.4999988, %v1939_v46  ;;  %v1947_v13 = vadd.f32 -0.16666654, %v1946_v50  ;;  %v2126_v40 = vor.u32 8388608, %v2125_v24  ;;  %vm1958_vm0 = vcmp.eq.s32.totalorder %v1953_v7, 2 }
  0xf2   : > { %v2064_v44 = vshll.u32 %v2063_v9, 30  ;;  %vm2129_vm12 = vcmp.gt.s32.totalorder %v2128_v63, 0  ;;  %v2057_v61 = vadd.s32 %v2052_v27, %v3336_v35  ;;  %v2087_v38 = vsub.s32 4, %v2063_v9 }
  0xf3   : > { %v1941_v41 = vmul.f32 %v1940_v21, %v1936_v54  ;;  %v1948_v37 = vmul.f32 %v1947_v13, %v1936_v54  ;;  %v2130_v43 = vsel %vm2129_vm12, %v2128_v63, 0  ;;  %vm3386_vm2 = vcmp.le.f32.partialorder %v1963_v12, 0.7853982 }
  0xf4   : > { %v2065_v26 = vsub.s32 %v2061_v33, %v2064_v44  ;;  %v2132_v16 = vand.u32 31, %v2130_v43  ;;  %v3390_v14 = vperm.slane %v373_v23, 1  ;;  %v413_v32 = vand.u32 2147483647, %v3378_v25 }
  0xf5   : > { %v1942_v29 = vadd.f32 1.0, %v1941_v41  ;;  %v1949_v10 = vadd.f32 1.0, %v1948_v37  ;;  %v3396_v45 = vshll.u32 %v2126_v40, 8  ;;  %v2088_v58 = vsel %vm1965_vm11, %v2087_v38, %v2063_v9 }
  0xf6   : > { %vm2066_vm1 = vcmp.lt.s32.totalorder %v2065_v26, 0  ;;  %v2067_v31 = vsub.s32 0, %v2065_v26  ;;  %v3382_v2 = vsub.s32 32, %v2132_v16  ;;  %v2135_v35 = vshll.u32 %v2947_v47, %v2132_v16 }
  0xf7   : > { %v1950_v20 = vmul.f32 %v1949_v10, %v1934_v6  ;;  %v1959_v3 = vxor.u32 2147483648, %v1942_v29  ;;  %v2138_v48 = vshll.u32 %v2948_v49, %v2132_v16  ;;  %v3404_v28 = vshrl.u32 %v2130_v43, 5 }
  0xf8   : > { %v2068_v11 = vsel %vm2066_vm1, %v2067_v31, %v2065_v26  ;;  %v2136_v27 = vshrl.u32 %v2948_v49, %v3382_v2  ;;  %v2139_v12 = vshrl.u32 %v2949_v53, %v3382_v2  ;;  %v416_v42 = vand.u32 2139095040, %v3378_v25 }
  0xf9   : > { %v1956_v6 = vxor.u32 2147483648, %v1950_v20  ;;  %v2069_v55 = vclz %v2068_v11  ;;  %v1960_v57 = vsel %vm1958_vm0, %v1959_v3, %v1950_v20  ;;  %v2142_v22 = vshrl.u32 %v2950_v56, %v3382_v2 }
  0xfa   : > { %v2137_v30 = vor.u32 %v2136_v27, %v2135_v35  ;;  %v2140_v51 = vor.u32 %v2139_v12, %v2138_v48  ;;  %v2144_v39 = vshll.u32 %v2950_v56, %v2132_v16  ;;  %v2145_v34 = vshrl.u32 %v2951_v59, %v3382_v2 }
  0xfb   : > { %v1957_v33 = vsel %vm1955_vm15, %v1942_v29, %v1956_v6  ;;  %v2855_v36 = vadd.s32 4294967294, %v2069_v55  ;;  %v2141_v50 = vshll.u32 %v2949_v53, %v2132_v16  ;;  %v2148_v9 = vshrl.u32 %v2952_v62, %v3382_v2 }
  0xfc   : > { %v1961_v17 = vsel %vm1954_vm13, %v1957_v33, %v1960_v57  ;;  %v2146_v63 = vor.u32 %v2145_v34, %v2144_v39  ;;  %v2147_v21 = vshll.u32 %v2951_v59, %v2132_v16  ;;  %v2167_v23 = vand.u32 65535, %v3396_v45 }
  0xfd   : > { %v1962_v46 = vsel %vm1951_vm14, nan, %v1961_v17  ;;  %vm2856_vm3 = vcmp.lt.s32.totalorder %v2855_v36, 0  ;;  %v2143_v44 = vor.u32 %v2142_v22, %v2141_v50  ;;  %v2090_v37 = vsel %vm3386_vm2, 0, %v2088_v58 }
  0xfe   : > { %v2301_v24 = vpack.c.bf16 %v1962_v46, %v1962_v46  ;;  %v2072_v7 = vsel %vm2856_vm3, 0, %v2855_v36  ;;  %v2149_v43 = vor.u32 %v2148_v9, %v2147_v21  ;;  %vm2150_vm4 = vcmp.lt.s32.totalorder %v3404_v28, 1 }
  0xff   : > { %v2073_v13 = vsub.s32 32, %v2072_v7  ;;  %v2077_v52 = vsub.s32 4294967266, %v2072_v7  ;;  %v2074_v18 = vshll.u32 %v2065_v26, %v2072_v7  ;;  %vm2153_vm5 = vcmp.lt.s32.totalorder %v3404_v28, 4 }
 0x100   : > { %v2326_v41 = vsel %vm2321_vm9, %v2301_v24, 0  ;;  %vm2151_vm6 = vcmp.lt.s32.totalorder %v3404_v28, 2  ;;  %vm2152_vm7 = vcmp.lt.s32.totalorder %v3404_v28, 3  ;;  %v2158_v16 = vsel %vm2150_vm4, %v2137_v30, %v2140_v51 }
 0x101   : > { %2359 = vmatpush.bf16.msra.mxu1 %v2326_v41  ;;  %v2075_v40 = vshrl.u32 %v2057_v61, %v2073_v13  ;;  %v2078_v29 = vadd.s32 127, %v2077_v52  ;;  %v2159_v26 = vsel %vm2153_vm5, %v2146_v63, 920167782  ;;  %v2162_v38 = vsel %vm2150_vm4, %v2140_v51, %v2143_v44 }
 0x102   : > { %v2160_v61 = vsel %vm2152_vm7, %v2143_v44, %v2159_v26  ;;  %v2107_v20 = vadd.s32 3, %v2090_v37  ;;  %v2163_v11 = vsel %vm2153_vm5, %v2149_v43, 1326507024  ;;  %v2168_v35 = vshrl.u32 %v3396_v45, 16 }
 0x103   : > { %v2076_v10 = vor.u32 %v2075_v40, %v2074_v18  ;;  %v2079_v31 = vshll.u32 %v2078_v29, 23  ;;  %v2161_v3 = vsel %vm2151_vm6, %v2158_v16, %v2160_v61  ;;  %v2164_v6 = vsel %vm2152_vm7, %v2146_v63, %v2163_v11 }
 0x104   : > { %v2191_v55 = vand.u32 65535, %v2161_v3  ;;  %v417_v48 = vshrl.u32 %v416_v42, 23  ;;  %v2134_v12 = vshrl.u32 %v2947_v47, %v3382_v2  ;;  %v2155_v57 = vsel %vm2153_vm5, %v2143_v44, 2102212464 }
 0x105   : > { %v2080_v27 = vor.u32 4788187, %v2079_v31  ;;  %v2165_v58 = vsel %vm2151_vm6, %v2162_v38, %v2164_v6  ;;  %v2192_v33 = vshrl.u32 %v2161_v3, 16  ;;  %v2083_v17 = vcvt.s32.f32 %v2076_v10 }
 0x106   : > { %v2169_v22 = vand.u32 65535, %v2165_v58  ;;  %v2170_v39 = vshrl.u32 %v2165_v58, 16  ;;  %v3449_v34 = vand.u32 3, %v2107_v20  ;;  %v2154_v46 = vsel %vm2150_vm4, %v2134_v12, %v2137_v30 }
 0x107   : > { %v2081_v36 = vand.u32 2147483647, %v2080_v27  ;;  %v2194_v42 = vmul.u32 %v2192_v33, %v2167_v23  ;;  %v2195_v50 = vmul.u32 %v2191_v55, %v2168_v35  ;;  %v2156_v2 = vsel %vm2152_vm7, %v2140_v51, %v2155_v57 }
 0x108   : > { %v2172_v24 = vmul.u32 %v2170_v39, %v2167_v23  ;;  %v2173_v7 = vmul.u32 %v2169_v22, %v2168_v35  ;;  %v2193_v63 = vmul.u32 %v2191_v55, %v2167_v23  ;;  %v2196_v21 = vmul.u32 %v2192_v33, %v2168_v35 }
 0x109   : > { %v2084_v9 = vmul.f32 %v2083_v17, %v2081_v36  ;;  %v2197_v13 = vshll.u32 %v2194_v42, 16  ;;  %v2824_v52 = vadd.s32 4294967169, %v417_v48  ;;  %v2171_v41 = vmul.u32 %v2169_v22, %v2167_v23 }
 0x10a   : > { %v2174_v18 = vmul.u32 %v2170_v39, %v2168_v35  ;;  %v2175_v37 = vshll.u32 %v2172_v24, 16  ;;  %v2177_v43 = vshll.u32 %v2173_v7, 16  ;;  %v2199_v40 = vshll.u32 %v2195_v50, 16 }
 0x10b   : > { %v2085_v44 = vxor.u32 2147483648, %v2084_v9  ;;  %vm2201_vm8 = vc.u32 %v2193_v63, %v2197_v13  ;;  %v2203_v30 = vadd.s32 %v2197_v13, %v2193_v63  ;;  %v2198_v3 = vshrl.u32 %v2194_v42, 16 }
 0x10c   : > { %vm2179_vm10 = vc.u32 %v2171_v41, %v2175_v37  ;;  %v2181_v16 = vadd.s32 %v2175_v37, %v2171_v41  ;;  %v2202_v51 = vsel %vm2201_vm8, 1, %v2946_v1  ;;  %v423_v35 = vadd.s32 1, %v2824_v52 }
 0x10d   : > { %v2086_v29 = vsel %vm1965_vm11, %v2085_v44, %v2084_v9  ;;  %v2180_v10 = vsel %vm2179_vm10, 1, %v2946_v1  ;;  %v2204_v23 = vadd.s32 %v2202_v51, %v2196_v21  ;;  %vm2205_vm12 = vc.u32 %v2203_v30, %v2199_v40 }
 0x10e   : > { %v2089_v26 = vsel %vm3386_vm2, %v3054_v19, %v2086_v29  ;;  %v2182_v61 = vadd.s32 %v2180_v10, %v2174_v18  ;;  %vm2183_vm13 = vc.u32 %v2181_v16, %v2177_v43  ;;  %v2206_v38 = vsel %vm2205_vm12, 1, %v2946_v1 }
 0x10f   : > { %v2091_v31 = vmul.f32 %v2089_v26, %v2089_v26  ;;  %v2184_v20 = vsel %vm2183_vm13, 1, %v2946_v1  ;;  %v2208_v11 = vadd.s32 %v2206_v38, %v2204_v23  ;;  %v2176_v55 = vshrl.u32 %v2172_v24, 16 }
 0x110   : > { %v2186_v48 = vadd.s32 %v2184_v20, %v2182_v61  ;;  %v2178_v54 = vshrl.u32 %v2173_v7, 16  ;;  %v2200_v12 = vshrl.u32 %v2195_v50, 16  ;;  %vm424_vm11 = vcmp.gt.s32.totalorder %v423_v35, 0 }
 0x111   : > { %v2092_v27 = vmul.f32 -0.001358992, %v2091_v31  ;;  %v2099_v6 = vmul.f32 -0.00019511016, %v2091_v31  ;;  %v2209_v57 = vadd.s32 %v2208_v11, %v2198_v3  ;;  %v425_v17 = vsel %vm424_vm11, %v423_v35, 0 }
 0x112   : > { %v2187_v36 = vadd.s32 %v2186_v48, %v2176_v55  ;;  %v2157_v22 = vsel %vm2151_vm6, %v2154_v46, %v2156_v2  ;;  %v420_v42 = vand.u32 8388607, %v413_v32  ;;  %v427_v9 = vand.u32 31, %v425_v17 }
 0x113   : > { %v2093_v58 = vadd.f32 0.041655596, %v2092_v27  ;;  %v2100_v33 = vadd.f32 0.008332121, %v2099_v6  ;;  %v2210_v39 = vadd.s32 %v2209_v57, %v2200_v12  ;;  %v3470_v7 = vadd.s32 %v2203_v30, %v2199_v40 }
 0x114   : > { %v3468_v24 = vadd.s32 %v2187_v36, %v2178_v54  ;;  %v385_v13 = vmul.f32 %v3390_v14, %v3039_v8  ;;  %v3474_v52 = vsub.s32 32, %v427_v9  ;;  %v2211_v46 = vmul.u32 %v3396_v45, %v2157_v22 }
 0x115   : > { %v2094_v63 = vmul.f32 %v2093_v58, %v2091_v31  ;;  %v2101_v21 = vmul.f32 %v2100_v33, %v2091_v31  ;;  %v2214_v50 = vadd.s32 1, %v2210_v39  ;;  %v421_v41 = vor.u32 8388608, %v420_v42 }
 0x116   : > { %vm2213_vm14 = vc.u32 %v3468_v24, %v3470_v7  ;;  %v431_v18 = vshrl.u32 %v2948_v49, %v3474_v52  ;;  %v434_v37 = vshrl.u32 %v2949_v53, %v3474_v52  ;;  %vm2109_vm15 = vcmp.lt.s32.totalorder %v3449_v34, 2 }
 0x117   : > { %v2095_v44 = vadd.f32 -0.4999988, %v2094_v63  ;;  %v2102_v28 = vadd.f32 -0.16666654, %v2101_v21  ;;  %v2215_v2 = vsel %vm2213_vm14, %v2214_v50, %v2210_v39  ;;  %v3484_v30 = vshrl.u32 %v425_v17, 5 }
 0x118   : > { %v2216_v14 = vadd.s32 %v2215_v2, %v2211_v46  ;;  %v430_v45 = vshll.u32 %v2947_v47, %v427_v9  ;;  %v433_v29 = vshll.u32 %v2948_v49, %v427_v9  ;;  %v437_v16 = vshrl.u32 %v2950_v56, %v3474_v52 }
 0x119   : > { %v2096_v43 = vmul.f32 %v2095_v44, %v2091_v31  ;;  %v2103_v40 = vmul.f32 %v2102_v28, %v2091_v31  ;;  %v439_v51 = vshll.u32 %v2950_v56, %v427_v9  ;;  %v440_v31 = vshrl.u32 %v2951_v59, %v3474_v52 }
 0x11a   : > { %v2217_v61 = vadd.s32 536870912, %v2216_v14  ;;  %v432_v38 = vor.u32 %v431_v18, %v430_v45  ;;  %v3493_v20 = vor.u32 %v434_v37, %v433_v29  ;;  %v436_v3 = vshll.u32 %v2949_v53, %v427_v9 }
 0x11b   : > { %v2097_v10 = vadd.f32 1.0, %v2096_v43  ;;  %v2104_v23 = vadd.f32 1.0, %v2103_v40  ;;  %v443_v11 = vshrl.u32 %v2952_v62, %v3474_v52  ;;  %v441_v55 = vor.u32 %v440_v31, %v439_v51 }
 0x11c   : > { %v3498_v6 = vshrl.u32 %v2217_v61, 30  ;;  %vm2110_vm0 = vcmp.eq.s32.totalorder %v3449_v34, 0  ;;  %vm2113_vm1 = vcmp.eq.s32.totalorder %v3449_v34, 2  ;;  %v438_v48 = vor.u32 %v437_v16, %v436_v3 }
 0x11d   : > { %v2105_v35 = vmul.f32 %v2104_v23, %v2089_v26  ;;  %v2114_v27 = vxor.u32 2147483648, %v2097_v10  ;;  %v442_v54 = vshll.u32 %v2951_v59, %v427_v9  ;;  %vm448_vm2 = vcmp.lt.s32.totalorder %v3484_v30, 4 }
 0x11e   : > { %v2219_v57 = vshll.u32 %v3498_v6, 30  ;;  %v3505_v58 = vshll.u32 %v421_v41, 8  ;;  %vm445_vm3 = vcmp.lt.s32.totalorder %v3484_v30, 1  ;;  %vm447_vm4 = vcmp.lt.s32.totalorder %v3484_v30, 3 }
 0x11f   : > { %v2111_v12 = vxor.u32 2147483648, %v2105_v35  ;;  %v444_v33 = vor.u32 %v443_v11, %v442_v54  ;;  %v454_v26 = vsel %vm448_vm2, %v441_v55, 920167782  ;;  %v2115_v17 = vsel %vm2113_vm1, %v2114_v27, %v2105_v35 }
 0x120   : > { %v2220_v22 = vsub.s32 %v2216_v14, %v2219_v57  ;;  %v453_v39 = vsel %vm445_vm3, %v432_v38, %v3493_v20  ;;  %vm2106_vm5 = vweird.f32 %v3054_v19  ;;  %v3518_v9 = vadd.f32 %v385_v13, %v3044_v15 }
 0x121   : > { %v2112_v36 = vsel %vm2110_vm0, %v2097_v10, %v2111_v12  ;;  %v455_v63 = vsel %vm447_vm4, %v438_v48, %v454_v26  ;;  %vm446_vm7 = vcmp.lt.s32.totalorder %v3484_v30, 2  ;;  %v457_v19 = vsel %vm445_vm3, %v3493_v20, %v438_v48 }
 0x122   : > { %v2116_v42 = vsel %vm2109_vm15, %v2112_v36, %v2115_v17  ;;  %vm2221_vm6 = vcmp.lt.s32.totalorder %v2220_v22, 0  ;;  %v2222_v50 = vsub.s32 0, %v2220_v22  ;;  %v456_v28 = vsel %vm446_vm7, %v453_v39, %v455_v63 }
 0x123   : > { %v2117_v21 = vsel %vm2106_vm5, nan, %v2116_v42  ;;  %v458_v34 = vsel %vm448_vm2, %v444_v33, 1326507024  ;;  %v462_v2 = vand.u32 65535, %v3505_v58  ;;  %v487_v43 = vshrl.u32 %v456_v28, 16 }
 0x124   : > { %v2302_v44 = vpack.c.bf16 %v2117_v21, %v2117_v21  ;;  %v2223_v13 = vsel %vm2221_vm6, %v2222_v50, %v2220_v22  ;;  %v459_v46 = vsel %vm447_vm4, %v441_v55, %v458_v34  ;;  %v429_v40 = vshrl.u32 %v2947_v47, %v3474_v52 }
 0x125   : > { %v2224_v18 = vclz %v2223_v13  ;;  %v460_v37 = vsel %vm446_vm7, %v457_v19, %v459_v46  ;;  %v463_v14 = vshrl.u32 %v3505_v58, 16  ;;  %v486_v29 = vand.u32 65535, %v456_v28 }
 0x126   : > { %v2329_v41 = vsel %vm2321_vm9, %v2302_v44, 0  ;;  %v464_v45 = vand.u32 65535, %v460_v37  ;;  %vm2120_vm8 = vcmp.lt.s32.totalorder %v3359_v0, 0  ;;  %v465_v51 = vshrl.u32 %v460_v37, 16 }
 0x127   : > { %2378 = vmatpush.bf16.msra.mxu2 %v2329_v41  ;;  %v2858_v16 = vadd.s32 4294967294, %v2224_v18  ;;  %v489_v10 = vmul.u32 %v487_v43, %v462_v2  ;;  %v1033_v23 = vand.u32 2147483647, %v3518_v9  ;;  %v2212_v61 = vadd.s32 %v3470_v7, %v3468_v24 }
 0x128   : > { %v2242_v31 = vsub.s32 4, %v3498_v6  ;;  %v449_v3 = vsel %vm445_vm3, %v429_v40, %v432_v38  ;;  %v468_v52 = vmul.u32 %v464_v45, %v463_v14  ;;  %v450_v11 = vsel %vm448_vm2, %v438_v48, 2102212464 }
 0x129   : > { %vm2859_vm10 = vcmp.lt.s32.totalorder %v2858_v16, 0  ;;  %v467_v35 = vmul.u32 %v465_v51, %v462_v2  ;;  %v492_v27 = vshll.u32 %v489_v10, 16  ;;  %v466_v54 = vmul.u32 %v464_v45, %v462_v2 }
 0x12a   : > { %v2227_v55 = vsel %vm2859_vm10, 0, %v2858_v16  ;;  %v488_v12 = vmul.u32 %v486_v29, %v462_v2  ;;  %v490_v57 = vmul.u32 %v486_v29, %v463_v14  ;;  %v491_v24 = vmul.u32 %v487_v43, %v463_v14 }
 0x12b   : > { %v2228_v33 = vsub.s32 32, %v2227_v55  ;;  %v2232_v26 = vsub.s32 4294967266, %v2227_v55  ;;  %v470_v36 = vshll.u32 %v467_v35, 16  ;;  %v2229_v7 = vshll.u32 %v2220_v22, %v2227_v55 }
 0x12c   : > { %v469_v17 = vmul.u32 %v465_v51, %v463_v14  ;;  %v472_v39 = vshll.u32 %v468_v52, 16  ;;  %vm496_vm12 = vc.u32 %v488_v12, %v492_v27  ;;  %v494_v21 = vshll.u32 %v490_v57, 16 }
 0x12d   : > { %v2230_v38 = vshrl.u32 %v2212_v61, %v2228_v33  ;;  %v2233_v42 = vadd.s32 127, %v2232_v26  ;;  %vm474_vm13 = vc.u32 %v466_v54, %v470_v36  ;;  %v476_v63 = vadd.s32 %v470_v36, %v466_v54 }
 0x12e   : > { %v475_v48 = vsel %vm474_vm13, 1, %v2946_v1  ;;  %v497_v50 = vsel %vm496_vm12, 1, %v2946_v1  ;;  %v498_v44 = vadd.s32 %v492_v27, %v488_v12  ;;  %v2243_v22 = vsel %vm2120_vm8, %v2242_v31, %v3498_v6 }
 0x12f   : > { %v2231_v28 = vor.u32 %v2230_v38, %v2229_v7  ;;  %v2234_v19 = vshll.u32 %v2233_v42, 23  ;;  %v477_v34 = vadd.s32 %v475_v48, %v469_v17  ;;  %vm478_vm11 = vc.u32 %v476_v63, %v472_v39 }
 0x130   : > { %v479_v13 = vsel %vm478_vm11, 1, %v2946_v1  ;;  %v499_v46 = vadd.s32 %v497_v50, %v491_v24  ;;  %vm500_vm14 = vc.u32 %v498_v44, %v494_v21  ;;  %v471_v41 = vshrl.u32 %v467_v35, 16 }
 0x131   : > { %v2235_v2 = vor.u32 4788187, %v2234_v19  ;;  %v481_v18 = vadd.s32 %v479_v13, %v477_v34  ;;  %v501_v37 = vsel %vm500_vm14, 1, %v2946_v1  ;;  %v451_v43 = vsel %vm447_vm4, %v3493_v20, %v450_v11 }
 0x132   : > { %v493_v40 = vshrl.u32 %v489_v10, 16  ;;  %v503_v14 = vadd.s32 %v501_v37, %v499_v46  ;;  %v1036_v45 = vand.u32 2139095040, %v3518_v9  ;;  %v2238_v16 = vcvt.s32.f32 %v2231_v28 }
 0x133   : > { %v2236_v29 = vand.u32 2147483647, %v2235_v2  ;;  %v473_v6 = vshrl.u32 %v468_v52, 16  ;;  %v482_v51 = vadd.s32 %v481_v18, %v471_v41  ;;  %v495_v61 = vshrl.u32 %v490_v57, 16 }
 0x134   : > { %v504_v31 = vadd.s32 %v503_v14, %v493_v40  ;;  %v1037_v27 = vshrl.u32 %v1036_v45, 23  ;;  %v1040_v35 = vand.u32 8388607, %v1033_v23  ;;  %v502_v12 = vadd.s32 %v498_v44, %v494_v21 }
 0x135   : > { %v2239_v55 = vmul.f32 %v2238_v16, %v2236_v29  ;;  %v483_v54 = vadd.s32 %v482_v51, %v473_v6  ;;  %vm2119_vm15 = vcmp.le.f32.partialorder %v2118_v60, 0.7853982  ;;  %v452_v20 = vsel %vm446_vm7, %v449_v3, %v451_v43 }
 0x136   : > { %v505_v10 = vadd.s32 %v504_v31, %v495_v61  ;;  %v2836_v11 = vadd.s32 4294967169, %v1037_v27  ;;  %v2245_v52 = vsel %vm2119_vm15, 0, %v2243_v22  ;;  %v344_v57 = vperm.slane %v3031_v4, 4 }
 0x137   : > { %v2240_v33 = vxor.u32 2147483648, %v2239_v55  ;;  %vm508_vm0 = vc.u32 %v483_v54, %v502_v12  ;;  %v1041_v36 = vor.u32 8388608, %v1040_v35  ;;  %v506_v17 = vmul.u32 %v3505_v58, %v452_v20 }
 0x138   : > { %v509_v26 = vadd.s32 1, %v505_v10  ;;  %v1043_v24 = vadd.s32 1, %v2836_v11  ;;  %v2262_v39 = vadd.s32 3, %v2245_v52  ;;  %v352_v63 = vperm.slane %v344_v57, 0 }
 0x139   : > { %v2241_v7 = vsel %vm2120_vm8, %v2240_v33, %v2239_v55  ;;  %v3570_v21 = vshll.u32 %v1041_v36, 8  ;;  %v374_v50 = vperm.slane %v3031_v4, 5  ;;  %v3580_v41 = vadd.s32 %v502_v12, %v483_v54 }
 0x13a   : > { %v2244_v60 = vsel %vm2119_vm15, %v3359_v0, %v2241_v7  ;;  %v510_v30 = vsel %vm508_vm0, %v509_v26, %v505_v10  ;;  %vm1044_vm1 = vcmp.gt.s32.totalorder %v1043_v24, 0  ;;  %v3573_v34 = vand.u32 3, %v2262_v39 }
 0x13b   : > { %v2246_v3 = vmul.f32 %v2244_v60, %v2244_v60  ;;  %v511_v38 = vadd.s32 %v510_v30, %v506_v17  ;;  %v1045_v42 = vsel %vm1044_vm1, %v1043_v24, 0  ;;  %v361_v2 = vmul.f32 %v3039_v8, %v352_v63 }
 0x13c   : > { %v1047_v48 = vand.u32 31, %v1045_v42  ;;  %v3583_v18 = vand.u32 65535, %v3570_v21  ;;  %v3585_v37 = vperm.slane %v374_v50, 1  ;;  %v3591_v45 = vshrl.u32 %v1045_v42, 5 }
 0x13d   : > { %v2247_v44 = vmul.f32 -0.001358992, %v2246_v3  ;;  %v2254_v28 = vmul.f32 -0.00019511016, %v2246_v3  ;;  %v512_v19 = vadd.s32 536870912, %v511_v38  ;;  %v3589_v14 = vadd.f32 %v3044_v15, %v361_v2 }
 0x13e   : > { %v3575_v58 = vsub.s32 32, %v1047_v48  ;;  %vm2268_vm2 = vcmp.eq.s32.totalorder %v3573_v34, 2  ;;  %v1050_v27 = vshll.u32 %v2947_v47, %v1047_v48  ;;  %vm2265_vm3 = vcmp.eq.s32.totalorder %v3573_v34, 0 }
 0x13f   : > { %v2248_v22 = vadd.f32 0.041655596, %v2247_v44  ;;  %v2255_v13 = vadd.f32 0.008332121, %v2254_v28  ;;  %v3577_v46 = vshrl.u32 %v512_v19, 30  ;;  %v1053_v35 = vshll.u32 %v2948_v49, %v1047_v48 }
 0x140   : > { %v1051_v29 = vshrl.u32 %v2948_v49, %v3575_v58  ;;  %v1054_v16 = vshrl.u32 %v2949_v53, %v3575_v58  ;;  %v1060_v6 = vshrl.u32 %v2951_v59, %v3575_v58  ;;  %v1057_v55 = vshrl.u32 %v2950_v56, %v3575_v58 }
 0x141   : > { %v2249_v4 = vmul.f32 %v2248_v22, %v2246_v3  ;;  %v2256_v43 = vmul.f32 %v2255_v13, %v2246_v3  ;;  %v514_v40 = vshll.u32 %v3577_v46, 30  ;;  %v1059_v54 = vshll.u32 %v2950_v56, %v1047_v48 }
 0x142   : > { %v1063_v12 = vshrl.u32 %v2952_v62, %v3575_v58  ;;  %vm2264_vm4 = vcmp.lt.s32.totalorder %v3573_v34, 2  ;;  %vm2261_vm6 = vweird.f32 %v3359_v0  ;;  %v1052_v33 = vor.u32 %v1051_v29, %v1050_v27 }
 0x143   : > { %v2250_v51 = vadd.f32 -0.4999988, %v2249_v4  ;;  %v2257_v61 = vadd.f32 -0.16666654, %v2256_v43  ;;  %v3600_v31 = vsub.s32 %v511_v38, %v514_v40  ;;  %v3614_v52 = vor.u32 %v1054_v16, %v1053_v35 }
 0x144   : > { %v1056_v57 = vshll.u32 %v2949_v53, %v1047_v48  ;;  %v1061_v26 = vor.u32 %v1060_v6, %v1059_v54  ;;  %v1062_v17 = vshll.u32 %v2951_v59, %v1047_v48  ;;  %v568_v38 = vand.u32 2147483647, %v3589_v14 }
 0x145   : > { %v2251_v20 = vmul.f32 %v2250_v51, %v2246_v3  ;;  %v2258_v10 = vmul.f32 %v2257_v61, %v2246_v3  ;;  %vm516_vm5 = vcmp.lt.s32.totalorder %v3600_v31, 0  ;;  %v517_v11 = vsub.s32 0, %v3600_v31 }
 0x146   : > { %v1058_v30 = vor.u32 %v1057_v55, %v1056_v57  ;;  %v1083_v3 = vshrl.u32 %v3570_v21, 16  ;;  %v1064_v50 = vor.u32 %v1063_v12, %v1062_v17  ;;  %vm1065_vm7 = vcmp.lt.s32.totalorder %v3591_v45, 1 }
 0x147   : > { %v2252_v36 = vadd.f32 1.0, %v2251_v20  ;;  %v2259_v24 = vadd.f32 1.0, %v2258_v10  ;;  %v518_v7 = vsel %vm516_vm5, %v517_v11, %v3600_v31  ;;  %vm1068_vm8 = vcmp.lt.s32.totalorder %v3591_v45, 4 }
 0x148   : > { %v519_v39 = vclz %v518_v7  ;;  %v1073_v28 = vsel %vm1065_vm7, %v1052_v33, %v3614_v52  ;;  %v571_v48 = vand.u32 2139095040, %v3589_v14  ;;  %vm1066_vm10 = vcmp.lt.s32.totalorder %v3591_v45, 2 }
 0x149   : > { %v2260_v42 = vmul.f32 %v2259_v24, %v2244_v60  ;;  %v2269_v63 = vxor.u32 2147483648, %v2252_v36  ;;  %vm1067_vm12 = vcmp.lt.s32.totalorder %v3591_v45, 3  ;;  %v1074_v60 = vsel %vm1068_vm8, %v1061_v26, 920167782 }
 0x14a   : > { %v2825_v44 = vadd.s32 4294967294, %v519_v39  ;;  %v1075_v13 = vsel %vm1067_vm12, %v1058_v30, %v1074_v60  ;;  %v1077_v2 = vsel %vm1065_vm7, %v3614_v52, %v1058_v30  ;;  %v1078_v29 = vsel %vm1068_vm8, %v1064_v50, 1326507024 }
 0x14b   : > { %v2266_v19 = vxor.u32 2147483648, %v2260_v42  ;;  %v2270_v22 = vsel %vm2268_vm2, %v2269_v63, %v2260_v42  ;;  %v1076_v40 = vsel %vm1066_vm10, %v1073_v28, %v1075_v13  ;;  %v1079_v35 = vsel %vm1067_vm12, %v1061_v26, %v1078_v29 }
 0x14c   : > { %vm2826_vm13 = vcmp.lt.s32.totalorder %v2825_v44, 0  ;;  %v1106_v55 = vand.u32 65535, %v1076_v40  ;;  %v1107_v54 = vshrl.u32 %v1076_v40, 16  ;;  %v1080_v34 = vsel %vm1066_vm10, %v1077_v2, %v1079_v35 }
 0x14d   : > { %v2267_v4 = vsel %vm2265_vm3, %v2252_v36, %v2266_v19  ;;  %v522_v43 = vsel %vm2826_vm13, 0, %v2825_v44  ;;  %v1049_v11 = vshrl.u32 %v2947_v47, %v3575_v58  ;;  %v1085_v57 = vshrl.u32 %v1080_v34, 16 }
 0x14e   : > { %v2271_v16 = vsel %vm2264_vm4, %v2267_v4, %v2270_v22  ;;  %v523_v6 = vsub.s32 32, %v522_v43  ;;  %v524_v51 = vshll.u32 %v3600_v31, %v522_v43  ;;  %v527_v61 = vsub.s32 4294967266, %v522_v43 }
 0x14f   : > { %v2272_v27 = vsel %vm2261_vm6, nan, %v2271_v16  ;;  %v1084_v31 = vand.u32 65535, %v1080_v34  ;;  %v1109_v0 = vmul.u32 %v1107_v54, %v3583_v18  ;;  %v1110_v7 = vmul.u32 %v1106_v55, %v1083_v3 }
 0x150   : > { %v2303_v12 = vpack.c.bf16 %v2272_v27, %v2272_v27  ;;  %v525_v20 = vshrl.u32 %v3580_v41, %v523_v6  ;;  %v528_v10 = vadd.s32 127, %v527_v61  ;;  %vm415_vm11 = vcmp.lt.s32.totalorder %v3378_v25, 0 }
 0x151   : > { %v537_v41 = vsub.s32 4, %v3577_v46  ;;  %v1069_v17 = vsel %vm1065_vm7, %v1049_v11, %v1052_v33  ;;  %v1087_v39 = vmul.u32 %v1085_v57, %v3583_v18  ;;  %v1088_v58 = vmul.u32 %v1084_v31, %v1083_v3 }
 0x152   : > { %v2332_v36 = vsel %vm2321_vm9, %v2303_v12, 0  ;;  %v526_v24 = vor.u32 %v525_v20, %v524_v51  ;;  %v529_v26 = vshll.u32 %v528_v10, 23  ;;  %vm3665_vm14 = vcmp.le.f32.partialorder %v413_v32, 0.7853982 }
 0x153   : > { %2397 = vmatpush.bf16.msra.mxu3 %v2332_v36  ;;  %v1070_v50 = vsel %vm1068_vm8, %v1058_v30, 2102212464  ;;  %v1108_v44 = vmul.u32 %v1106_v55, %v3583_v18  ;;  %v1112_v28 = vshll.u32 %v1109_v0, 16  ;;  %v1086_v60 = vmul.u32 %v1084_v31, %v3583_v18 }
 0x154   : > { %v530_v63 = vor.u32 4788187, %v529_v26  ;;  %v533_v19 = vcvt.s32.f32 %v526_v24  ;;  %v1089_v33 = vmul.u32 %v1085_v57, %v1083_v3  ;;  %v1090_v22 = vshll.u32 %v1087_v39, 16 }
 0x155   : > { %v1092_v2 = vshll.u32 %v1088_v58, 16  ;;  %v1111_v4 = vmul.u32 %v1107_v54, %v1083_v3  ;;  %v1114_v43 = vshll.u32 %v1110_v7, 16  ;;  %vm1116_vm0 = vc.u32 %v1108_v44, %v1112_v28 }
 0x156   : > { %v531_v13 = vand.u32 2147483647, %v530_v63  ;;  %vm1094_vm15 = vc.u32 %v1086_v60, %v1090_v22  ;;  %v1096_v32 = vadd.s32 %v1090_v22, %v1086_v60  ;;  %v1118_v40 = vadd.s32 %v1112_v28, %v1108_v44 }
 0x157   : > { %v1071_v30 = vsel %vm1067_vm12, %v3614_v52, %v1070_v50  ;;  %v1095_v16 = vsel %vm1094_vm15, 1, %v2946_v1  ;;  %v1117_v6 = vsel %vm1116_vm0, 1, %v2946_v1  ;;  %v1091_v3 = vshrl.u32 %v1087_v39, 16 }
 0x158   : > { %v534_v29 = vmul.f32 %v533_v19, %v531_v13  ;;  %v1097_v18 = vadd.s32 %v1095_v16, %v1089_v33  ;;  %vm1098_vm1 = vc.u32 %v1096_v32, %v1092_v2  ;;  %v1119_v51 = vadd.s32 %v1117_v6, %v1111_v4 }
 0x159   : > { %vm1120_vm2 = vc.u32 %v1118_v40, %v1114_v43  ;;  %v1099_v27 = vsel %vm1098_vm1, 1, %v2946_v1  ;;  %v1113_v54 = vshrl.u32 %v1109_v0, 16  ;;  %v572_v52 = vshrl.u32 %v571_v48, 23 }
 0x15a   : > { %v535_v61 = vxor.u32 2147483648, %v534_v29  ;;  %v1121_v35 = vsel %vm1120_vm2, 1, %v2946_v1  ;;  %v1101_v55 = vadd.s32 %v1099_v27, %v1097_v18  ;;  %v538_v10 = vsel %vm415_vm11, %v537_v41, %v3577_v46 }
 0x15b   : > { %v1123_v12 = vadd.s32 %v1121_v35, %v1119_v51  ;;  %v1093_v34 = vshrl.u32 %v1088_v58, 16  ;;  %v1115_v11 = vshrl.u32 %v1110_v7, 16  ;;  %v2827_v36 = vadd.s32 4294967169, %v572_v52 }
 0x15c   : > { %v536_v20 = vsel %vm415_vm11, %v535_v61, %v534_v29  ;;  %v1102_v57 = vadd.s32 %v1101_v55, %v1091_v3  ;;  %v1072_v24 = vsel %vm1066_vm10, %v1069_v17, %v1071_v30  ;;  %v1122_v39 = vadd.s32 %v1118_v40, %v1114_v43 }
 0x15d   : > { %v3690_v31 = vsel %vm3665_vm14, %v3378_v25, %v536_v20  ;;  %v1124_v0 = vadd.s32 %v1123_v12, %v1113_v54  ;;  %v578_v46 = vadd.s32 1, %v2827_v36  ;;  %v540_v7 = vsel %vm3665_vm14, 0, %v538_v10 }
 0x15e   : > { %v541_v48 = vmul.f32 %v3690_v31, %v3690_v31  ;;  %v1103_v26 = vadd.s32 %v1102_v57, %v1093_v34  ;;  %v386_v50 = vmul.f32 %v3585_v37, %v3039_v8  ;;  %v575_v28 = vand.u32 8388607, %v568_v38 }
 0x15f   : > { %v1125_v63 = vadd.s32 %v1124_v0, %v1115_v11  ;;  %vm579_vm4 = vcmp.gt.s32.totalorder %v578_v46, 0  ;;  %v1126_v19 = vmul.u32 %v3570_v21, %v1072_v24  ;;  %v557_v33 = vadd.s32 3, %v540_v7 }
 0x160   : > { %v542_v41 = vmul.f32 -0.001358992, %v541_v48  ;;  %v549_v58 = vmul.f32 -0.00019511016, %v541_v48  ;;  %vm1128_vm3 = vc.u32 %v1103_v26, %v1122_v39  ;;  %v580_v60 = vsel %vm579_vm4, %v578_v46, 0 }
 0x161   : > { %v1129_v44 = vadd.s32 1, %v1125_v63  ;;  %v3704_v42 = vadd.f32 %v386_v50, %v3044_v15  ;;  %v582_v13 = vand.u32 31, %v580_v60  ;;  %v576_v43 = vor.u32 8388608, %v575_v28 }
 0x162   : > { %v543_v45 = vadd.f32 0.041655596, %v542_v41  ;;  %v550_v17 = vadd.f32 0.008332121, %v549_v58  ;;  %v3706_v30 = vand.u32 3, %v557_v33  ;;  %v3711_v61 = vshrl.u32 %v580_v60, 5 }
 0x163   : > { %v1130_v22 = vsel %vm1128_vm3, %v1129_v44, %v1125_v63  ;;  %v583_v32 = vsub.s32 32, %v582_v13  ;;  %v1188_v16 = vand.u32 2147483647, %v3704_v42  ;;  %v1191_v51 = vand.u32 2139095040, %v3704_v42 }
 0x164   : > { %v544_v2 = vmul.f32 %v543_v45, %v541_v48  ;;  %v551_v4 = vmul.f32 %v550_v17, %v541_v48  ;;  %v1131_v37 = vadd.s32 %v1130_v22, %v1126_v19  ;;  %v3715_v35 = vshll.u32 %v576_v43, 8 }
 0x165   : > { %v595_v18 = vshrl.u32 %v2951_v59, %v583_v32  ;;  %v586_v3 = vshrl.u32 %v2948_v49, %v583_v32  ;;  %v589_v27 = vshrl.u32 %v2949_v53, %v583_v32  ;;  %vm1035_vm5 = vcmp.lt.s32.totalorder %v3518_v9, 0 }
 0x166   : > { %v1132_v40 = vadd.s32 536870912, %v1131_v37  ;;  %v552_v29 = vadd.f32 -0.16666654, %v551_v4  ;;  %v545_v6 = vadd.f32 -0.4999988, %v544_v2  ;;  %v585_v54 = vshll.u32 %v2947_v47, %v582_v13 }
 0x167   : > { %v592_v12 = vshrl.u32 %v2950_v56, %v583_v32  ;;  %v594_v52 = vshll.u32 %v2950_v56, %v582_v13  ;;  %v588_v10 = vshll.u32 %v2948_v49, %v582_v13  ;;  %v591_v34 = vshll.u32 %v2949_v53, %v582_v13 }
 0x168   : > { %v1133_v21 = vshrl.u32 %v1132_v40, 30  ;;  %v553_v20 = vmul.f32 %v552_v29, %v541_v48  ;;  %v598_v11 = vshrl.u32 %v2952_v62, %v583_v32  ;;  %v546_v57 = vmul.f32 %v545_v6, %v541_v48 }
 0x169   : > { %v596_v36 = vor.u32 %v595_v18, %v594_v52  ;;  %v597_v24 = vshll.u32 %v2951_v59, %v582_v13  ;;  %vm3729_vm6 = vcmp.le.f32.partialorder %v1033_v23, 0.7853982  ;;  %v1127_v46 = vadd.s32 %v1122_v39, %v1103_v26 }
 0x16a   : > { %v1134_v55 = vshll.u32 %v1133_v21, 30  ;;  %v587_v7 = vor.u32 %v586_v3, %v585_v54  ;;  %v590_v41 = vor.u32 %v589_v27, %v588_v10  ;;  %v345_v58 = vperm.slane %v3034_v5, 0 }
 0x16b   : > { %v593_v50 = vor.u32 %v592_v12, %v591_v34  ;;  %v599_v44 = vor.u32 %v598_v11, %v597_v24  ;;  %v554_v28 = vadd.f32 1.0, %v553_v20  ;;  %v1157_v45 = vsub.s32 4, %v1133_v21 }
 0x16c   : > { %v3724_v0 = vsub.s32 %v1131_v37, %v1134_v55  ;;  %vm603_vm8 = vcmp.lt.s32.totalorder %v3711_v61, 4  ;;  %v617_v23 = vand.u32 65535, %v3715_v35  ;;  %v3738_v17 = vadd.f32 1.0, %v546_v57 }
 0x16d   : > { %vm600_vm10 = vcmp.lt.s32.totalorder %v3711_v61, 1  ;;  %v609_v39 = vsel %vm603_vm8, %v596_v36, 920167782  ;;  %vm602_vm12 = vcmp.lt.s32.totalorder %v3711_v61, 3  ;;  %v618_v33 = vshrl.u32 %v3715_v35, 16 }
 0x16e   : > { %vm1136_vm7 = vcmp.lt.s32.totalorder %v3724_v0, 0  ;;  %v1137_v48 = vsub.s32 0, %v3724_v0  ;;  %v608_v60 = vsel %vm600_vm10, %v587_v7, %v590_v41  ;;  %v610_v22 = vsel %vm602_vm12, %v593_v50, %v609_v39 }
 0x16f   : > { %v612_v13 = vsel %vm600_vm10, %v590_v41, %v593_v50  ;;  %v613_v2 = vsel %vm603_vm8, %v599_v44, 1326507024  ;;  %v1192_v4 = vshrl.u32 %v1191_v51, 23  ;;  %v3755_v37 = vmul.f32 %v554_v28, %v3690_v31 }
 0x170   : > { %v1138_v26 = vsel %vm1136_vm7, %v1137_v48, %v3724_v0  ;;  %v3759_v40 = vsel %vm1035_vm5, %v1157_v45, %v1133_v21  ;;  %vm601_vm13 = vcmp.lt.s32.totalorder %v3711_v61, 2  ;;  %v564_v29 = vxor.u32 2147483648, %v3738_v17 }
 0x171   : > { %v1139_v19 = vclz %v1138_v26  ;;  %v584_v6 = vshrl.u32 %v2947_v47, %v583_v32  ;;  %v611_v18 = vsel %vm601_vm13, %v608_v60, %v610_v22  ;;  %v614_v51 = vsel %vm602_vm12, %v596_v36, %v613_v2 }
 0x172   : > { %v615_v31 = vsel %vm601_vm13, %v612_v13, %v614_v51  ;;  %v641_v3 = vand.u32 65535, %v611_v18  ;;  %v642_v27 = vshrl.u32 %v611_v18, 16  ;;  %v1160_v55 = vsel %vm3729_vm6, 0, %v3759_v40 }
 0x173   : > { %v2837_v43 = vadd.s32 4294967294, %v1139_v19  ;;  %v619_v54 = vand.u32 65535, %v615_v31  ;;  %v620_v12 = vshrl.u32 %v615_v31, 16  ;;  %v561_v32 = vxor.u32 2147483648, %v3755_v37 }
 0x174   : > { %v605_v10 = vsel %vm603_vm8, %v593_v50, 2102212464  ;;  %vm563_vm14 = vcmp.eq.s32.totalorder %v3706_v30, 2  ;;  %v604_v11 = vsel %vm600_vm10, %v584_v6, %v587_v7  ;;  %v644_v44 = vmul.u32 %v642_v27, %v617_v23 }
 0x175   : > { %vm2838_vm11 = vcmp.lt.s32.totalorder %v2837_v43, 0  ;;  %v622_v57 = vmul.u32 %v620_v12, %v617_v23  ;;  %v623_v36 = vmul.u32 %v619_v54, %v618_v33  ;;  %v645_v28 = vmul.u32 %v641_v3, %v618_v33 }
 0x176   : > { %v1142_v21 = vsel %vm2838_vm11, 0, %v2837_v43  ;;  %vm560_vm15 = vcmp.eq.s32.totalorder %v3706_v30, 0  ;;  %v606_v45 = vsel %vm602_vm12, %v590_v41, %v605_v10  ;;  %v621_v26 = vmul.u32 %v619_v54, %v617_v23 }
 0x177   : > { %v1143_v52 = vsub.s32 32, %v1142_v21  ;;  %v1147_v20 = vsub.s32 4294967266, %v1142_v21  ;;  %v1144_v34 = vshll.u32 %v3724_v0, %v1142_v21  ;;  %v625_v50 = vshll.u32 %v622_v57, 16 }
 0x178   : > { %v2839_v39 = vadd.s32 4294967169, %v1192_v4  ;;  %v643_v0 = vmul.u32 %v641_v3, %v617_v23  ;;  %v647_v22 = vshll.u32 %v644_v44, 16  ;;  %v624_v13 = vmul.u32 %v620_v12, %v618_v33 }
 0x179   : > { %v1145_v24 = vshrl.u32 %v1127_v46, %v1143_v52  ;;  %v1148_v48 = vadd.s32 127, %v1147_v20  ;;  %v627_v7 = vshll.u32 %v623_v36, 16  ;;  %vm629_vm0 = vc.u32 %v621_v26, %v625_v50 }
 0x17a   : > { %v631_v2 = vadd.s32 %v625_v50, %v621_v26  ;;  %vm559_vm1 = vcmp.lt.s32.totalorder %v3706_v30, 2  ;;  %v630_v43 = vsel %vm629_vm0, 1, %v2946_v1  ;;  %v646_v6 = vmul.u32 %v642_v27, %v618_v33 }
 0x17b   : > { %v1146_v19 = vor.u32 %v1145_v24, %v1144_v34  ;;  %v1149_v60 = vshll.u32 %v1148_v48, 23  ;;  %v649_v18 = vshll.u32 %v645_v28, 16  ;;  %v632_v51 = vadd.s32 %v630_v43, %v624_v13 }
 0x17c   : > { %vm633_vm2 = vc.u32 %v631_v2, %v627_v7  ;;  %vm651_vm3 = vc.u32 %v643_v0, %v647_v22  ;;  %v653_v41 = vadd.s32 %v647_v22, %v643_v0  ;;  %v626_v21 = vshrl.u32 %v622_v57, 16 }
 0x17d   : > { %v1150_v46 = vor.u32 4788187, %v1149_v60  ;;  %v1153_v31 = vcvt.s32.f32 %v1146_v19  ;;  %v634_v23 = vsel %vm633_vm2, 1, %v2946_v1  ;;  %v652_v3 = vsel %vm651_vm3, 1, %v2946_v1 }
 0x17e   : > { %v636_v54 = vadd.s32 %v634_v23, %v632_v51  ;;  %v654_v12 = vadd.s32 %v652_v3, %v646_v6  ;;  %vm655_vm4 = vc.u32 %v653_v41, %v649_v18  ;;  %v565_v52 = vsel %vm563_vm14, %v564_v29, %v3755_v37 }
 0x17f   : > { %v1151_v4 = vand.u32 2147483647, %v1150_v46  ;;  %v656_v27 = vsel %vm655_vm4, 1, %v2946_v1  ;;  %v1198_v20 = vadd.s32 1, %v2839_v39  ;;  %v628_v10 = vshrl.u32 %v623_v36, 16 }
 0x180   : > { %v637_v34 = vadd.s32 %v636_v54, %v626_v21  ;;  %v648_v24 = vshrl.u32 %v644_v44, 16  ;;  %v658_v48 = vadd.s32 %v656_v27, %v654_v12  ;;  %v562_v26 = vsel %vm560_vm15, %v3738_v17, %v561_v32 }
 0x181   : > { %v1154_v33 = vmul.f32 %v1153_v31, %v1151_v4  ;;  %v607_v50 = vsel %vm601_vm13, %v604_v11, %v606_v45  ;;  %vm1199_vm7 = vcmp.gt.s32.totalorder %v1198_v20, 0  ;;  %v650_v37 = vshrl.u32 %v645_v28, 16 }
 0x182   : > { %v3796_v19 = vadd.s32 %v637_v34, %v628_v10  ;;  %v659_v29 = vadd.s32 %v658_v48, %v648_v24  ;;  %v1200_v60 = vsel %vm1199_vm7, %v1198_v20, 0  ;;  %v1177_v44 = vadd.s32 3, %v1160_v55 }
 0x183   : > { %v1155_v57 = vxor.u32 2147483648, %v1154_v33  ;;  %v3804_v39 = vadd.s32 %v653_v41, %v649_v18  ;;  %v1202_v17 = vand.u32 31, %v1200_v60  ;;  %v566_v61 = vsel %vm559_vm1, %v562_v26, %v565_v52 }
 0x184   : > { %v660_v11 = vadd.s32 %v659_v29, %v650_v37  ;;  %v661_v28 = vmul.u32 %v3715_v35, %v607_v50  ;;  %v1195_v40 = vand.u32 8388607, %v1188_v16  ;;  %v3819_v0 = vshrl.u32 %v1200_v60, 5 }
 0x185   : > { %v1156_v36 = vsel %vm1035_vm5, %v1155_v57, %v1154_v33  ;;  %vm556_vm5 = vweird.f32 %v3378_v25  ;;  %vm663_vm8 = vc.u32 %v3796_v19, %v3804_v39  ;;  %v3817_v55 = vsub.s32 32, %v1202_v17 }
 0x186   : > { %v1159_v32 = vsel %vm3729_vm6, %v3518_v9, %v1156_v36  ;;  %v664_v30 = vadd.s32 1, %v660_v11  ;;  %v1205_v63 = vshll.u32 %v2947_v47, %v1202_v17  ;;  %v1208_v22 = vshll.u32 %v2948_v49, %v1202_v17 }
 0x187   : > { %v1161_v45 = vmul.f32 %v1159_v32, %v1159_v32  ;;  %v1206_v7 = vshrl.u32 %v2948_v49, %v3817_v55  ;;  %v1214_v2 = vshll.u32 %v2950_v56, %v1202_v17  ;;  %v1209_v43 = vshrl.u32 %v2949_v53, %v3817_v55 }
 0x188   : > { %v665_v46 = vsel %vm663_vm8, %v664_v30, %v660_v11  ;;  %v1212_v6 = vshrl.u32 %v2950_v56, %v3817_v55  ;;  %v1215_v18 = vshrl.u32 %v2951_v59, %v3817_v55  ;;  %v1211_v31 = vshll.u32 %v2949_v53, %v1202_v17 }
 0x189   : > { %v1162_v13 = vmul.f32 -0.001358992, %v1161_v45  ;;  %v1169_v35 = vmul.f32 -0.00019511016, %v1161_v45  ;;  %v666_v4 = vadd.s32 %v665_v46, %v661_v28  ;;  %v3833_v23 = vor.u32 %v1206_v7, %v1205_v63 }
 0x18a   : > { %v1216_v3 = vor.u32 %v1215_v18, %v1214_v2  ;;  %v1217_v21 = vshll.u32 %v2951_v59, %v1202_v17  ;;  %v1218_v54 = vshrl.u32 %v2952_v62, %v3817_v55  ;;  %v3838_v27 = vor.u32 %v1209_v43, %v1208_v22 }
 0x18b   : > { %v1163_v51 = vadd.f32 0.041655596, %v1162_v13  ;;  %v1170_v41 = vadd.f32 0.008332121, %v1169_v35  ;;  %v667_v33 = vadd.s32 536870912, %v666_v4  ;;  %v1178_v20 = vand.u32 3, %v1177_v44 }
 0x18c   : > { %v1196_v10 = vor.u32 8388608, %v1195_v40  ;;  %v3840_v34 = vor.u32 %v1212_v6, %v1211_v31  ;;  %v1219_v24 = vor.u32 %v1218_v54, %v1217_v21  ;;  %vm1223_vm6 = vcmp.lt.s32.totalorder %v3819_v0, 4 }
 0x18d   : > { %v1164_v12 = vmul.f32 %v1163_v51, %v1161_v45  ;;  %v1171_v52 = vmul.f32 %v1170_v41, %v1161_v45  ;;  %v3842_v57 = vshrl.u32 %v667_v33, 30  ;;  %v567_v50 = vsel %vm556_vm5, nan, %v566_v61 }
 0x18e   : > { %vm1220_vm10 = vcmp.lt.s32.totalorder %v3819_v0, 1  ;;  %vm1222_vm12 = vcmp.lt.s32.totalorder %v3819_v0, 3  ;;  %v1229_v37 = vsel %vm1223_vm6, %v1216_v3, 920167782  ;;  %vm1176_vm13 = vweird.f32 %v3518_v9 }
 0x18f   : > { %v1165_v48 = vadd.f32 -0.4999988, %v1164_v12  ;;  %v1172_v26 = vadd.f32 -0.16666654, %v1171_v52  ;;  %v669_v36 = vshll.u32 %v3842_v57, 30  ;;  %v1228_v44 = vsel %vm1220_vm10, %v3833_v23, %v3838_v27 }
 0x190   : > { %vm1221_vm11 = vcmp.lt.s32.totalorder %v3819_v0, 2  ;;  %v1230_v25 = vsel %vm1222_vm12, %v3840_v34, %v1229_v37  ;;  %v1233_v17 = vsel %vm1223_vm6, %v1219_v24, 1326507024  ;;  %v3863_v61 = vshll.u32 %v1196_v10, 8 }
 0x191   : > { %v1166_v29 = vmul.f32 %v1165_v48, %v1161_v45  ;;  %v1173_v60 = vmul.f32 %v1172_v26, %v1161_v45  ;;  %v670_v45 = vsub.s32 %v666_v4, %v669_v36  ;;  %v1232_v40 = vsel %vm1220_vm10, %v3838_v27, %v3840_v34 }
 0x192   : > { %vm1179_vm14 = vcmp.lt.s32.totalorder %v1178_v20, 2  ;;  %v1231_v30 = vsel %vm1221_vm11, %v1228_v44, %v1230_v25  ;;  %v1234_v63 = vsel %vm1222_vm12, %v1216_v3, %v1233_v17  ;;  %v353_v22 = vperm.slane %v345_v58, 0 }
 0x193   : > { %v1167_v11 = vadd.f32 1.0, %v1166_v29  ;;  %v1174_v28 = vadd.f32 1.0, %v1173_v60  ;;  %vm671_vm15 = vcmp.lt.s32.totalorder %v670_v45, 0  ;;  %v672_v7 = vsub.s32 0, %v670_v45 }
 0x194   : > { %vm1180_vm0 = vcmp.eq.s32.totalorder %v1178_v20, 0  ;;  %vm1183_vm1 = vcmp.eq.s32.totalorder %v1178_v20, 2  ;;  %v1235_v2 = vsel %vm1221_vm11, %v1232_v40, %v1234_v63  ;;  %v1237_v46 = vand.u32 65535, %v3863_v61 }
 0x195   : > { %v1175_v13 = vmul.f32 %v1174_v28, %v1159_v32  ;;  %v1184_v35 = vxor.u32 2147483648, %v1167_v11  ;;  %v673_v6 = vsel %vm671_vm15, %v672_v7, %v670_v45  ;;  %v1239_v18 = vand.u32 65535, %v1235_v2 }
 0x196   : > { %v1262_v51 = vshrl.u32 %v1231_v30, 16  ;;  %v674_v41 = vclz %v673_v6  ;;  %v1238_v4 = vshrl.u32 %v3863_v61, 16  ;;  %v1240_v31 = vshrl.u32 %v1235_v2, 16 }
 0x197   : > { %v1181_v43 = vxor.u32 2147483648, %v1175_v13  ;;  %v1261_v58 = vand.u32 65535, %v1231_v30  ;;  %v1185_v3 = vsel %vm1183_vm1, %v1184_v35, %v1175_v13  ;;  %v362_v21 = vmul.f32 %v3039_v8, %v353_v22 }
 0x198   : > { %v375_v54 = vperm.slane %v3034_v5, 1  ;;  %v662_v52 = vadd.s32 %v3804_v39, %v3796_v19  ;;  %v2828_v33 = vadd.s32 4294967294, %v674_v41  ;;  %v1243_v10 = vmul.u32 %v1239_v18, %v1238_v4 }
 0x199   : > { %v1182_v32 = vsel %vm1180_vm0, %v1167_v11, %v1181_v43  ;;  %v1204_v48 = vshrl.u32 %v2947_v47, %v3817_v55  ;;  %v1242_v26 = vmul.u32 %v1240_v31, %v1237_v46  ;;  %v1264_v37 = vmul.u32 %v1262_v51, %v1237_v46 }
 0x19a   : > { %v1186_v12 = vsel %vm1179_vm14, %v1182_v32, %v1185_v3  ;;  %vm2829_vm2 = vcmp.lt.s32.totalorder %v2828_v33, 0  ;;  %v1263_v60 = vmul.u32 %v1261_v58, %v1237_v46  ;;  %v3889_v36 = vadd.f32 %v3044_v15, %v362_v21 }
 0x19b   : > { %v1187_v24 = vsel %vm1176_vm13, nan, %v1186_v12  ;;  %v677_v20 = vsel %vm2829_vm2, 0, %v2828_v33  ;;  %v1241_v44 = vmul.u32 %v1239_v18, %v1237_v46  ;;  %v1244_v25 = vmul.u32 %v1240_v31, %v1238_v4 }
 0x19c   : > { %v2296_v29 = vpack.c.bf16 %v1187_v24, %v567_v50  ;;  %v1245_v19 = vshll.u32 %v1242_v26, 16  ;;  %v678_v39 = vsub.s32 32, %v677_v20  ;;  %v682_v17 = vsub.s32 4294967266, %v677_v20 }
 0x19d   : > { %v1246_v9 = vshrl.u32 %v1242_v26, 16  ;;  %v1247_v11 = vshll.u32 %v1243_v10, 16  ;;  %v1265_v55 = vmul.u32 %v1261_v58, %v1238_v4  ;;  %v1267_v40 = vshll.u32 %v1264_v37, 16 }
 0x19e   : > { %2341 = vmatpush.bf16.msra.mxu0 %v2296_v29  ;;  %vm1249_vm3 = vc.u32 %v1241_v44, %v1245_v19  ;;  %v1251_v28 = vadd.s32 %v1245_v19, %v1241_v44  ;;  %v679_v30 = vshll.u32 %v670_v45, %v677_v20  ;;  %v680_v50 = vshrl.u32 %v662_v52, %v678_v39 }
 0x19f   : > { %v683_v63 = vadd.s32 127, %v682_v17  ;;  %v1250_v22 = vsel %vm1249_vm3, 1, %v2946_v1  ;;  %v1266_v35 = vmul.u32 %v1262_v51, %v1238_v4  ;;  %vm1271_vm7 = vc.u32 %v1263_v60, %v1267_v40 }
 0x1a0   : > { %v1252_v13 = vadd.s32 %v1250_v22, %v1244_v25  ;;  %vm1253_vm4 = vc.u32 %v1251_v28, %v1247_v11  ;;  %v681_v7 = vor.u32 %v680_v50, %v679_v30  ;;  %v1272_v43 = vsel %vm1271_vm7, 1, %v2946_v1 }
 0x1a1   : > { %v684_v2 = vshll.u32 %v683_v63, 23  ;;  %v1254_v46 = vsel %vm1253_vm4, 1, %v2946_v1  ;;  %v1269_v18 = vshll.u32 %v1265_v55, 16  ;;  %v1273_v41 = vadd.s32 %v1267_v40, %v1263_v60 }
 0x1a2   : > { %v1256_v6 = vadd.s32 %v1254_v46, %v1252_v13  ;;  %v1274_v31 = vadd.s32 %v1272_v43, %v1266_v35  ;;  %v1224_v45 = vsel %vm1220_vm10, %v1204_v48, %v3833_v23  ;;  %v383_v32 = vperm.slane %v375_v54, 1 }
 0x1a3   : > { %v685_v58 = vor.u32 4788187, %v684_v2  ;;  %v1225_v51 = vsel %vm1223_vm6, %v3840_v34, 2102212464  ;;  %vm1275_vm5 = vc.u32 %v1273_v41, %v1269_v18  ;;  %v723_v3 = vand.u32 2147483647, %v3889_v36 }
 0x1a4   : > { %v1257_v4 = vadd.s32 %v1256_v6, %v1246_v9  ;;  %v688_v12 = vcvt.s32.f32 %v681_v7  ;;  %v1248_v52 = vshrl.u32 %v1243_v10, 16  ;;  %v1276_v33 = vsel %vm1275_vm5, 1, %v2946_v1 }
 0x1a5   : > { %v686_v21 = vand.u32 2147483647, %v685_v58  ;;  %v692_v24 = vsub.s32 4, %v3842_v57  ;;  %v1268_v26 = vshrl.u32 %v1264_v37, 16  ;;  %v1278_v29 = vadd.s32 %v1276_v33, %v1274_v31 }
 0x1a6   : > { %v726_v23 = vand.u32 2139095040, %v3889_v36  ;;  %v1226_v34 = vsel %vm1222_vm12, %v3838_v27, %v1225_v51  ;;  %v1258_v48 = vadd.s32 %v1257_v4, %v1248_v52  ;;  %v387_v60 = vmul.f32 %v383_v32, %v3039_v8 }
 0x1a7   : > { %v689_v54 = vmul.f32 %v688_v12, %v686_v21  ;;  %v1270_v20 = vshrl.u32 %v1265_v55, 16  ;;  %v1279_v44 = vadd.s32 %v1278_v29, %v1268_v26  ;;  %v730_v10 = vand.u32 8388607, %v723_v3 }
 0x1a8   : > { %v727_v25 = vshrl.u32 %v726_v23, 23  ;;  %vm570_vm8 = vcmp.lt.s32.totalorder %v3589_v14, 0  ;;  %v1277_v19 = vadd.s32 %v1273_v41, %v1269_v18  ;;  %v3912_v39 = vadd.f32 %v387_v60, %v3044_v15 }
 0x1a9   : > { %v690_v37 = vxor.u32 2147483648, %v689_v54  ;;  %v693_v17 = vsel %vm570_vm8, %v692_v24, %v3842_v57  ;;  %v1227_v27 = vsel %vm1221_vm11, %v1224_v45, %v1226_v34  ;;  %v1280_v9 = vadd.s32 %v1279_v44, %v1270_v20 }
 0x1aa   : > { %v2830_v11 = vadd.s32 4294967169, %v727_v25  ;;  %vm3919_vm6 = vcmp.le.f32.partialorder %v568_v38, 0.7853982  ;;  %vm1283_vm10 = vc.u32 %v1258_v48, %v1277_v19  ;;  %v731_v57 = vor.u32 8388608, %v730_v10 }
 0x1ab   : > { %v691_v55 = vsel %vm570_vm8, %v690_v37, %v689_v54  ;;  %v1284_v30 = vadd.s32 1, %v1280_v9  ;;  %v695_v0 = vsel %vm3919_vm6, 0, %v693_v17  ;;  %v1281_v38 = vmul.u32 %v3863_v61, %v1227_v27 }
 0x1ac   : > { %v3926_v40 = vsel %vm3919_vm6, %v3589_v14, %v691_v55  ;;  %v733_v50 = vadd.s32 1, %v2830_v11  ;;  %v1346_v22 = vand.u32 2139095040, %v3912_v39  ;;  %v712_v43 = vadd.s32 3, %v695_v0 }
 0x1ad   : > { %v696_v63 = vmul.f32 %v3926_v40, %v3926_v40  ;;  %v1285_v13 = vsel %vm1283_vm10, %v1284_v30, %v1280_v9  ;;  %v3934_v18 = vshll.u32 %v731_v57, 8  ;;  %v1343_v41 = vand.u32 2147483647, %v3912_v39 }
 0x1ae   : > { %vm734_vm12 = vcmp.gt.s32.totalorder %v733_v50, 0  ;;  %v1286_v2 = vadd.s32 %v1285_v13, %v1281_v38  ;;  %v1347_v32 = vshrl.u32 %v1346_v22, 23  ;;  %v3937_v12 = vand.u32 3, %v712_v43 }
 0x1af   : > { %v697_v35 = vmul.f32 -0.001358992, %v696_v63  ;;  %v704_v7 = vmul.f32 -0.00019511016, %v696_v63  ;;  %v735_v46 = vsel %vm734_vm12, %v733_v50, 0  ;;  %vm1190_vm13 = vcmp.lt.s32.totalorder %v3704_v42, 0 }
 0x1b0   : > { %v737_v6 = vand.u32 31, %v735_v46  ;;  %v1287_v45 = vadd.s32 536870912, %v1286_v2  ;;  %v3940_v52 = vadd.s32 %v1277_v19, %v1258_v48  ;;  %v346_v33 = vperm.slane %v3034_v5, 4 }
 0x1b1   : > { %v698_v31 = vadd.f32 0.041655596, %v697_v35  ;;  %v705_v58 = vadd.f32 0.008332121, %v704_v7  ;;  %vm3945_vm11 = vcmp.le.f32.partialorder %v1188_v16, 0.7853982 }
 0x1b2   : > { %v738_v51 = vsub.s32 32, %v737_v6  ;;  %v1288_v21 = vshrl.u32 %v1287_v45, 30  ;;  %v3950_v29 = vand.u32 65535, %v3934_v18  ;;  %v2842_v23 = vadd.s32 4294967169, %v1347_v32 }
 0x1b3   : > { %v699_v61 = vmul.f32 %v698_v31, %v696_v63  ;;  %v706_v4 = vmul.f32 %v705_v58, %v696_v63  ;;  %v3954_v54 = vand.u32 8388607, %v1343_v41  ;;  %v3958_v25 = vshrl.u32 %v735_v46, 5 }
 0x1b4   : > { %v1289_v26 = vshll.u32 %v1288_v21, 30  ;;  %v741_v60 = vshrl.u32 %v2948_v49, %v738_v51  ;;  %v744_v20 = vshrl.u32 %v2949_v53, %v738_v51  ;;  %v1312_v16 = vsub.s32 4, %v1288_v21 }
 0x1b5   : > { %v700_v34 = vadd.f32 -0.4999988, %v699_v61  ;;  %v707_v48 = vadd.f32 -0.16666654, %v706_v4  ;;  %v750_v10 = vshrl.u32 %v2951_v59, %v738_v51  ;;  %v740_v37 = vshll.u32 %v2947_v47, %v737_v6 }
 0x1b6   : > { %v1290_v44 = vsub.s32 %v1286_v2, %v1289_v26  ;;  %v743_v19 = vshll.u32 %v2948_v49, %v737_v6  ;;  %v746_v17 = vshll.u32 %v2949_v53, %v737_v6  ;;  %v747_v27 = vshrl.u32 %v2950_v56, %v738_v51 }
 0x1b7   : > { %v749_v11 = vshll.u32 %v2950_v56, %v737_v6  ;;  %v753_v28 = vshrl.u32 %v2952_v62, %v738_v51  ;;  %v701_v55 = vmul.f32 %v700_v34, %v696_v63  ;;  %v708_v30 = vmul.f32 %v707_v48, %v696_v63 }
 0x1b8   : > { %vm1291_vm14 = vcmp.lt.s32.totalorder %v1290_v44, 0  ;;  %v1292_v9 = vsub.s32 0, %v1290_v44  ;;  %v742_v57 = vor.u32 %v741_v60, %v740_v37  ;;  %v745_v50 = vor.u32 %v744_v20, %v743_v19 }
 0x1b9   : > { %v1313_v38 = vsel %vm1190_vm13, %v1312_v16, %v1288_v21  ;;  %v751_v22 = vor.u32 %v750_v10, %v749_v11  ;;  %v752_v13 = vshll.u32 %v2951_v59, %v737_v6  ;;  %v748_v7 = vor.u32 %v747_v27, %v746_v17 }
 0x1ba   : > { %v1293_v0 = vsel %vm1291_vm14, %v1292_v9, %v1290_v44  ;;  %v773_v2 = vshrl.u32 %v3934_v18, 16  ;;  %v1351_v46 = vor.u32 8388608, %v3954_v54  ;;  %v739_v43 = vshrl.u32 %v2947_v47, %v738_v51 }
 0x1bb   : > { %v1294_v35 = vclz %v1293_v0  ;;  %v754_v31 = vor.u32 %v753_v28, %v752_v13  ;;  %vm755_vm15 = vcmp.lt.s32.totalorder %v3958_v25, 1  ;;  %v3974_v63 = vadd.s32 1, %v2842_v23 }
 0x1bc   : > { %v1315_v45 = vsel %vm3945_vm11, 0, %v1313_v38  ;;  %vm758_vm0 = vcmp.lt.s32.totalorder %v3958_v25, 4  ;;  %v763_v6 = vsel %vm755_vm15, %v742_v57, %v745_v50  ;;  %v3981_v32 = vadd.f32 1.0, %v701_v55 }
 0x1bd   : > { %v2840_v58 = vadd.s32 4294967294, %v1294_v35  ;;  %v709_v61 = vadd.f32 1.0, %v708_v30  ;;  %vm757_vm1 = vcmp.lt.s32.totalorder %v3958_v25, 3  ;;  %v764_v51 = vsel %vm758_vm0, %v751_v22, 920167782 }
 0x1be   : > { %vm756_vm3 = vcmp.lt.s32.totalorder %v3958_v25, 2  ;;  %v765_v4 = vsel %vm757_vm1, %v748_v7, %v764_v51  ;;  %v767_v21 = vsel %vm755_vm15, %v745_v50, %v748_v7  ;;  %v3991_v23 = vadd.s32 3, %v1315_v45 }
 0x1bf   : > { %vm2841_vm2 = vcmp.lt.s32.totalorder %v2840_v58, 0  ;;  %v766_v34 = vsel %vm756_vm3, %v763_v6, %v765_v4  ;;  %v768_v48 = vsel %vm758_vm0, %v754_v31, 1326507024  ;;  %v760_v16 = vsel %vm758_vm0, %v748_v7, 2102212464 }
 0x1c0   : > { %v1297_v26 = vsel %vm2841_vm2, 0, %v2840_v58  ;;  %v769_v10 = vsel %vm757_vm1, %v751_v22, %v768_v48  ;;  %v796_v17 = vand.u32 65535, %v766_v34  ;;  %v797_v27 = vshrl.u32 %v766_v34, 16 }
 0x1c1   : > { %v1298_v60 = vsub.s32 32, %v1297_v26  ;;  %v1302_v20 = vsub.s32 4294967266, %v1297_v26  ;;  %v1299_v37 = vshll.u32 %v1290_v44, %v1297_v26  ;;  %v770_v19 = vsel %vm756_vm3, %v767_v21, %v769_v10 }
 0x1c2   : > { %v774_v28 = vand.u32 65535, %v770_v19  ;;  %v775_v55 = vshrl.u32 %v770_v19, 16  ;;  %v4005_v30 = vmul.f32 %v709_v61, %v3926_v40  ;;  %v719_v0 = vxor.u32 2147483648, %v3981_v32 }
 0x1c3   : > { %v1300_v9 = vshrl.u32 %v3940_v52, %v1298_v60  ;;  %v1303_v11 = vadd.s32 127, %v1302_v20  ;;  %v799_v38 = vmul.u32 %v797_v27, %v3950_v29  ;;  %v800_v13 = vmul.u32 %v796_v17, %v773_v2 }
 0x1c4   : > { %v759_v35 = vsel %vm755_vm15, %v739_v43, %v742_v57  ;;  %v777_v7 = vmul.u32 %v775_v55, %v3950_v29  ;;  %v761_v52 = vsel %vm757_vm1, %v745_v50, %v760_v16  ;;  %v778_v31 = vmul.u32 %v774_v28, %v773_v2 }
 0x1c5   : > { %v1301_v22 = vor.u32 %v1300_v9, %v1299_v37  ;;  %v1304_v44 = vshll.u32 %v1303_v11, 23  ;;  %v798_v58 = vmul.u32 %v796_v17, %v3950_v29  ;;  %v802_v40 = vshll.u32 %v799_v38, 16 }
 0x1c6   : > { %v776_v6 = vmul.u32 %v774_v28, %v3950_v29  ;;  %v780_v61 = vshll.u32 %v777_v7, 16  ;;  %v801_v51 = vmul.u32 %v797_v27, %v773_v2  ;;  %v779_v21 = vmul.u32 %v775_v55, %v773_v2 }
 0x1c7   : > { %v1305_v45 = vor.u32 4788187, %v1304_v44  ;;  %v1308_v4 = vcvt.s32.f32 %v1301_v22  ;;  %v782_v26 = vshll.u32 %v778_v31, 16  ;;  %v804_v34 = vshll.u32 %v800_v13, 16 }
 0x1c8   : > { %vm784_vm4 = vc.u32 %v776_v6, %v780_v61  ;;  %v786_v57 = vadd.s32 %v780_v61, %v776_v6  ;;  %vm806_vm7 = vc.u32 %v798_v58, %v802_v40  ;;  %v808_v60 = vadd.s32 %v802_v40, %v798_v58 }
 0x1c9   : > { %v1306_v48 = vand.u32 2147483647, %v1305_v45  ;;  %v785_v43 = vsel %vm784_vm4, 1, %v2946_v1  ;;  %v807_v50 = vsel %vm806_vm7, 1, %v2946_v1  ;;  %vm1354_vm5 = vcmp.gt.s32.totalorder %v3974_v63, 0 }
 0x1ca   : > { %v787_v16 = vadd.s32 %v785_v43, %v779_v21  ;;  %vm788_vm8 = vc.u32 %v786_v57, %v782_v26  ;;  %v809_v29 = vadd.s32 %v807_v50, %v801_v51  ;;  %v762_v2 = vsel %vm756_vm3, %v759_v35, %v761_v52 }
 0x1cb   : > { %v1309_v20 = vmul.f32 %v1308_v4, %v1306_v48  ;;  %v789_v10 = vsel %vm788_vm8, 1, %v2946_v1  ;;  %vm810_vm6 = vc.u32 %v808_v60, %v804_v34  ;;  %v1355_v37 = vsel %vm1354_vm5, %v3974_v63, 0 }
 0x1cc   : > { %v781_v17 = vshrl.u32 %v777_v7, 16  ;;  %v791_v27 = vadd.s32 %v789_v10, %v787_v16  ;;  %v811_v9 = vsel %vm810_vm6, 1, %v2946_v1  ;;  %v716_v11 = vxor.u32 2147483648, %v4005_v30 }
 0x1cd   : > { %v1310_v19 = vxor.u32 2147483648, %v1309_v20  ;;  %v803_v28 = vshrl.u32 %v799_v38, 16  ;;  %v813_v55 = vadd.s32 %v811_v9, %v809_v29  ;;  %v1357_v22 = vand.u32 31, %v1355_v37 }
 0x1ce   : > { %vm715_vm10 = vcmp.eq.s32.totalorder %v3937_v12, 0  ;;  %v783_v44 = vshrl.u32 %v778_v31, 16  ;;  %v792_v35 = vadd.s32 %v791_v27, %v781_v17  ;;  %v816_v52 = vmul.u32 %v3934_v18, %v762_v2 }
 0x1cf   : > { %v1311_v25 = vsel %vm1190_vm13, %v1310_v19, %v1309_v20  ;;  %v805_v7 = vshrl.u32 %v800_v13, 16  ;;  %v814_v58 = vadd.s32 %v813_v55, %v803_v28  ;;  %v4034_v40 = vsub.s32 32, %v1357_v22 }
 0x1d0   : > { %v4032_v63 = vsel %vm3945_vm11, %v3704_v42, %v1311_v25  ;;  %v4038_v45 = vadd.s32 %v792_v35, %v783_v44  ;;  %v4040_v6 = vadd.s32 %v808_v60, %v804_v34  ;;  %v4042_v31 = vshrl.u32 %v1355_v37, 5 }
 0x1d1   : > { %v1316_v38 = vmul.f32 %v4032_v63, %v4032_v63  ;;  %v815_v61 = vadd.s32 %v814_v58, %v805_v7  ;;  %v1360_v18 = vshll.u32 %v2947_v47, %v1357_v22  ;;  %v1363_v24 = vshll.u32 %v2948_v49, %v1357_v22 }
 0x1d2   : > { %v1364_v13 = vshrl.u32 %v2949_v53, %v4034_v40  ;;  %vm818_vm12 = vc.u32 %v4038_v45, %v4040_v6  ;;  %v1366_v21 = vshll.u32 %v2949_v53, %v1357_v22  ;;  %v1361_v34 = vshrl.u32 %v2948_v49, %v4034_v40 }
 0x1d3   : > { %v1317_v51 = vmul.f32 -0.001358992, %v1316_v38  ;;  %v1324_v4 = vmul.f32 -0.00019511016, %v1316_v38  ;;  %v819_v26 = vadd.s32 1, %v815_v61  ;;  %v1367_v57 = vshrl.u32 %v2950_v56, %v4034_v40 }
 0x1d4   : > { %v4053_v48 = vor.u32 %v1364_v13, %v1363_v24  ;;  %vm718_vm13 = vcmp.eq.s32.totalorder %v3937_v12, 2  ;;  %v1369_v60 = vshll.u32 %v2950_v56, %v1357_v22  ;;  %v1370_v20 = vshrl.u32 %v2951_v59, %v4034_v40 }
 0x1d5   : > { %v1318_v43 = vadd.f32 0.041655596, %v1317_v51  ;;  %v1325_v50 = vadd.f32 0.008332121, %v1324_v4  ;;  %vm714_vm11 = vcmp.lt.s32.totalorder %v3937_v12, 2  ;;  %v820_v16 = vsel %vm818_vm12, %v819_v26, %v815_v61 }
 0x1d6   : > { %v4062_v29 = vor.u32 %v1367_v57, %v1366_v21  ;;  %v1372_v2 = vshll.u32 %v2951_v59, %v1357_v22  ;;  %v1373_v10 = vshrl.u32 %v2952_v62, %v4034_v40  ;;  %v821_v17 = vadd.s32 %v820_v16, %v816_v52 }
 0x1d7   : > { %v1319_v37 = vmul.f32 %v1318_v43, %v1316_v38  ;;  %v1326_v19 = vmul.f32 %v1325_v50, %v1316_v38  ;;  %v1371_v27 = vor.u32 %v1370_v20, %v1369_v60  ;;  %v717_v9 = vsel %vm715_vm10, %v3981_v32, %v716_v11 }
 0x1d8   : > { %v1333_v28 = vand.u32 3, %v3991_v23  ;;  %v4071_v55 = vor.u32 %v1361_v34, %v1360_v18  ;;  %v1374_v25 = vor.u32 %v1373_v10, %v1372_v2  ;;  %vm711_vm14 = vweird.f32 %v3589_v14 }
 0x1d9   : > { %v1320_v44 = vadd.f32 -0.4999988, %v1319_v37  ;;  %v1327_v22 = vadd.f32 -0.16666654, %v1326_v19  ;;  %v822_v35 = vadd.s32 536870912, %v821_v17  ;;  %vm1378_vm15 = vcmp.lt.s32.totalorder %v4042_v31, 4 }
 0x1da   : > { %vm1375_vm0 = vcmp.lt.s32.totalorder %v4042_v31, 1  ;;  %vm1377_vm1 = vcmp.lt.s32.totalorder %v4042_v31, 3  ;;  %v1384_v52 = vsel %vm1378_vm15, %v1371_v27, 920167782  ;;  %v1388_v23 = vsel %vm1378_vm15, %v1374_v25, 1326507024 }
 0x1db   : > { %v1321_v11 = vmul.f32 %v1320_v44, %v1316_v38  ;;  %v1328_v7 = vmul.f32 %v1327_v22, %v1316_v38  ;;  %v4081_v58 = vshrl.u32 %v822_v35, 30  ;;  %v1387_v61 = vsel %vm1375_vm0, %v4053_v48, %v4062_v29 }
 0x1dc   : > { %vm1331_vm2 = vweird.f32 %v3704_v42  ;;  %vm1376_vm3 = vcmp.lt.s32.totalorder %v4042_v31, 2  ;;  %v1383_v18 = vsel %vm1375_vm0, %v4071_v55, %v4053_v48  ;;  %v1389_v24 = vsel %vm1377_vm1, %v1371_v27, %v1388_v23 }
 0x1dd   : > { %v4097_v38 = vshll.u32 %v1351_v46, 8  ;;  %v1322_v13 = vadd.f32 1.0, %v1321_v11  ;;  %v1329_v51 = vadd.f32 1.0, %v1328_v7  ;;  %v824_v4 = vshll.u32 %v4081_v58, 30 }
 0x1de   : > { %v1385_v21 = vsel %vm1377_vm1, %v4062_v29, %v1384_v52  ;;  %v720_v26 = vsel %vm718_vm13, %v719_v0, %v4005_v30  ;;  %vm1334_vm4 = vcmp.lt.s32.totalorder %v1333_v28, 2  ;;  %v1390_v54 = vsel %vm1376_vm3, %v1387_v61, %v1389_v24 }
 0x1df   : > { %v354_v46 = vperm.slane %v346_v33, 0  ;;  %v721_v34 = vsel %vm714_vm11, %v717_v9, %v720_v26  ;;  %v1330_v57 = vmul.f32 %v1329_v51, %v4032_v63  ;;  %v1339_v43 = vxor.u32 2147483648, %v1322_v13 }
 0x1e0   : > { %v825_v50 = vsub.s32 %v821_v17, %v824_v4  ;;  %v1386_v32 = vsel %vm1376_vm3, %v1383_v18, %v1385_v21  ;;  %v1392_v60 = vand.u32 65535, %v4097_v38  ;;  %v1394_v30 = vand.u32 65535, %v1390_v54 }
 0x1e1   : > { %v1395_v0 = vshrl.u32 %v1390_v54, 16  ;;  %v1336_v20 = vxor.u32 2147483648, %v1330_v57  ;;  %v1393_v2 = vshrl.u32 %v4097_v38, 16  ;;  %v722_v12 = vsel %vm711_vm14, nan, %v721_v34 }
 0x1e2   : > { %vm826_vm7 = vcmp.lt.s32.totalorder %v825_v50, 0  ;;  %v827_v16 = vsub.s32 0, %v825_v50  ;;  %vm1335_vm5 = vcmp.eq.s32.totalorder %v1333_v28, 0  ;;  %vm1338_vm8 = vcmp.eq.s32.totalorder %v1333_v28, 2 }
 0x1e3   : > { %v1397_v33 = vmul.u32 %v1395_v0, %v1392_v60  ;;  %v1337_v63 = vsel %vm1335_vm5, %v1322_v13, %v1336_v20  ;;  %v1340_v10 = vsel %vm1338_vm8, %v1339_v43, %v1330_v57  ;;  %v1398_v19 = vmul.u32 %v1394_v30, %v1393_v2 }
 0x1e4   : > { %v828_v37 = vsel %vm826_vm7, %v827_v16, %v825_v50  ;;  %v1341_v17 = vsel %vm1334_vm4, %v1337_v63, %v1340_v10  ;;  %v1417_v25 = vshrl.u32 %v1386_v32, 16  ;;  %v1396_v22 = vmul.u32 %v1394_v30, %v1392_v60 }
 0x1e5   : > { %v829_v27 = vclz %v828_v37  ;;  %v1400_v9 = vshll.u32 %v1397_v33, 16  ;;  %v1342_v44 = vsel %vm1331_vm2, nan, %v1341_v17  ;;  %v1416_v35 = vand.u32 65535, %v1386_v32 }
 0x1e6   : > { %v2297_v52 = vpack.c.bf16 %v1342_v44, %v722_v12  ;;  %v1359_v23 = vshrl.u32 %v2947_v47, %v4034_v40  ;;  %v363_v11 = vmul.f32 %v3039_v8, %v354_v46  ;;  %v1399_v7 = vmul.u32 %v1395_v0, %v1393_v2 }
 0x1e7   : > { %v2831_v14 = vadd.s32 4294967294, %v829_v27  ;;  %v1402_v61 = vshll.u32 %v1398_v19, 16  ;;  %vm1404_vm6 = vc.u32 %v1396_v22, %v1400_v9  ;;  %v1406_v28 = vadd.s32 %v1400_v9, %v1396_v22 }
 0x1e8   : > { %2360 = vmatpush.bf16.msra.mxu1 %v2297_v52  ;;  %v817_v18 = vadd.s32 %v4040_v6, %v4038_v45  ;;  %v1405_v42 = vsel %vm1404_vm6, 1, %v2946_v1  ;;  %v1419_v24 = vmul.u32 %v1417_v25, %v1392_v60  ;;  %v1420_v4 = vmul.u32 %v1416_v35, %v1393_v2 }
 0x1e9   : > { %vm2832_vm10 = vcmp.lt.s32.totalorder %v2831_v14, 0  ;;  %v1407_v51 = vadd.s32 %v1405_v42, %v1399_v7  ;;  %vm1408_vm12 = vc.u32 %v1406_v28, %v1402_v61  ;;  %v1380_v26 = vsel %vm1378_vm15, %v4062_v29, 2102212464 }
 0x1ea   : > { %v832_v13 = vsel %vm2832_vm10, 0, %v2831_v14  ;;  %v1409_v54 = vsel %vm1408_vm12, 1, %v2946_v1  ;;  %v1401_v46 = vshrl.u32 %v1397_v33, 16  ;;  %v1418_v57 = vmul.u32 %v1416_v35, %v1392_v60 }
 0x1eb   : > { %v833_v21 = vsub.s32 32, %v832_v13  ;;  %v837_v40 = vsub.s32 4294967266, %v832_v13  ;;  %v1411_v34 = vadd.s32 %v1409_v54, %v1407_v51  ;;  %v1422_v45 = vshll.u32 %v1419_v24, 16 }
 0x1ec   : > { %v834_v6 = vshll.u32 %v825_v50, %v832_v13  ;;  %v1421_v30 = vmul.u32 %v1417_v25, %v1393_v2  ;;  %v1424_v0 = vshll.u32 %v1420_v4, 16  ;;  %v4135_v16 = vadd.f32 %v3044_v15, %v363_v11 }
 0x1ed   : > { %v835_v43 = vshrl.u32 %v817_v18, %v833_v21  ;;  %v838_v32 = vadd.s32 127, %v837_v40  ;;  %vm1426_vm13 = vc.u32 %v1418_v57, %v1422_v45  ;;  %v1428_v20 = vadd.s32 %v1422_v45, %v1418_v57 }
 0x1ee   : > { %v1412_v10 = vadd.s32 %v1411_v34, %v1401_v46  ;;  %v1427_v29 = vsel %vm1426_vm13, 1, %v2946_v1  ;;  %v376_v60 = vperm.slane %v3034_v5, 5  ;;  %v1379_v50 = vsel %vm1375_vm0, %v1359_v23, %v4071_v55 }
 0x1ef   : > { %v836_v12 = vor.u32 %v835_v43, %v834_v6  ;;  %v839_v63 = vshll.u32 %v838_v32, 23  ;;  %v1429_v37 = vadd.s32 %v1427_v29, %v1421_v30  ;;  %vm1430_vm11 = vc.u32 %v1428_v20, %v1424_v0 }
 0x1f0   : > { %v1403_v2 = vshrl.u32 %v1398_v19, 16  ;;  %v1431_v17 = vsel %vm1430_vm11, 1, %v2946_v1  ;;  %v1381_v27 = vsel %vm1377_vm1, %v4053_v48, %v1380_v26  ;;  %v1423_v9 = vshrl.u32 %v1419_v24, 16 }
 0x1f1   : > { %v840_v33 = vor.u32 4788187, %v839_v63  ;;  %v1433_v25 = vadd.s32 %v1431_v17, %v1429_v37  ;;  %v878_v44 = vand.u32 2147483647, %v4135_v16  ;;  %v843_v35 = vcvt.s32.f32 %v836_v12 }
 0x1f2   : > { %v1413_v52 = vadd.s32 %v1412_v10, %v1403_v2  ;;  %v881_v5 = vand.u32 2139095040, %v4135_v16  ;;  %v847_v14 = vsub.s32 4, %v4081_v58  ;;  %v1425_v11 = vshrl.u32 %v1420_v4, 16 }
 0x1f3   : > { %v841_v22 = vand.u32 2147483647, %v840_v33  ;;  %v1434_v55 = vadd.s32 %v1433_v25, %v1423_v9  ;;  %v384_v19 = vperm.slane %v376_v60, 1  ;;  %v1432_v7 = vadd.s32 %v1428_v20, %v1424_v0 }
 0x1f4   : > { %v882_v61 = vshrl.u32 %v881_v5, 23  ;;  %v1382_v48 = vsel %vm1376_vm3, %v1379_v50, %v1381_v27  ;;  %v885_v18 = vand.u32 8388607, %v878_v44  ;;  %vm725_vm14 = vcmp.lt.s32.totalorder %v3889_v36, 0 }
 0x1f5   : > { %v844_v23 = vmul.f32 %v843_v35, %v841_v22  ;;  %v1435_v28 = vadd.s32 %v1434_v55, %v1425_v11  ;;  %vm1438_vm15 = vc.u32 %v1413_v52, %v1432_v7  ;;  %v848_v13 = vsel %vm725_vm14, %v847_v14, %v4081_v58 }
 0x1f6   : > { %v2833_v24 = vadd.s32 4294967169, %v882_v61  ;;  %v388_v4 = vmul.f32 %v384_v19, %v3039_v8  ;;  %vm4158_vm0 = vcmp.le.f32.partialorder %v723_v3, 0.7853982  ;;  %v1436_v40 = vmul.u32 %v4097_v38, %v1382_v48 }
 0x1f7   : > { %v845_v42 = vxor.u32 2147483648, %v844_v23  ;;  %v1439_v51 = vadd.s32 1, %v1435_v28  ;;  %v886_v8 = vor.u32 8388608, %v885_v18  ;;  %v850_v3 = vsel %vm4158_vm0, 0, %v848_v13 }
 0x1f8   : > { %v888_v26 = vadd.s32 1, %v2833_v24  ;;  %v4169_v58 = vadd.f32 %v388_v4, %v3044_v15  ;;  %v867_v32 = vadd.s32 3, %v850_v3  ;;  %vm4181_vm2 = vcmp.le.f32.partialorder %v1343_v41, 0.7853982 }
 0x1f9   : > { %v846_v31 = vsel %vm725_vm14, %v845_v42, %v844_v23  ;;  %v1440_v46 = vsel %vm1438_vm15, %v1439_v51, %v1435_v28  ;;  %v4175_v0 = vshll.u32 %v886_v8, 8  ;;  %vm1345_vm3 = vcmp.lt.s32.totalorder %v3912_v39, 0 }
 0x1fa   : > { %v4166_v54 = vsel %vm4158_vm0, %v3889_v36, %v846_v31  ;;  %v1441_v57 = vadd.s32 %v1440_v46, %v1436_v40  ;;  %vm889_vm1 = vcmp.gt.s32.totalorder %v888_v26, 0  ;;  %v1498_v15 = vand.u32 2147483647, %v4169_v58 }
 0x1fb   : > { %v851_v34 = vmul.f32 %v4166_v54, %v4166_v54  ;;  %v890_v38 = vsel %vm889_vm1, %v888_v26, 0  ;;  %v1501_v10 = vand.u32 2139095040, %v4169_v58  ;;  %v4186_v17 = vand.u32 3, %v867_v32 }
 0x1fc   : > { %v1442_v43 = vadd.s32 536870912, %v1441_v57  ;;  %v892_v30 = vand.u32 31, %v890_v38  ;;  %v1437_v27 = vadd.s32 %v1432_v7, %v1413_v52  ;;  %v4189_v9 = vand.u32 65535, %v4175_v0 }
 0x1fd   : > { %v852_v45 = vmul.f32 -0.001358992, %v851_v34  ;;  %v859_v6 = vmul.f32 -0.00019511016, %v851_v34  ;;  %v4193_v25 = vand.u32 8388607, %v1498_v15 }
 0x1fe   : > { %v1443_v63 = vshrl.u32 %v1442_v43, 30  ;;  %v893_v37 = vsub.s32 32, %v892_v30  ;;  %v4195_v35 = vshrl.u32 %v890_v38, 5  ;;  %v1502_v5 = vshrl.u32 %v1501_v10, 23 }
 0x1ff   : > { %v853_v20 = vadd.f32 0.041655596, %v852_v45  ;;  %v860_v12 = vadd.f32 0.008332121, %v859_v6  ;;  %v895_v11 = vshll.u32 %v2947_v47, %v892_v30  ;;  %v898_v61 = vshll.u32 %v2948_v49, %v892_v30 }
 0x200   : > { %v1444_v50 = vshll.u32 %v1443_v63, 30  ;;  %v1467_v2 = vsub.s32 4, %v1443_v63  ;;  %v896_v55 = vshrl.u32 %v2948_v49, %v893_v37  ;;  %v899_v52 = vshrl.u32 %v2949_v53, %v893_v37 }
 0x201   : > { %v854_v60 = vmul.f32 %v853_v20, %v851_v34  ;;  %v861_v33 = vmul.f32 %v860_v12, %v851_v34  ;;  %v902_v7 = vshrl.u32 %v2950_v56, %v893_v37  ;;  %v901_v48 = vshll.u32 %v2949_v53, %v892_v30 }
 0x202   : > { %v1445_v22 = vsub.s32 %v1441_v57, %v1444_v50  ;;  %v1468_v14 = vsel %vm1345_vm3, %v1467_v2, %v1443_v63  ;;  %v904_v28 = vshll.u32 %v2950_v56, %v892_v30  ;;  %v905_v18 = vshrl.u32 %v2951_v59, %v893_v37 }
 0x203   : > { %v862_v41 = vadd.f32 -0.16666654, %v861_v33  ;;  %v855_v19 = vadd.f32 -0.4999988, %v854_v60  ;;  %v1470_v13 = vsel %vm4181_vm2, 0, %v1468_v14  ;;  %v908_v51 = vshrl.u32 %v2952_v62, %v893_v37 }
 0x204   : > { %vm1446_vm4 = vcmp.lt.s32.totalorder %v1445_v22, 0  ;;  %v1447_v23 = vsub.s32 0, %v1445_v22  ;;  %v897_v21 = vor.u32 %v896_v55, %v895_v11  ;;  %v900_v31 = vor.u32 %v899_v52, %v898_v61 }
 0x205   : > { %v863_v42 = vmul.f32 %v862_v41, %v851_v34  ;;  %v906_v40 = vor.u32 %v905_v18, %v904_v28  ;;  %v856_v26 = vmul.f32 %v855_v19, %v851_v34  ;;  %v903_v46 = vor.u32 %v902_v7, %v901_v48 }
 0x206   : > { %v1448_v24 = vsel %vm1446_vm4, %v1447_v23, %v1445_v22  ;;  %v907_v8 = vshll.u32 %v2951_v59, %v892_v30  ;;  %v928_v3 = vshrl.u32 %v4175_v0, 16  ;;  %v1487_v38 = vadd.s32 3, %v1470_v13 }
 0x207   : > { %v1449_v4 = vclz %v1448_v24  ;;  %v2845_v45 = vadd.s32 4294967169, %v1502_v5  ;;  %v1506_v6 = vor.u32 8388608, %v4193_v25  ;;  %v864_v43 = vadd.f32 1.0, %v863_v42 }
 0x208   : > { %v909_v32 = vor.u32 %v908_v51, %v907_v8  ;;  %vm910_vm7 = vcmp.lt.s32.totalorder %v4195_v35, 1  ;;  %vm913_vm5 = vcmp.lt.s32.totalorder %v4195_v35, 4  ;;  %vm912_vm6 = vcmp.lt.s32.totalorder %v4195_v35, 3 }
 0x209   : > { %v2843_v57 = vadd.s32 4294967294, %v1449_v4  ;;  %v918_v34 = vsel %vm910_vm7, %v897_v21, %v900_v31  ;;  %v919_v30 = vsel %vm913_vm5, %v906_v40, 920167782  ;;  %v4220_v20 = vadd.f32 1.0, %v856_v26 }
 0x20a   : > { %v894_v63 = vshrl.u32 %v2947_v47, %v893_v37  ;;  %v920_v10 = vsel %vm912_vm6, %v903_v46, %v919_v30  ;;  %v4225_v50 = vand.u32 3, %v1487_v38  ;;  %vm911_vm10 = vcmp.lt.s32.totalorder %v4195_v35, 2 }
 0x20b   : > { %vm2844_vm8 = vcmp.lt.s32.totalorder %v2843_v57, 0  ;;  %v4229_v2 = vmul.f32 %v864_v43, %v4166_v54  ;;  %v921_v5 = vsel %vm911_vm10, %v918_v34, %v920_v10  ;;  %v922_v14 = vsel %vm910_vm7, %v900_v31, %v903_v46 }
 0x20c   : > { %v1452_v12 = vsel %vm2844_vm8, 0, %v2843_v57  ;;  %v923_v55 = vsel %vm913_vm5, %v909_v32, 1326507024  ;;  %v951_v52 = vand.u32 65535, %v921_v5  ;;  %v874_v19 = vxor.u32 2147483648, %v4220_v20 }
 0x20d   : > { %v1453_v60 = vsub.s32 32, %v1452_v12  ;;  %v1457_v33 = vsub.s32 4294967266, %v1452_v12  ;;  %v1454_v41 = vshll.u32 %v1445_v22, %v1452_v12  ;;  %v915_v23 = vsel %vm913_vm5, %v903_v46, 2102212464 }
 0x20e   : > { %v924_v54 = vsel %vm912_vm6, %v906_v40, %v923_v55  ;;  %v952_v22 = vshrl.u32 %v921_v5, 16  ;;  %v955_v24 = vmul.u32 %v951_v52, %v928_v3  ;;  %v871_v13 = vxor.u32 2147483648, %v4229_v2 }
 0x20f   : > { %v1455_v37 = vshrl.u32 %v1437_v27, %v1453_v60  ;;  %v1458_v11 = vadd.s32 127, %v1457_v33  ;;  %v925_v48 = vsel %vm911_vm10, %v922_v14, %v924_v54  ;;  %v1508_v27 = vadd.s32 1, %v2845_v45 }
 0x210   : > { %v929_v28 = vand.u32 65535, %v925_v48  ;;  %v930_v18 = vshrl.u32 %v925_v48, 16  ;;  %v954_v42 = vmul.u32 %v952_v22, %v4189_v9  ;;  %v914_v4 = vsel %vm910_vm7, %v894_v63, %v897_v21 }
 0x211   : > { %v1456_v7 = vor.u32 %v1455_v37, %v1454_v41  ;;  %v1459_v61 = vshll.u32 %v1458_v11, 23  ;;  %v916_v40 = vsel %vm912_vm6, %v900_v31, %v915_v23  ;;  %vm873_vm12 = vcmp.eq.s32.totalorder %v4186_v17, 2 }
 0x212   : > { %v932_v46 = vmul.u32 %v930_v18, %v4189_v9  ;;  %v933_v8 = vmul.u32 %v929_v28, %v928_v3  ;;  %v953_v57 = vmul.u32 %v951_v52, %v4189_v9  ;;  %vm870_vm13 = vcmp.eq.s32.totalorder %v4186_v17, 0 }
 0x213   : > { %v1460_v51 = vor.u32 4788187, %v1459_v61  ;;  %v1463_v26 = vcvt.s32.f32 %v1456_v7  ;;  %v956_v45 = vmul.u32 %v952_v22, %v928_v3  ;;  %v957_v43 = vshll.u32 %v954_v42, 16 }
 0x214   : > { %vm1509_vm11 = vcmp.gt.s32.totalorder %v1508_v27, 0  ;;  %v931_v32 = vmul.u32 %v929_v28, %v4189_v9  ;;  %v934_v21 = vmul.u32 %v930_v18, %v928_v3  ;;  %v935_v34 = vshll.u32 %v932_v46, 16 }
 0x215   : > { %v1461_v38 = vand.u32 2147483647, %v1460_v51  ;;  %v959_v30 = vshll.u32 %v955_v24, 16  ;;  %v937_v12 = vshll.u32 %v933_v8, 16  ;;  %vm961_vm14 = vc.u32 %v953_v57, %v957_v43 }
 0x216   : > { %v963_v63 = vadd.s32 %v957_v43, %v953_v57  ;;  %vm939_vm15 = vc.u32 %v931_v32, %v935_v34  ;;  %v941_v10 = vadd.s32 %v935_v34, %v931_v32  ;;  %v962_v60 = vsel %vm961_vm14, 1, %v2946_v1 }
 0x217   : > { %v1464_v31 = vmul.f32 %v1463_v26, %v1461_v38  ;;  %v1510_v33 = vsel %vm1509_vm11, %v1508_v27, 0  ;;  %v940_v5 = vsel %vm939_vm15, 1, %v2946_v1  ;;  %v964_v14 = vadd.s32 %v962_v60, %v956_v45 }
 0x218   : > { %vm965_vm0 = vc.u32 %v963_v63, %v959_v30  ;;  %v917_v9 = vsel %vm911_vm10, %v914_v4, %v916_v40  ;;  %v942_v3 = vadd.s32 %v940_v5, %v934_v21  ;;  %vm943_vm1 = vc.u32 %v941_v10, %v937_v12 }
 0x219   : > { %v1465_v41 = vxor.u32 2147483648, %v1464_v31  ;;  %v966_v37 = vsel %vm965_vm0, 1, %v2946_v1  ;;  %v944_v55 = vsel %vm943_vm1, 1, %v2946_v1  ;;  %v958_v52 = vshrl.u32 %v954_v42, 16 }
 0x21a   : > { %v968_v23 = vadd.s32 %v966_v37, %v964_v14  ;;  %v936_v22 = vshrl.u32 %v932_v46, 16  ;;  %v946_v7 = vadd.s32 %v944_v55, %v942_v3  ;;  %v1512_v35 = vand.u32 31, %v1510_v33 }
 0x21b   : > { %v1466_v11 = vsel %vm1345_vm3, %v1465_v41, %v1464_v31  ;;  %v875_v61 = vsel %vm873_vm12, %v874_v19, %v4229_v2  ;;  %v960_v27 = vshrl.u32 %v955_v24, 16  ;;  %v872_v18 = vsel %vm870_vm13, %v4220_v20, %v871_v13 }
 0x21c   : > { %v4266_v54 = vsel %vm4181_vm2, %v3912_v39, %v1466_v11  ;;  %v969_v28 = vadd.s32 %v968_v23, %v958_v52  ;;  %v938_v42 = vshrl.u32 %v933_v8, 16  ;;  %v947_v29 = vadd.s32 %v946_v7, %v936_v22 }
 0x21d   : > { %v1471_v48 = vmul.f32 %v4266_v54, %v4266_v54  ;;  %v4276_v51 = vsub.s32 32, %v1512_v35  ;;  %vm869_vm2 = vcmp.lt.s32.totalorder %v4186_v17, 2  ;;  %v971_v2 = vmul.u32 %v4175_v0, %v917_v9 }
 0x21e   : > { %v970_v26 = vadd.s32 %v969_v28, %v960_v27  ;;  %v4280_v19 = vadd.s32 %v947_v29, %v938_v42  ;;  %v4282_v46 = vadd.s32 %v963_v63, %v959_v30  ;;  %v4284_v24 = vshrl.u32 %v1510_v33, 5 }
 0x21f   : > { %v1472_v4 = vmul.f32 -0.001358992, %v1471_v48  ;;  %v1479_v40 = vmul.f32 -0.00019511016, %v1471_v48  ;;  %v1516_v20 = vshrl.u32 %v2948_v49, %v4276_v51  ;;  %v1515_v38 = vshll.u32 %v2947_v47, %v1512_v35 }
 0x220   : > { %v974_v57 = vadd.s32 1, %v970_v26  ;;  %vm973_vm3 = vc.u32 %v4280_v19, %v4282_v46  ;;  %v1518_v45 = vshll.u32 %v2948_v49, %v1512_v35  ;;  %v1519_v0 = vshrl.u32 %v2949_v53, %v4276_v51 }
 0x221   : > { %v1473_v13 = vadd.f32 0.041655596, %v1472_v4  ;;  %v1480_v8 = vadd.f32 0.008332121, %v1479_v40  ;;  %v1522_v43 = vshrl.u32 %v2950_v56, %v4276_v51  ;;  %v1521_v30 = vshll.u32 %v2949_v53, %v1512_v35 }
 0x222   : > { %v975_v34 = vsel %vm973_vm3, %v974_v57, %v970_v26  ;;  %v4297_v12 = vor.u32 %v1516_v20, %v1515_v38  ;;  %v1524_v63 = vshll.u32 %v2950_v56, %v1512_v35  ;;  %v1525_v10 = vshrl.u32 %v2951_v59, %v4276_v51 }
 0x223   : > { %v1474_v32 = vmul.f32 %v1473_v13, %v1471_v48  ;;  %v1481_v21 = vmul.f32 %v1480_v8, %v1471_v48  ;;  %v976_v31 = vadd.s32 %v975_v34, %v971_v2  ;;  %vm866_vm4 = vweird.f32 %v3889_v36 }
 0x224   : > { %v1527_v33 = vshll.u32 %v2951_v59, %v1512_v35  ;;  %v1528_v41 = vshrl.u32 %v2952_v62, %v4276_v51  ;;  %v4306_v14 = vor.u32 %v1519_v0, %v1518_v45  ;;  %v4308_v53 = vor.u32 %v1522_v43, %v1521_v30 }
 0x225   : > { %v1475_v49 = vadd.f32 -0.4999988, %v1474_v32  ;;  %v1482_v60 = vadd.f32 -0.16666654, %v1481_v21  ;;  %v977_v5 = vadd.s32 536870912, %v976_v31  ;;  %v1526_v9 = vor.u32 %v1525_v10, %v1524_v63 }
 0x226   : > { %v1529_v37 = vor.u32 %v1528_v41, %v1527_v33  ;;  %vm1533_vm7 = vcmp.lt.s32.totalorder %v4284_v24, 4  ;;  %v876_v11 = vsel %vm869_vm2, %v872_v18, %v875_v61  ;;  %vm1486_vm5 = vweird.f32 %v3912_v39 }
 0x227   : > { %v1476_v3 = vmul.f32 %v1475_v49, %v1471_v48  ;;  %v1483_v56 = vmul.f32 %v1482_v60, %v1471_v48  ;;  %vm1489_vm8 = vcmp.lt.s32.totalorder %v4225_v50, 2  ;;  %v4315_v59 = vshrl.u32 %v977_v5, 30 }
 0x228   : > { %v1539_v62 = vsel %vm1533_vm7, %v1526_v9, 920167782  ;;  %vm1530_vm6 = vcmp.lt.s32.totalorder %v4284_v24, 1  ;;  %vm1532_vm10 = vcmp.lt.s32.totalorder %v4284_v24, 3  ;;  %v1543_v48 = vsel %vm1533_vm7, %v1529_v37, 1326507024 }
 0x229   : > { %v1477_v55 = vadd.f32 1.0, %v1476_v3  ;;  %v1484_v52 = vadd.f32 1.0, %v1483_v56  ;;  %v979_v23 = vshll.u32 %v4315_v59, 30  ;;  %v1538_v17 = vsel %vm1530_vm6, %v4297_v12, %v4306_v14 }
 0x22a   : > { %v1540_v22 = vsel %vm1532_vm10, %v4308_v53, %v1539_v62  ;;  %v1542_v7 = vsel %vm1530_vm6, %v4306_v14, %v4308_v53  ;;  %v4338_v27 = vshll.u32 %v1506_v6, 8  ;;  %vm1490_vm12 = vcmp.eq.s32.totalorder %v4225_v50, 0 }
 0x22b   : > { %v1485_v35 = vmul.f32 %v1484_v52, %v4266_v54  ;;  %v1494_v61 = vxor.u32 2147483648, %v1477_v55  ;;  %v4341_v28 = vsub.s32 %v976_v31, %v979_v23  ;;  %vm1531_vm13 = vcmp.lt.s32.totalorder %v4284_v24, 2  ;;  %v2282_v24 = vld.sshfl [vmem:[#allocation1 + $0x10] sm:$0xff pattern:$0x75316420] }
 0x22c   : > { %v1544_v18 = vsel %vm1532_vm10, %v1526_v9, %v1543_v48  ;;  %vm1493_vm11 = vcmp.eq.s32.totalorder %v4225_v50, 2  ;;  %v1541_v54 = vsel %vm1531_vm13, %v1538_v17, %v1540_v22  ;;  %v877_v6 = vsel %vm866_vm4, nan, %v876_v11 }
 0x22d   : > { %v1491_v42 = vxor.u32 2147483648, %v1485_v35  ;;  %v1545_v25 = vsel %vm1531_vm13, %v1542_v7, %v1544_v18  ;;  %vm981_vm14 = vcmp.lt.s32.totalorder %v4341_v28, 0  ;;  %v982_v29 = vsub.s32 0, %v4341_v28 }
 0x22e   : > { %v1549_v4 = vand.u32 65535, %v1545_v25  ;;  %v1495_v26 = vsel %vm1493_vm11, %v1494_v61, %v1485_v35  ;;  %v1547_v2 = vand.u32 65535, %v4338_v27  ;;  %v1550_v20 = vshrl.u32 %v1545_v25, 16 }
 0x22f   : > { %v1492_v40 = vsel %vm1490_vm12, %v1477_v55, %v1491_v42  ;;  %v983_v8 = vsel %vm981_vm14, %v982_v29, %v4341_v28  ;;  %v1548_v57 = vshrl.u32 %v4338_v27, 16  ;;  %v1572_v38 = vshrl.u32 %v1541_v54, 16 }
 0x230   : > { %v1496_v13 = vsel %vm1489_vm8, %v1492_v40, %v1495_v26  ;;  %v984_v45 = vclz %v983_v8  ;;  %v1552_v0 = vmul.u32 %v1550_v20, %v1547_v2  ;;  %v1571_v43 = vand.u32 65535, %v1541_v54 }
 0x231   : > { %v1497_v36 = vsel %vm1486_vm5, nan, %v1496_v13  ;;  %v1553_v21 = vmul.u32 %v1549_v4, %v1548_v57  ;;  %v1551_v30 = vmul.u32 %v1549_v4, %v1547_v2  ;;  %v1554_v63 = vmul.u32 %v1550_v20, %v1548_v57 }
 0x232   : > { %v2298_v32 = vpack.c.bf16 %v1497_v36, %v877_v6  ;;  %v2834_v34 = vadd.s32 4294967294, %v984_v45  ;;  %v1555_v31 = vshll.u32 %v1552_v0, 16  ;;  %v1574_v50 = vmul.u32 %v1572_v38, %v1547_v2 }
 0x233   : > { %v1575_v49 = vmul.u32 %v1571_v43, %v1548_v57  ;;  %v1557_v33 = vshll.u32 %v1553_v21, 16  ;;  %v1573_v56 = vmul.u32 %v1571_v43, %v1547_v2  ;;  %v972_v37 = vadd.s32 %v4282_v46, %v4280_v19 }
 0x234   : > { %2379 = vmatpush.bf16.msra.mxu2 %v2298_v32  ;;  %vm2835_vm15 = vcmp.lt.s32.totalorder %v2834_v34, 0  ;;  %vm1559_vm0 = vc.u32 %v1551_v30, %v1555_v31  ;;  %v1561_v10 = vadd.s32 %v1555_v31, %v1551_v30  ;;  %v1577_v41 = vshll.u32 %v1574_v50, 16 }
 0x235   : > { %v987_v60 = vsel %vm2835_vm15, 0, %v2834_v34  ;;  %v1560_v39 = vsel %vm1559_vm0, 1, %v2946_v1  ;;  %v1556_v11 = vshrl.u32 %v1552_v0, 16  ;;  %v1576_v62 = vmul.u32 %v1572_v38, %v1548_v57 }
 0x236   : > { %v988_v5 = vsub.s32 32, %v987_v60  ;;  %v992_v9 = vsub.s32 4294967266, %v987_v60  ;;  %v1562_v3 = vadd.s32 %v1560_v39, %v1554_v63  ;;  %vm1563_vm1 = vc.u32 %v1561_v10, %v1557_v33 }
 0x237   : > { %v1564_v52 = vsel %vm1563_vm1, 1, %v2946_v1  ;;  %v1579_v23 = vshll.u32 %v1575_v49, 16  ;;  %vm1581_vm2 = vc.u32 %v1573_v56, %v1577_v41  ;;  %v1583_v35 = vadd.s32 %v1577_v41, %v1573_v56 }
 0x238   : > { %v993_v55 = vadd.s32 127, %v992_v9  ;;  %v990_v17 = vshrl.u32 %v972_v37, %v988_v5  ;;  %v1566_v22 = vadd.s32 %v1564_v52, %v1562_v3  ;;  %v1582_v7 = vsel %vm1581_vm2, 1, %v2946_v1 }
 0x239   : > { %v1584_v48 = vadd.s32 %v1582_v7, %v1576_v62  ;;  %v989_v18 = vshll.u32 %v4341_v28, %v987_v60  ;;  %v1535_v19 = vsel %vm1533_vm7, %v4308_v53, 2102212464  ;;  %vm1585_vm3 = vc.u32 %v1583_v35, %v1579_v23 }
 0x23a   : > { %v994_v61 = vshll.u32 %v993_v55, 23  ;;  %v1567_v46 = vadd.s32 %v1566_v22, %v1556_v11  ;;  %v1514_v54 = vshrl.u32 %v2947_v47, %v4276_v51  ;;  %v1558_v25 = vshrl.u32 %v1553_v21, 16 }
 0x23b   : > { %v1586_v6 = vsel %vm1585_vm3, 1, %v2946_v1  ;;  %v991_v29 = vor.u32 %v990_v17, %v989_v18  ;;  %v1578_v4 = vshrl.u32 %v1574_v50, 16  ;;  %v1536_v53 = vsel %vm1532_vm10, %v4306_v14, %v1535_v19 }
 0x23c   : > { %v995_v42 = vor.u32 4788187, %v994_v61  ;;  %v1588_v40 = vadd.s32 %v1586_v6, %v1584_v48  ;;  %v1534_v28 = vsel %vm1530_vm6, %v1514_v54, %v4297_v12  ;;  %v1568_v26 = vadd.s32 %v1567_v46, %v1558_v25 }
 0x23d   : > { %v1580_v20 = vshrl.u32 %v1575_v49, 16  ;;  %v1587_v8 = vadd.s32 %v1583_v35, %v1579_v23  ;;  %v998_v47 = vcvt.s32.f32 %v991_v29  ;;  %v1537_v1 = vsel %vm1531_vm13, %v1534_v28, %v1536_v53  ;;  %v4398_v23 = vld [vmem:[%s4505_s4] sm:$0xff] }
 0x23e   : > { %v996_v2 = vand.u32 2147483647, %v995_v42  ;;  %v1589_v13 = vadd.s32 %v1588_v40, %v1578_v4  ;;  %v1591_v36 = vmul.u32 %v4338_v27, %v1537_v1  ;;  %vm880_vm7 = vcmp.lt.s32.totalorder %v4135_v16, 0 }
 0x23f   : > { %vm1593_vm4 = vc.u32 %v1568_v26, %v1587_v8  ;;  %vm4388_vm5 = vcmp.le.f32.partialorder %v878_v44, 0.7853982  ;;  %v1592_v39 = vadd.s32 %v1587_v8, %v1568_v26  ;;  %vm2314_vm10 = vcmask 195584  }
 0x240   : > { %v1590_v51 = vadd.s32 %v1589_v13, %v1580_v20  ;;  %v999_v57 = vmul.f32 %v998_v47, %v996_v2  ;;  %v1002_v35 = vsub.s32 4, %v4315_v59  ;;  %2868 = vmatmul.msk.bf16.vlgmr.msra.gmra.mxu0 %vm2314_vm10, %v4398_v23  ;;  %2870 = vmatmul.msk.bf16.vlgmr.msra.gmra.mxu1 %vm2314_vm10, %v4398_v23  ;;  %vm1500_vm12 = vcmp.lt.s32.totalorder %v4169_v58, 0  ;;  %v4425_v47 = vld [vmem:[%s4505_s4 + $0x8] sm:$0xff] }
 0x241   : > { %2872 = vmatmul.msk.bf16.vlgmr.msra.gmra.mxu2 %vm2314_vm10, %v4398_v23  ;;  %vm4413_vm13 = vcmp.le.f32.partialorder %v1498_v15, 0.7853982  ;;  %vm2427_vm11 = vcmask 1041408   ;;  %vm1021_vm1 = vweird.f32 %v4135_v16 }
 0x242   : > { %v1594_v38 = vadd.s32 1, %v1590_v51  ;;  %v1000_v0 = vxor.u32 2147483648, %v999_v57  ;;  %v1003_v46 = vsel %vm880_vm7, %v1002_v35, %v4315_v59 }
 0x243   : > { %v1005_v4 = vsel %vm4388_vm5, 0, %v1003_v46 }
 0x244   : > { %v1595_v12 = vsel %vm1593_vm4, %v1594_v38, %v1590_v51  ;;  %v1001_v32 = vsel %vm880_vm7, %v1000_v0, %v999_v57  ;;  %v1022_v2 = vadd.s32 3, %v1005_v4  ;;  %vm1641_vm7 = vweird.f32 %v4169_v58 }
 0x245   : > { %v1596_v45 = vadd.s32 %v1595_v12, %v1591_v36  ;;  %v1004_v27 = vsel %vm4388_vm5, %v4135_v16, %v1001_v32  ;;  %vm2420_vm5 = vcmask 31744   ;;  %v2915_v16 = vld [vmem:[%s4504_s3 + $0x8] sm:$0xff] }
 0x246   : > { %v1006_v31 = vmul.f32 %v1004_v27, %v1004_v27  ;;  %v1023_v36 = vand.u32 3, %v1022_v2 }
 0x247   : > { %v1597_v43 = vadd.s32 536870912, %v1596_v45 }
 0x248   : > { %v1014_v10 = vmul.f32 -0.00019511016, %v1006_v31  ;;  %v1007_v5 = vmul.f32 -0.001358992, %v1006_v31  ;;  %vm1024_vm14 = vcmp.lt.s32.totalorder %v1023_v36, 2  ;;  %vm1025_vm15 = vcmp.eq.s32.totalorder %v1023_v36, 0 }
 0x249   : > { %v1598_v14 = vshrl.u32 %v1597_v43, 30  ;;  %vm1028_vm0 = vcmp.eq.s32.totalorder %v1023_v36, 2 }
 0x24a   : > { %v1015_v33 = vadd.f32 0.008332121, %v1014_v10  ;;  %v1008_v55 = vadd.f32 0.041655596, %v1007_v5 }
 0x24b   : > { %v1599_v21 = vshll.u32 %v1598_v14, 30  ;;  %v1622_v6 = vsub.s32 4, %v1598_v14  ;;  %v2281_v10 = vld.sshfl [vmem:[#allocation1 + $0x8] sm:$0xff pattern:$0x75316420] }
 0x24c   : > { %v1016_v37 = vmul.f32 %v1015_v33, %v1006_v31  ;;  %v1009_v61 = vmul.f32 %v1008_v55, %v1006_v31  ;;  %v2289_v33 = vpack.c.bf16 %v2281_v10, %v2281_v10  ;;  %v2283_v5 = vld.sshfl [vmem:[#allocation1 + $0x18] sm:$0xff pattern:$0x75316420] }
 0x24d   : > { %v1600_v34 = vsub.s32 %v1596_v45, %v1599_v21  ;;  %v1623_v20 = vsel %vm1500_vm12, %v1622_v6, %v1598_v14 }
 0x24e   : > { %v1017_v17 = vadd.f32 -0.16666654, %v1016_v37  ;;  %v1010_v42 = vadd.f32 -0.4999988, %v1009_v61  ;;  %v1625_v51 = vsel %vm4413_vm13, 0, %v1623_v20  ;;  %v2914_v61 = vld [vmem:[%s4504_s3] sm:$0xff] }
 0x24f   : > { %vm1601_vm8 = vcmp.lt.s32.totalorder %v1600_v34, 0  ;;  %v1602_v30 = vsub.s32 0, %v1600_v34  ;;  %v1642_v43 = vadd.s32 3, %v1625_v51 }
 0x250   : > { %v1018_v18 = vmul.f32 %v1017_v17, %v1006_v31  ;;  %v1011_v28 = vmul.f32 %v1010_v42, %v1006_v31  ;;  %2869 = vmatmul.msk.bf16.gmra.mxu0 %vm2314_vm10, %v4425_v47  ;;  %2871 = vmatmul.msk.bf16.gmra.mxu1 %vm2314_vm10, %v4425_v47 }
 0x251   : > { %v1603_v63 = vsel %vm1601_vm8, %v1602_v30, %v1600_v34  ;;  %2873 = vmatmul.msk.bf16.gmra.mxu2 %vm2314_vm10, %v4425_v47  ;;  %vm2578_vm8 = vcmask 261120  }
 0x252   : > { %v1604_v50 = vclz %v1603_v63  ;;  %v1019_v40 = vadd.f32 1.0, %v1018_v18  ;;  %v1012_v1 = vadd.f32 1.0, %v1011_v28 }
 0x254   : > { %v2846_v49 = vadd.s32 4294967294, %v1604_v50  ;;  %v1020_v15 = vmul.f32 %v1019_v40, %v1004_v27  ;;  %v1029_v14 = vxor.u32 2147483648, %v1012_v1  ;;  %v2290_v27 = vpack.c.bf16 %v2282_v24, %v2282_v24 }
 0x256   : > { %vm2847_vm6 = vcmp.lt.s32.totalorder %v2846_v49, 0  ;;  %v1026_v12 = vxor.u32 2147483648, %v1020_v15 }
 0x257   : > { %v1607_v60 = vsel %vm2847_vm6, 0, %v2846_v49  ;;  %v1643_v49 = vand.u32 3, %v1642_v43 }
 0x258   : > { %v1608_v44 = vsub.s32 32, %v1607_v60  ;;  %v1612_v41 = vsub.s32 4294967266, %v1607_v60  ;;  %v1609_v9 = vshll.u32 %v1600_v34, %v1607_v60  ;;  %v2280_v34 = vld.sshfl [vmem:[#allocation1] sm:$0xff pattern:$0x75316420]  ;;  %v1027_v30 = vsel %vm1025_vm15, %v1012_v1, %v1026_v12 }
 0x259   : > { %v2288_v50 = vpack.c.bf16 %v2280_v34, %v2280_v34  ;;  %v2435_v60 = vsel %vm2427_vm11, %v2290_v27, 0  ;;  %vm1645_vm2 = vcmp.eq.s32.totalorder %v1643_v49, 0  ;;  %vm1648_vm3 = vcmp.eq.s32.totalorder %v1643_v49, 2 }
 0x25a   : > { %v1610_v3 = vshrl.u32 %v1592_v39, %v1608_v44  ;;  %v1613_v56 = vadd.s32 127, %v1612_v41  ;;  %v1030_v39 = vsel %vm1028_vm0, %v1029_v14, %v1020_v15  ;;  %2485 = vmatpush.bf16.msrb.mxu2 %v2435_v60  ;;  %vm1644_vm4 = vcmp.lt.s32.totalorder %v1643_v49, 2 }
 0x25c   : > { %v1611_v11 = vor.u32 %v1610_v3, %v1609_v9  ;;  %v1614_v62 = vshll.u32 %v1613_v56, 23  ;;  %v2429_v9 = vsel %vm2427_vm11, %v2288_v50, 0  ;;  %v1031_v3 = vsel %vm1024_vm14, %v1027_v30, %v1030_v39 }
 0x25d   : > { %2447 = vmatpush.bf16.msrb.mxu0 %v2429_v9  ;;  %v2432_v56 = vsel %vm2427_vm11, %v2289_v33, 0 }
 0x25e   : > { %v1615_v52 = vor.u32 4788187, %v1614_v62  ;;  %v1618_v7 = vcvt.s32.f32 %v1611_v11  ;;  %2466 = vmatpush.bf16.msrb.mxu1 %v2432_v56  ;;  %v2291_v11 = vpack.c.bf16 %v2283_v5, %v2283_v5  ;;  %v1032_v62 = vsel %vm1021_vm1, nan, %v1031_v3 }
 0x260   : > { %v1616_v22 = vand.u32 2147483647, %v1615_v52  ;;  %v2438_v35 = vsel %vm2427_vm11, %v2291_v11, 0  ;;  %2884 = vmatmul.msk.bf16.vlgmr.msrb.gmra.mxu0 %vm2420_vm5, %v2914_v61 }
 0x261   : > { %2886 = vmatmul.msk.bf16.vlgmr.msrb.gmra.mxu1 %vm2420_vm5, %v2914_v61  ;;  %2888 = vmatmul.msk.bf16.vlgmr.msrb.gmra.mxu2 %vm2420_vm5, %v2914_v61 }
 0x262   : > { %v1619_v48 = vmul.f32 %v1618_v7, %v1616_v22 }
 0x264   : > { %v1620_v19 = vxor.u32 2147483648, %v1619_v48 }
 0x266   : > { %v1621_v25 = vsel %vm1500_vm12, %v1620_v19, %v1619_v48 }
 0x267   : > { %v1624_v29 = vsel %vm4413_vm13, %v4169_v58, %v1621_v25 }
 0x268   : > { %v1626_v59 = vmul.f32 %v1624_v29, %v1624_v29 }
 0x26a   : > { %v1627_v53 = vmul.f32 -0.001358992, %v1626_v59  ;;  %v1634_v26 = vmul.f32 -0.00019511016, %v1626_v59 }
 0x26c   : > { %v1628_v13 = vadd.f32 0.041655596, %v1627_v53  ;;  %v1635_v8 = vadd.f32 0.008332121, %v1634_v26 }
 0x26e   : > { %v1629_v57 = vmul.f32 %v1628_v13, %v1626_v59  ;;  %v1636_v38 = vmul.f32 %v1635_v8, %v1626_v59 }
 0x270   : > { %v1630_v45 = vadd.f32 -0.4999988, %v1629_v57  ;;  %v1637_v0 = vadd.f32 -0.16666654, %v1636_v38  ;;  %2885 = vmatmul.msk.bf16.gmra.mxu0 %vm2420_vm5, %v2915_v16 }
 0x271   : > { %2887 = vmatmul.msk.bf16.gmra.mxu1 %vm2420_vm5, %v2915_v16  ;;  %2889 = vmatmul.msk.bf16.gmra.mxu2 %vm2420_vm5, %v2915_v16 }
 0x272   : > { %v1631_v32 = vmul.f32 %v1630_v45, %v1626_v59  ;;  %v1638_v21 = vmul.f32 %v1637_v0, %v1626_v59 }
 0x274   : > { %v1632_v31 = vadd.f32 1.0, %v1631_v32  ;;  %v1639_v63 = vadd.f32 1.0, %v1638_v21 }
 0x276   : > { %v1640_v44 = vmul.f32 %v1639_v63, %v1624_v29  ;;  %v1649_v41 = vxor.u32 2147483648, %v1632_v31 }
 0x278   : > { %v1646_v37 = vxor.u32 2147483648, %v1640_v44  ;;  %v1650_v52 = vsel %vm1648_vm3, %v1649_v41, %v1640_v44 }
 0x27a   : > { %v1647_v55 = vsel %vm1645_vm2, %v1632_v31, %v1646_v37 }
 0x27b   : > { %v1651_v17 = vsel %vm1644_vm4, %v1647_v55, %v1650_v52  ;;  %v2918_v55 = vld [vmem:[%s4506_s5] sm:$0xff] }
 0x27c   : > { %v1652_v22 = vsel %vm1641_vm7, nan, %v1651_v17 }
 0x27d   : > { %v2299_v7 = vpack.c.bf16 %v1652_v22, %v1032_v62 }
 0x27f   : > { %2398 = vmatpush.bf16.msra.mxu3 %v2299_v7 }
 0x282   : > { %2874 = vmatmul.msk.bf16.vlgmr.msra.gmra.mxu3 %vm2314_vm10, %v4398_v23 }
 0x283   : > { %2504 = vmatpush.bf16.msrb.mxu3 %v2438_v35  ;;  %v2919_v35 = vld [vmem:[%s4506_s5 + $0x8] sm:$0xff] }
 0x292   : > { %2875 = vmatmul.msk.bf16.gmra.mxu3 %vm2314_vm10, %v4425_v47 }
 0x2a2   : > { %2890 = vmatmul.msk.bf16.vlgmr.msrb.gmra.mxu3 %vm2420_vm5, %v2914_v61 }
 0x2b2   : > { %2891 = vmatmul.msk.bf16.gmra.mxu3 %vm2420_vm5, %v2915_v16  ;;  %v2546_v16 = vld [vmem:[%s4507_s6 + $0x10] sm:$0xff] }
 0x2b3   : > { %2560 = vperm.xlu1 %2936, %v2546_v16  }
 0x2bd   : > { %v2343_v58 = vpop.f32.mrf.mxu0  ;;  %v2362_v48 = vpop.f32.mrf.mxu1 }
 0x2c4   : > { %v2381_v18 = vpop.f32.mrf.mxu2 }
 0x2c5   : > { %v2345_v19 = vpop.f32.mrf.mxu0  ;;  %v2364_v46 = vpop.f32.mrf.mxu1 }
 0x2cc   : > { %v2383_v42 = vpop.f32.mrf.mxu2 }
 0x2cd   : > { %v2348_v23 = vpop.f32.mrf.mxu0  ;;  %v2367_v54 = vpop.f32.mrf.mxu1 }
 0x2d4   : > { %v2386_v25 = vpop.f32.mrf.mxu2 }
 0x2d5   : > { %v2350_v6 = vpop.f32.mrf.mxu0  ;;  %v2369_v29 = vpop.f32.mrf.mxu1 }
 0x2dc   : > { %v2388_v4 = vpop.f32.mrf.mxu2 }
 0x2dd   : > { %v2449_v40 = vpop.f32.mrf.mxu0 }
 0x2de   : > { %v2468_v59 = vpop.f32.mrf.mxu1  ;;  %v2450_v14 = vadd.f32 %v2449_v40, %v2343_v58  ;;  %v2544_v58 = vld [vmem:[%s4507_s6] sm:$0xff] }
 0x2df   : > { %v2469_v32 = vadd.f32 %v2468_v59, %v2362_v48  ;;  %2550 = vperm.xlu2 %2937, %v2544_v58  }
 0x2e0   : > { %v2516_v5 = vmax.f32 %v2450_v14, 0.0 }
 0x2e1   : > { %v2517_v9 = vmax.f32 %v2469_v32, 0.0 }
 0x2e4   : > { %v2487_v53 = vpop.f32.mrf.mxu2 }
 0x2e5   : > { %v2451_v26 = vpop.f32.mrf.mxu0  ;;  %v2488_v3 = vadd.f32 %v2487_v53, %v2381_v18 }
 0x2e6   : > { %v2470_v2 = vpop.f32.mrf.mxu1  ;;  %v2452_v38 = vadd.f32 %v2451_v26, %v2345_v19 }
 0x2e7   : > { %v2471_v45 = vadd.f32 %v2470_v2, %v2364_v46  ;;  %v2518_v52 = vmax.f32 %v2488_v3, 0.0 }
 0x2e8   : > { %v2520_v50 = vmax.f32 %v2452_v38, 0.0 }
 0x2e9   : > { %v2521_v49 = vmax.f32 %v2471_v45, 0.0 }
 0x2ea   : > { %v2536_v37 = vpack.c.bf16 %v2520_v50, %v2516_v5 }
 0x2eb   : > { %v2537_v11 = vpack.c.bf16 %v2521_v49, %v2517_v9 }
 0x2ec   : > { %v2489_v15 = vpop.f32.mrf.mxu2 }
 0x2ed   : > { %v2454_v13 = vpop.f32.mrf.mxu0  ;;  %v2490_v60 = vadd.f32 %v2489_v15, %v2383_v42 }
 0x2ee   : > { %v2473_v8 = vpop.f32.mrf.mxu1  ;;  %v2455_v51 = vadd.f32 %v2454_v13, %v2348_v23 }
 0x2ef   : > { %v2474_v57 = vadd.f32 %v2473_v8, %v2367_v54  ;;  %v2522_v62 = vmax.f32 %v2490_v60, 0.0 }
 0x2f0   : > { %v2524_v27 = vmax.f32 %v2455_v51, 0.0 }
 0x2f1   : > { %v2525_v34 = vmax.f32 %v2474_v57, 0.0  ;;  %v2538_v22 = vpack.c.bf16 %v2522_v62, %v2518_v52 }
 0x2f4   : > { %v2492_v1 = vpop.f32.mrf.mxu2 }
 0x2f5   : > { %v2456_v36 = vpop.f32.mrf.mxu0  ;;  %v2493_v21 = vadd.f32 %v2492_v1, %v2386_v25  ;;  %v2547_v25 = vld [vmem:[%s4507_s6 + $0x18] sm:$0xff] }
 0x2f6   : > { %v2475_v12 = vpop.f32.mrf.mxu1  ;;  %v2457_v0 = vadd.f32 %v2456_v36, %v2350_v6  ;;  %2565 = vperm.xlu1 %2936, %v2547_v25  }
 0x2f7   : > { %v2476_v43 = vadd.f32 %v2475_v12, %v2369_v29  ;;  %v2526_v44 = vmax.f32 %v2493_v21, 0.0 }
 0x2f8   : > { %v2528_v30 = vmax.f32 %v2457_v0, 0.0 }
 0x2f9   : > { %v2529_v31 = vmax.f32 %v2476_v43, 0.0 }
 0x2fa   : > { %v2540_v33 = vpack.c.bf16 %v2528_v30, %v2524_v27 }
 0x2fb   : > { %v2541_v39 = vpack.c.bf16 %v2529_v31, %v2525_v34 }
 0x2fc   : > { %v2494_v63 = vpop.f32.mrf.mxu2  ;;  %2591 = vmatpush.bf16.msra.mxu0 %v2540_v33 }
 0x2fd   : > { %v2495_v10 = vadd.f32 %v2494_v63, %v2388_v4  ;;  %2610 = vmatpush.bf16.msra.mxu1 %v2541_v39  ;;  %v2545_v4 = vld [vmem:[%s4507_s6 + $0x8] sm:$0xff] }
 0x2fe   : > { %2555 = vperm.xlu2 %2937, %v2545_v4   ;;  %v2690_v4 = vpop.permute.xlu0 %2689 }
 0x2ff   : > { %v2530_v41 = vmax.f32 %v2495_v10, 0.0 }
 0x300   : > { %2592 = vmatpush.bf16.msra.mxu0 %v2536_v37 }
 0x301   : > { %v2542_v56 = vpack.c.bf16 %v2530_v41, %v2526_v44  ;;  %2611 = vmatpush.bf16.msra.mxu1 %v2537_v11 }
 0x303   : > { %2629 = vmatpush.bf16.msra.mxu2 %v2542_v56  ;;  %2900 = vmatmul.msk.bf16.vlgmr.msra.gmra.mxu0 %vm2578_vm8, %v2918_v55 }
 0x304   : > { %2902 = vmatmul.msk.bf16.vlgmr.msra.gmra.mxu1 %vm2578_vm8, %v2918_v55 }
 0x305   : > { %v4452_v28 = vpop.f32.mrf.mxu3 }
 0x307   : > { %2630 = vmatpush.bf16.msra.mxu2 %v2538_v22 }
 0x30a   : > { %2904 = vmatmul.msk.bf16.vlgmr.msra.gmra.mxu2 %vm2578_vm8, %v2918_v55 }
 0x30d   : > { %v4454_v20 = vpop.f32.mrf.mxu3 }
 0x313   : > { %2901 = vmatmul.msk.bf16.gmra.mxu0 %vm2578_vm8, %v2919_v35 }
 0x314   : > { %2903 = vmatmul.msk.bf16.gmra.mxu1 %vm2578_vm8, %v2919_v35 }
 0x315   : > { %v2405_v47 = vpop.f32.mrf.mxu3 }
 0x31a   : > { %2905 = vmatmul.msk.bf16.gmra.mxu2 %vm2578_vm8, %v2919_v35 }
 0x31d   : > { %v2407_v24 = vpop.f32.mrf.mxu3 }
 0x325   : > { %v2506_v17 = vpop.f32.mrf.mxu3  ;;  %v2561_v13 = vpop.permute.xlu1 %2560 }
 0x326   : > { %v2507_v42 = vadd.f32 %v2506_v17, %v4452_v28 }
 0x328   : > { %v2519_v40 = vmax.f32 %v2507_v42, 0.0 }
 0x32d   : > { %v2508_v7 = vpop.f32.mrf.mxu3 }
 0x32e   : > { %v2509_v19 = vadd.f32 %v2508_v7, %v4454_v20 }
 0x330   : > { %v2523_v6 = vmax.f32 %v2509_v19, 0.0 }
 0x332   : > { %v2539_v59 = vpack.c.bf16 %v2523_v6, %v2519_v40 }
 0x335   : > { %v2511_v61 = vpop.f32.mrf.mxu3 }
 0x336   : > { %v2512_v48 = vadd.f32 %v2511_v61, %v2405_v47 }
 0x338   : > { %v2527_v23 = vmax.f32 %v2512_v48, 0.0 }
 0x339   : > { %v2551_v15 = vpop.permute.xlu2 %2550 }
 0x33d   : > { %v2513_v18 = vpop.f32.mrf.mxu3 }
 0x33e   : > { %v2514_v46 = vadd.f32 %v2513_v18, %v2407_v24 }
 0x340   : > { %v2531_v54 = vmax.f32 %v2514_v46, 0.0 }
 0x342   : > { %v2543_v29 = vpack.c.bf16 %v2531_v54, %v2527_v23 }
 0x344   : > { %2648 = vmatpush.bf16.msra.mxu3 %v2543_v29 }
 0x348   : > { %2649 = vmatpush.bf16.msra.mxu3 %v2539_v59 }
 0x34b   : > { %2906 = vmatmul.msk.bf16.vlgmr.msra.gmra.mxu3 %vm2578_vm8, %v2918_v55  ;;  %v2677_v55 = vld [vmem:[%s4508_s7] sm:$0x3] }
 0x358   : > { %v2556_v38 = vpop.permute.xlu2 %2555 }
 0x35b   : > { %2907 = vmatmul.msk.bf16.gmra.mxu3 %vm2578_vm8, %v2919_v35 }
 0x368   : > { %v2566_v36 = vpop.permute.xlu1 %2565 }
 0x380   : > { %v2594_v28 = vpop.f32.mrf.mxu0 }
 0x381   : > { %v2613_v53 = vpop.f32.mrf.mxu1  ;;  %v2595_v12 = vadd.f32 %v2594_v28, %v2551_v15 }
 0x382   : > { %v2614_v45 = vadd.f32 %v2613_v53, %v2551_v15 }
 0x383   : > { %v2661_v33 = vmax.f32 %v2595_v12, 0.0 }
 0x384   : > { %v2662_v39 = vmax.f32 %v2614_v45, 0.0 }
 0x388   : > { %v2596_v26 = vpop.f32.mrf.mxu0 }
 0x389   : > { %v2615_v2 = vpop.f32.mrf.mxu1  ;;  %v2597_v0 = vadd.f32 %v2596_v26, %v2556_v38 }
 0x38a   : > { %v2616_v43 = vadd.f32 %v2615_v2, %v2556_v38 }
 0x38b   : > { %v2665_v50 = vmax.f32 %v2597_v0, 0.0 }
 0x38c   : > { %v2666_v10 = vmax.f32 %v2616_v43, 0.0 }
 0x38d   : > { %v2632_v20 = vpop.f32.mrf.mxu2  ;;  %v2678_v41 = vpack.c.bf16 %v2665_v50, %v2661_v33 }
 0x38e   : > { %v2679_v5 = vpack.c.bf16 %v2666_v10, %v2662_v39  ;;  %v2633_v37 = vadd.f32 %v2632_v20, %v2551_v15 }
 0x390   : > { %v2599_v8 = vpop.f32.mrf.mxu0  ;;  %v2663_v22 = vmax.f32 %v2633_v37, 0.0 }
 0x391   : > { %v2618_v47 = vpop.f32.mrf.mxu1  ;;  %v2600_v51 = vadd.f32 %v2599_v8, %v2561_v13 }
 0x392   : > { %v2619_v57 = vadd.f32 %v2618_v47, %v2561_v13 }
 0x393   : > { %v2669_v21 = vmax.f32 %v2600_v51, 0.0 }
 0x394   : > { %v2670_v24 = vmax.f32 %v2619_v57, 0.0 }
 0x395   : > { %v2634_v1 = vpop.f32.mrf.mxu2 }
 0x396   : > { %v2635_v3 = vadd.f32 %v2634_v1, %v2556_v38 }
 0x398   : > { %v2601_v14 = vpop.f32.mrf.mxu0  ;;  %v2667_v52 = vmax.f32 %v2635_v3, 0.0 }
 0x399   : > { %v2620_v32 = vpop.f32.mrf.mxu1  ;;  %v2602_v27 = vadd.f32 %v2601_v14, %v2566_v36 }
 0x39a   : > { %v2621_v34 = vadd.f32 %v2620_v32, %v2566_v36  ;;  %v2680_v35 = vpack.c.bf16 %v2667_v52, %v2663_v22 }
 0x39b   : > { %v2673_v31 = vmax.f32 %v2602_v27, 0.0 }
 0x39c   : > { %v2674_v63 = vmax.f32 %v2621_v34, 0.0 }
 0x39d   : > { %v2637_v30 = vpop.f32.mrf.mxu2  ;;  %v2682_v49 = vpack.c.bf16 %v2673_v31, %v2669_v21 }
 0x39e   : > { %v2683_v60 = vpack.c.bf16 %v2674_v63, %v2670_v24  ;;  %v2638_v44 = vadd.f32 %v2637_v30, %v2561_v13 }
 0x39f   : > { %2701 = vmatpush.bf16.msrb.mxu0 %v2682_v49 }
 0x3a0   : > { %2714 = vmatpush.bf16.msrb.mxu1 %v2683_v60  ;;  %v2671_v11 = vmax.f32 %v2638_v44, 0.0 }
 0x3a3   : > { %2702 = vmatpush.bf16.msrb.mxu0 %v2678_v41 }
 0x3a4   : > { %2715 = vmatpush.bf16.msrb.mxu1 %v2679_v5 }
 0x3a5   : > { %v2639_v9 = vpop.f32.mrf.mxu2 }
 0x3a6   : > { %v2640_v56 = vadd.f32 %v2639_v9, %v2566_v36  ;;  %2908 = vmatmul.msk.bf16.vlgmr.msrb.gmra.mxu0 %vm2578_vm8, %v2677_v55 }
 0x3a7   : > { %2909 = vmatmul.msk.bf16.vlgmr.msrb.gmra.mxu1 %vm2578_vm8, %v2677_v55 }
 0x3a8   : > { %v2675_v62 = vmax.f32 %v2640_v56, 0.0 }
 0x3aa   : > { %v2684_v17 = vpack.c.bf16 %v2675_v62, %v2671_v11 }
 0x3ac   : > { %2727 = vmatpush.bf16.msrb.mxu2 %v2684_v17 }
 0x3b0   : > { %2728 = vmatpush.bf16.msrb.mxu2 %v2680_v35 }
 0x3b3   : > { %2910 = vmatmul.msk.bf16.vlgmr.msrb.gmra.mxu2 %vm2578_vm8, %v2677_v55 }
 0x3ce   : > { %v2651_v7 = vpop.f32.mrf.mxu3 }
 0x3cf   : > { %v2652_v46 = vadd.f32 %v2651_v7, %v2551_v15 }
 0x3d1   : > { %v2664_v6 = vmax.f32 %v2652_v46, 0.0 }
 0x3d6   : > { %v2653_v61 = vpop.f32.mrf.mxu3 }
 0x3d7   : > { %v2654_v18 = vadd.f32 %v2653_v61, %v2556_v38 }
 0x3d9   : > { %v2668_v54 = vmax.f32 %v2654_v18, 0.0 }
 0x3db   : > { %v2681_v29 = vpack.c.bf16 %v2668_v54, %v2664_v6 }
 0x3de   : > { %v2656_v16 = vpop.f32.mrf.mxu3 }
 0x3df   : > { %v2657_v58 = vadd.f32 %v2656_v16, %v2561_v13 }
 0x3e1   : > { %v2672_v42 = vmax.f32 %v2657_v58, 0.0 }
 0x3e6   : > { %v2658_v48 = vpop.f32.mrf.mxu3 }
 0x3e7   : > { %v2659_v19 = vadd.f32 %v2658_v48, %v2566_v36 }
 0x3e9   : > { %v2676_v23 = vmax.f32 %v2659_v19, 0.0 }
 0x3eb   : > { %v2685_v25 = vpack.c.bf16 %v2676_v23, %v2672_v42 }
 0x3ed   : > { %2740 = vmatpush.bf16.msrb.mxu3 %v2685_v25 }
 0x3f1   : > { %2741 = vmatpush.bf16.msrb.mxu3 %v2681_v29 }
 0x3f4   : > { %2911 = vmatmul.msk.bf16.vlgmr.msrb.gmra.mxu3 %vm2578_vm8, %v2677_v55 }
 0x423   : > { %v2704_v40 = vpop.f32.mrf.mxu0 }
 0x424   : > { %v2717_v59 = vpop.f32.mrf.mxu1  ;;  %v2705_v53 = vadd.f32 %v2704_v40, %v2690_v4 }
 0x425   : > { %v2718_v28 = vadd.f32 %v2717_v59, %v2690_v4 }
 0x427   : > { %v2751_v26 = vrot.slane %v2718_v28, 4 }
 0x429   : > { %v2753_v2 = vsel %vm2321_vm9, %v2705_v53, %v2751_v26 }
 0x42a   : > { %2757 = vst [vmem:[%s334_s28] sm:$0xff] %v2753_v2 }
 0x42b   : > { %v2706_v20 = vpop.f32.mrf.mxu0 }
 0x42c   : > { %v2719_v15 = vpop.f32.mrf.mxu1 }
 0x436   : > { %v2730_v13 = vpop.f32.mrf.mxu2 }
 0x437   : > { %v2731_v51 = vadd.f32 %v2730_v13, %v2690_v4 }
 0x43e   : > { %v2732_v8 = vpop.f32.mrf.mxu2 }
 0x477   : > { %v2743_v47 = vpop.f32.mrf.mxu3 }
 0x478   : > { %v2744_v1 = vadd.f32 %v2743_v47, %v2690_v4 }
 0x47a   : > { %v2752_v57 = vrot.slane %v2744_v1, 4 }
 0x47c   : > { %v2754_v38 = vsel %vm2321_vm9, %v2731_v51, %v2752_v57 }
 0x47d   : > { %2758 = vst [vmem:[%s334_s28 + $0x8] sm:$0xff] %v2754_v38 }
 0x47f   : > { %v2745_v36 = vpop.f32.mrf.mxu3 }
 0x480 PF: > { %s19_s30 = sadd.s32 1, %s2944_s30  }
 0x481   : > { %p16_p4 = scmp.ge.s32.totalorder %s19_s30, 4  }
 0x483   :  { %18 = sbr.rel (!%p16_p4) target bundleno = 1 (0x1), region = 87 }

</bundles_post_ra>
